<compile_context>
chip_gen: v6e
topology: v6e:2x2x1
jax: 0.10.0
libtpu: 0.0.40
codegen_flags: <defaults>
</compile_context>

<pallas_src>
import jax
import jax.numpy as jnp
from jax.experimental import pallas as pl
from jax.experimental.pallas import tpu as pltpu


def _vmem_capacity_bytes():
    """Best-effort physical VMEM per core; only used to pick tile budgets."""
    try:
        info = pltpu.get_tpu_info()
        v = getattr(info, "vmem_capacity_bytes", None)
        if v:
            return int(v)
    except Exception:
        pass
    return 64 * 1024 * 1024  # conservative (v7x-sized) default


def _make_kernel(n_points, chunk, npc):
    """Kernel closure over static point-chunking parameters."""

    def kernel(x_ref,                                    # (tb, 3, chunk) f32
               w1, b1, w2, b2, w3, b3, bf1, bf2, bf3,    # small resident params
               wf1_hbm, wf2_hbm, wf3_hbm,                # big head weights (HBM)
               out_ref,                                  # (tb, out_pad) f32
               feat_acc, wf1_v, wf2_v, wf3_v, sem):
        tb = x_ref.shape[0]
        pj = pl.program_id(1)                            # point-chunk index

        # Start the FC-head weight DMA at the beginning of each batch tile so
        # it overlaps the conv stack (the head only needs it at the last point
        # chunk).  Also (re)initialise the running-max feature accumulator.
        @pl.when(pj == 0)
        def _():
            pltpu.make_async_copy(wf1_hbm, wf1_v, sem.at[0]).start()
            pltpu.make_async_copy(wf2_hbm, wf2_v, sem.at[1]).start()
            pltpu.make_async_copy(wf3_hbm, wf3_v, sem.at[2]).start()
            feat_acc[...] = jnp.full(feat_acc.shape, -jnp.inf, feat_acc.dtype)

        # --- PointNetfeatModel on one point chunk ---------------------------
        # x arrives lane-dense in native NCW layout; the tiny relayout to
        # (tb*chunk, 3) rows happens in VMEM (no extra HBM pass over x).
        xc = x_ref[...]                                  # (tb, 3, chunk)
        xt = jnp.swapaxes(xc, 1, 2).reshape(tb * chunk, 3)

        # conv1 (3 -> 64): tiny K=3 dot, kept in f32.
        h1 = jnp.maximum(
            jnp.dot(xt, w1[...], preferred_element_type=jnp.float32)
            + b1[...], 0.0)                              # (tb*chunk, 64)
        # conv2 (64 -> 128) / conv3 (128 -> 1024): bf16 MXU, f32 accumulate,
        # bias/ReLU in f32 (bn layers are Identity for this run_config).
        h2 = jnp.maximum(
            jnp.dot(h1.astype(jnp.bfloat16), w2[...],
                    preferred_element_type=jnp.float32) + b2[...], 0.0)
        h3 = jnp.dot(h2.astype(jnp.bfloat16), w3[...],
                     preferred_element_type=jnp.float32) + b3[...]

        if n_points != npc * chunk:
            # Point axis was zero-padded: padded points must not win the max.
            valid_last = n_points - (npc - 1) * chunk
            limit = jnp.where(pj == npc - 1, valid_last, chunk)
            p_idx = jax.lax.broadcasted_iota(jnp.int32, (tb * chunk, 1), 0) % chunk
            h3 = jnp.where(p_idx < limit, h3, -jnp.inf)

        # Fused global max-pool (torch.max(x, 2)): fold this chunk into the
        # running per-batch max instead of materialising all points at once.
        chunk_max = jnp.max(h3.reshape(tb, chunk, 1024), axis=1)   # (tb, 1024)
        feat_acc[...] = jnp.maximum(feat_acc[...], chunk_max)

        # --- MLP head (dropout/BN are identity), once per batch tile --------
        @pl.when(pj == npc - 1)
        def _():
            pltpu.make_async_copy(wf1_hbm, wf1_v, sem.at[0]).wait()
            pltpu.make_async_copy(wf2_hbm, wf2_v, sem.at[1]).wait()
            pltpu.make_async_copy(wf3_hbm, wf3_v, sem.at[2]).wait()
            feat = feat_acc[...]                         # (tb, 1024)
            f1 = jnp.maximum(
                jnp.dot(feat.astype(jnp.bfloat16), wf1_v[...],
                        preferred_element_type=jnp.float32) + bf1[...], 0.0)
            f2 = jnp.maximum(
                jnp.dot(f1.astype(jnp.bfloat16), wf2_v[...],
                        preferred_element_type=jnp.float32) + bf2[...], 0.0)
            out = jnp.dot(f2.astype(jnp.bfloat16), wf3_v[...],
                          preferred_element_type=jnp.float32) + bf3[...]
            out_ref[...] = out.astype(out_ref.dtype)     # (tb, out_pad) lane-dense

    return kernel


def regressor_eigen_september(x_b3n, params, k):
    """x_b3n: (B, 3, N) float32 (PyTorch NCW layout).  Returns (B, 3, k)."""
    B, C, N = x_b3n.shape
    assert C == 3, "expected (B, 3, N) point clouds"
    x = x_b3n.astype(jnp.float32)

    out_dim = 3 * k
    out_pad = max(128, pl.cdiv(out_dim, 128) * 128)      # lane-dense output slab

    # Pad fc3 to the lane-dense width; padded columns are zeros, sliced later.
    wf3 = params["wf3"]
    bf3 = params["bf3"]
    if wf3.shape[1] != out_pad:
        wf3 = jnp.pad(wf3, ((0, 0), (0, out_pad - wf3.shape[1])))
        bf3 = jnp.pad(bf3, ((0, 0), (0, out_pad - bf3.shape[1])))

    # --- tile selection (per-generation VMEM budgets) ------------------------
    # rows = tb * chunk point-rows per grid step; the dominant per-step tensor
    # is the (rows, 1024) f32 conv3 activation (~4 KiB/row, ~5.5 KiB/row total).
    if _vmem_capacity_bytes() >= 100 * 1024 * 1024:      # v5e / v6e: 128 MiB VMEM
        rows_budget, vmem_limit = 6144, 96 * 1024 * 1024
    else:                                                # v7x: 64 MiB physical
        rows_budget, vmem_limit = 2048, 32 * 1024 * 1024

    chunk_cap = 512
    if N <= chunk_cap:
        chunk, n_pad = N, N                              # single point chunk
    else:
        chunk = chunk_cap                                # multiple of 128
        n_pad = pl.cdiv(N, chunk) * chunk
    npc = n_pad // chunk

    tb_cap = max(1, rows_budget // chunk)
    if B <= tb_cap:
        tb = B
        if B >= 16:
            # Keep >= 2 batch steps so v7x megacore can shard across its 2 TCs
            # (harmless extra ~0.35us step on single-TC v5e/v6e).
            half = (B + 1) // 2
            tb = min(tb, max(8, pl.cdiv(half, 8) * 8))
    else:
        tb = max(8, (tb_cap // 8) * 8)                   # out-block sublanes %8
    b_pad = pl.cdiv(B, tb) * tb

    if b_pad != B or n_pad != N:
        x = jnp.pad(x, ((0, b_pad - B), (0, 0), (0, n_pad - N)))

    small = [params["w1"], params["b1"], params["w2"], params["b2"],
             params["w3"], params["b3"], params["bf1"], params["bf2"], bf3]
    heads = [params["wf1"], params["wf2"], wf3]          # manually DMA'd (pl.ANY)

    def full_spec(a):
        nd = a.ndim
        # Constant block index -> DMA'd once, resident for the whole grid.
        return pl.BlockSpec(a.shape, lambda i, j, _nd=nd: (0,) * _nd)

    in_specs = [pl.BlockSpec((tb, 3, chunk), lambda i, j: (i, 0, j))]  # x, NCW
    in_specs += [full_spec(a) for a in small]
    in_specs += [pl.BlockSpec(memory_space=pl.ANY)] * len(heads)

    scratch_shapes = [
        pltpu.VMEM((tb, 1024), jnp.float32),                     # running max feat
        pltpu.VMEM(params["wf1"].shape, params["wf1"].dtype),    # fc1 weights
        pltpu.VMEM(params["wf2"].shape, params["wf2"].dtype),    # fc2 weights
        pltpu.VMEM(wf3.shape, wf3.dtype),                        # fc3 weights (padded)
        pltpu.SemaphoreType.DMA((3,)),
    ]

    out = pl.pallas_call(
        _make_kernel(N, chunk, npc),
        out_shape=jax.ShapeDtypeStruct((b_pad, out_pad), jnp.float32),
        grid=(b_pad // tb, npc),
        in_specs=in_specs,
        out_specs=pl.BlockSpec((tb, out_pad), lambda i, j: (i, 0)),
        scratch_shapes=scratch_shapes,
        compiler_params=pltpu.CompilerParams(
            dimension_semantics=("parallel", "arbitrary"),
            vmem_limit_bytes=vmem_limit),
    )(x, *small, *heads)

    out = out[:B, :out_dim]
    # matches torch's x.view(-1, 3, k) on a row-major (B, 3k) tensor
    return out.reshape(B, 3, k)


def init_params(key, k):
    """Deterministic synthetic weights, pre-transposed to (in, out).

    Weights feeding bf16 MXU dots are stored in bf16; conv1 and all biases f32.
    """
    shapes = {
        "w1": (3, 64), "b1": (1, 64),
        "w2": (64, 128), "b2": (1, 128),
        "w3": (128, 1024), "b3": (1, 1024),
        "wf1": (1024, 512), "bf1": (1, 512),
        "wf2": (512, 256), "bf2": (1, 256),
        "wf3": (256, 3 * k), "bf3": (1, 3 * k),
    }
    bf16_weights = {"w2", "w3", "wf1", "wf2", "wf3"}
    params = {}
    keys = jax.random.split(key, len(shapes))
    for (name, shape), kk in zip(shapes.items(), keys):
        scale = 0.05 if name.startswith("w") else 0.01
        p = scale * jax.random.normal(kk, shape, dtype=jnp.float32)
        if name in bf16_weights:
            p = p.astype(jnp.bfloat16)
        params[name] = p
    return params


def reference_forward(x_b3n, params, k):
    """Plain-JAX mirror of the kernel math (bf16 dots, f32 accumulate)."""
    x = jnp.transpose(x_b3n, (0, 2, 1)).astype(jnp.float32)     # (B, N, 3)
    w1 = params["w1"]
    h = jax.nn.relu(x[..., 0:1] * w1[0:1, :] + x[..., 1:2] * w1[1:2, :]
                    + x[..., 2:3] * w1[2:3, :] + params["b1"])
    h = jax.nn.relu(jnp.dot(h.astype(jnp.bfloat16), params["w2"],
                            preferred_element_type=jnp.float32) + params["b2"])
    h = jnp.dot(h.astype(jnp.bfloat16), params["w3"],
                preferred_element_type=jnp.float32) + params["b3"]
    feat = jnp.max(h, axis=1)                                   # (B, 1024)
    f = jax.nn.relu(jnp.dot(feat.astype(jnp.bfloat16), params["wf1"],
                            preferred_element_type=jnp.float32)
                    + params["bf1"][0])
    f = jax.nn.relu(jnp.dot(f.astype(jnp.bfloat16), params["wf2"],
                            preferred_element_type=jnp.float32)
                    + params["bf2"][0])
    f = jnp.dot(f.astype(jnp.bfloat16), params["wf3"],
                preferred_element_type=jnp.float32) + params["bf3"][0]
    return f.reshape(-1, 3, k)


if __name__ == "__main__":
    run_config = {"NUM_VERTICES": 64, "DROPOUT_PROB": 0.3,
                  "K": 10, "MODEL_USE_BN": False}
    B = 2
    N = run_config["NUM_VERTICES"]
    K = run_config["K"]

    key = jax.random.PRNGKey(0)
    kx, kp = jax.random.split(key)
    x = jax.random.normal(kx, (B, 3, N), dtype=jnp.float32)   # PyTorch NCW input
    params = init_params(kp, K)

    out = regressor_eigen_september(x, params, K)
    out = jax.block_until_ready(out)

    ref = reference_forward(x, params, K)
    assert out.shape == (B, 3, K), out.shape
    assert jnp.allclose(out, ref, atol=1e-3, rtol=1e-2), "mismatch vs reference"

    print("KERNEL_OK")
</pallas_src>

<mosaic_0001>
module attributes {stable_mosaic.version = 11 : i64} {
  func.func @kernel(%arg0: i32, %arg1: i32, %arg2: memref<2x3x64xf32, #tpu.memory_space<vmem>>, %arg3: memref<3x64xf32, #tpu.memory_space<vmem>>, %arg4: memref<1x64xf32, #tpu.memory_space<vmem>>, %arg5: memref<64x128xbf16, #tpu.memory_space<vmem>>, %arg6: memref<1x128xf32, #tpu.memory_space<vmem>>, %arg7: memref<128x1024xbf16, #tpu.memory_space<vmem>>, %arg8: memref<1x1024xf32, #tpu.memory_space<vmem>>, %arg9: memref<1x512xf32, #tpu.memory_space<vmem>>, %arg10: memref<1x256xf32, #tpu.memory_space<vmem>>, %arg11: memref<1x128xf32, #tpu.memory_space<vmem>>, %arg12: memref<1024x512xbf16, #tpu.memory_space<any>>, %arg13: memref<512x256xbf16, #tpu.memory_space<any>>, %arg14: memref<256x128xbf16, #tpu.memory_space<any>>, %arg15: memref<2x128xf32, #tpu.memory_space<vmem>>, %arg16: memref<2x1024xf32, #tpu.memory_space<vmem>>, %arg17: memref<1024x512xbf16, #tpu.memory_space<vmem>>, %arg18: memref<512x256xbf16, #tpu.memory_space<vmem>>, %arg19: memref<256x128xbf16, #tpu.memory_space<vmem>>, %arg20: memref<3x!tpu.dma_semaphore, #tpu.memory_space<semaphore_mem>>) attributes {dimension_semantics = [#tpu.dimension_semantics<parallel>, #tpu.dimension_semantics<arbitrary>], iteration_bounds = array<i64: 1, 1>, scalar_prefetch = 0 : i64, scratch_operands = 5 : i64, tpu.core_type = #tpu.core_type<tc>, window_params = [{transform_indices = @transform_0, window_bounds = array<i64: 2, 3, 64>}, {pipeline_mode = #tpu.pipeline_mode<synchronous>, transform_indices = @transform_1, window_bounds = array<i64: 3, 64>}, {pipeline_mode = #tpu.pipeline_mode<synchronous>, transform_indices = @transform_2, window_bounds = array<i64: 1, 64>}, {pipeline_mode = #tpu.pipeline_mode<synchronous>, transform_indices = @transform_3, window_bounds = array<i64: 64, 128>}, {pipeline_mode = #tpu.pipeline_mode<synchronous>, transform_indices = @transform_4, window_bounds = array<i64: 1, 128>}, {pipeline_mode = #tpu.pipeline_mode<synchronous>, transform_indices = @transform_5, window_bounds = array<i64: 128, 1024>}, {pipeline_mode = #tpu.pipeline_mode<synchronous>, transform_indices = @transform_6, window_bounds = array<i64: 1, 1024>}, {pipeline_mode = #tpu.pipeline_mode<synchronous>, transform_indices = @transform_7, window_bounds = array<i64: 1, 512>}, {pipeline_mode = #tpu.pipeline_mode<synchronous>, transform_indices = @transform_8, window_bounds = array<i64: 1, 256>}, {pipeline_mode = #tpu.pipeline_mode<synchronous>, transform_indices = @transform_9, window_bounds = array<i64: 1, 128>}, {}, {}, {}, {transform_indices = @transform_13, window_bounds = array<i64: 2, 128>}]} {
    %c0_i32 = arith.constant 0 : i32
    %0 = arith.cmpi eq, %arg1, %c0_i32 : i32
    %1 = arith.extui %0 : i1 to i32
    %c0_i32_0 = arith.constant 0 : i32
    %2 = arith.cmpi ne, %1, %c0_i32_0 : i32
    scf.if %2 {
      %c0_i32_26 = arith.constant 0 : i32
      %35 = tpu.memref_slice %arg20[%c0_i32_26] : memref<3x!tpu.dma_semaphore, #tpu.memory_space<semaphore_mem>> -> memref<1x!tpu.dma_semaphore, #tpu.memory_space<semaphore_mem>>
      %36 = tpu.memref_squeeze %35 : memref<1x!tpu.dma_semaphore, #tpu.memory_space<semaphore_mem>> -> memref<!tpu.dma_semaphore, #tpu.memory_space<semaphore_mem>>
      tpu.enqueue_dma source(%arg12 : memref<1024x512xbf16, #tpu.memory_space<any>>) target(%arg17 : memref<1024x512xbf16, #tpu.memory_space<vmem>>) target_semaphore(%36 : memref<!tpu.dma_semaphore, #tpu.memory_space<semaphore_mem>>)
      %c1_i32 = arith.constant 1 : i32
      %37 = tpu.memref_slice %arg20[%c1_i32] : memref<3x!tpu.dma_semaphore, #tpu.memory_space<semaphore_mem>> -> memref<1x!tpu.dma_semaphore, #tpu.memory_space<semaphore_mem>>
      %38 = tpu.memref_squeeze %37 : memref<1x!tpu.dma_semaphore, #tpu.memory_space<semaphore_mem>> -> memref<!tpu.dma_semaphore, #tpu.memory_space<semaphore_mem>>
      tpu.enqueue_dma source(%arg13 : memref<512x256xbf16, #tpu.memory_space<any>>) target(%arg18 : memref<512x256xbf16, #tpu.memory_space<vmem>>) target_semaphore(%38 : memref<!tpu.dma_semaphore, #tpu.memory_space<semaphore_mem>>)
      %c2_i32 = arith.constant 2 : i32
      %39 = tpu.memref_slice %arg20[%c2_i32] : memref<3x!tpu.dma_semaphore, #tpu.memory_space<semaphore_mem>> -> memref<1x!tpu.dma_semaphore, #tpu.memory_space<semaphore_mem>>
      %40 = tpu.memref_squeeze %39 : memref<1x!tpu.dma_semaphore, #tpu.memory_space<semaphore_mem>> -> memref<!tpu.dma_semaphore, #tpu.memory_space<semaphore_mem>>
      tpu.enqueue_dma source(%arg14 : memref<256x128xbf16, #tpu.memory_space<any>>) target(%arg19 : memref<256x128xbf16, #tpu.memory_space<vmem>>) target_semaphore(%40 : memref<!tpu.dma_semaphore, #tpu.memory_space<semaphore_mem>>)
      %cst_27 = arith.constant 0xFF800000 : f32
      %41 = vector.broadcast %cst_27 : f32 to vector<2x1024xf32>
      %c0_28 = arith.constant 0 : index
      %c0_29 = arith.constant 0 : index
      %42 = vector.load %arg16[%c0_28, %c0_29] : memref<2x1024xf32, #tpu.memory_space<vmem>>, vector<2x1024xf32>
      tpu.vector_store %arg16[%c0_28, %c0_29], %41 {strides = array<i32>} : memref<2x1024xf32, #tpu.memory_space<vmem>>, vector<2x1024xf32>,
    } else {
    }
    %c0 = arith.constant 0 : index
    %c0_1 = arith.constant 0 : index
    %c0_2 = arith.constant 0 : index
    %3 = vector.load %arg2[%c0, %c0_1, %c0_2] : memref<2x3x64xf32, #tpu.memory_space<vmem>>, vector<2x3x64xf32>
    %4 = tpu.transpose %3, [0, 2, 1] : vector<2x3x64xf32> -> vector<2x64x3xf32>
    %5 = vector.shape_cast %4 : vector<2x64x3xf32> to vector<128x3xf32>
    %c0_3 = arith.constant 0 : index
    %c0_4 = arith.constant 0 : index
    %6 = vector.load %arg3[%c0_3, %c0_4] : memref<3x64xf32, #tpu.memory_space<vmem>>, vector<3x64xf32>
    %cst = arith.constant dense<0.000000e+00> : vector<128x64xf32>
    %7 = tpu.matmul %5, %6, %cst {dimension_numbers = #tpu.dot_dimension_numbers<[1], [0], [0], [1], [0, 0, 1, 1], [], []>} : vector<128x3xf32>, vector<3x64xf32>, vector<128x64xf32> -> vector<128x64xf32>
    %c0_5 = arith.constant 0 : index
    %c0_6 = arith.constant 0 : index
    %8 = vector.load %arg4[%c0_5, %c0_6] : memref<1x64xf32, #tpu.memory_space<vmem>>, vector<1x64xf32>
    %9 = vector.broadcast %8 : vector<1x64xf32> to vector<128x64xf32>
    %10 = arith.addf %7, %9 : vector<128x64xf32>
    %cst_7 = arith.constant 0.000000e+00 : f32
    %11 = vector.broadcast %cst_7 : f32 to vector<128x64xf32>
    %12 = arith.maximumf %10, %11 : vector<128x64xf32>
    %13 = arith.truncf %12 : vector<128x64xf32> to vector<128x64xbf16>
    %c0_8 = arith.constant 0 : index
    %c0_9 = arith.constant 0 : index
    %14 = vector.load %arg5[%c0_8, %c0_9] : memref<64x128xbf16, #tpu.memory_space<vmem>>, vector<64x128xbf16>
    %cst_10 = arith.constant dense<0.000000e+00> : vector<128x128xf32>
    %15 = tpu.matmul %13, %14, %cst_10 {dimension_numbers = #tpu.dot_dimension_numbers<[1], [0], [0], [1], [0, 0, 1, 1], [], []>} : vector<128x64xbf16>, vector<64x128xbf16>, vector<128x128xf32> -> vector<128x128xf32>
    %c0_11 = arith.constant 0 : index
    %c0_12 = arith.constant 0 : index
    %16 = vector.load %arg6[%c0_11, %c0_12] : memref<1x128xf32, #tpu.memory_space<vmem>>, vector<1x128xf32>
    %17 = vector.broadcast %16 : vector<1x128xf32> to vector<128x128xf32>
    %18 = arith.addf %15, %17 : vector<128x128xf32>
    %cst_13 = arith.constant 0.000000e+00 : f32
    %19 = vector.broadcast %cst_13 : f32 to vector<128x128xf32>
    %20 = arith.maximumf %18, %19 : vector<128x128xf32>
    %21 = arith.truncf %20 : vector<128x128xf32> to vector<128x128xbf16>
    %c0_14 = arith.constant 0 : index
    %c0_15 = arith.constant 0 : index
    %22 = vector.load %arg7[%c0_14, %c0_15] : memref<128x1024xbf16, #tpu.memory_space<vmem>>, vector<128x1024xbf16>
    %cst_16 = arith.constant dense<0.000000e+00> : vector<128x1024xf32>
    %23 = tpu.matmul %21, %22, %cst_16 {dimension_numbers = #tpu.dot_dimension_numbers<[1], [0], [0], [1], [0, 0, 1, 1], [], []>} : vector<128x128xbf16>, vector<128x1024xbf16>, vector<128x1024xf32> -> vector<128x1024xf32>
    %c0_17 = arith.constant 0 : index
    %c0_18 = arith.constant 0 : index
    %24 = vector.load %arg8[%c0_17, %c0_18] : memref<1x1024xf32, #tpu.memory_space<vmem>>, vector<1x1024xf32>
    %25 = vector.broadcast %24 : vector<1x1024xf32> to vector<128x1024xf32>
    %26 = arith.addf %23, %25 : vector<128x1024xf32>
    %27 = vector.shape_cast %26 : vector<128x1024xf32> to vector<2x64x1024xf32>
    %cst_19 = arith.constant dense<0xFF800000> : vector<2x1024xf32>
    %28 = vector.multi_reduction <maximumf>, %27, %cst_19 [1] : vector<2x64x1024xf32> to vector<2x1024xf32>
    %c0_20 = arith.constant 0 : index
    %c0_21 = arith.constant 0 : index
    %29 = vector.load %arg16[%c0_20, %c0_21] : memref<2x1024xf32, #tpu.memory_space<vmem>>, vector<2x1024xf32>
    %30 = arith.maximumf %29, %28 : vector<2x1024xf32>
    %c0_22 = arith.constant 0 : index
    %c0_23 = arith.constant 0 : index
    %31 = vector.load %arg16[%c0_22, %c0_23] : memref<2x1024xf32, #tpu.memory_space<vmem>>, vector<2x1024xf32>
    tpu.vector_store %arg16[%c0_22, %c0_23], %30 {strides = array<i32>} : memref<2x1024xf32, #tpu.memory_space<vmem>>, vector<2x1024xf32>,
    %c0_i32_24 = arith.constant 0 : i32
    %32 = arith.cmpi eq, %arg1, %c0_i32_24 : i32
    %33 = arith.extui %32 : i1 to i32
    %c0_i32_25 = arith.constant 0 : i32
    %34 = arith.cmpi ne, %33, %c0_i32_25 : i32
    scf.if %34 {
      %c0_i32_26 = arith.constant 0 : i32
      %35 = tpu.memref_slice %arg20[%c0_i32_26] : memref<3x!tpu.dma_semaphore, #tpu.memory_space<semaphore_mem>> -> memref<1x!tpu.dma_semaphore, #tpu.memory_space<semaphore_mem>>
      %36 = tpu.memref_squeeze %35 : memref<1x!tpu.dma_semaphore, #tpu.memory_space<semaphore_mem>> -> memref<!tpu.dma_semaphore, #tpu.memory_space<semaphore_mem>>
      tpu.wait_dma2 semaphore(%36 : memref<!tpu.dma_semaphore, #tpu.memory_space<semaphore_mem>>) src(%arg12 : memref<1024x512xbf16, #tpu.memory_space<any>>) dst(%arg17 : memref<1024x512xbf16, #tpu.memory_space<vmem>>)
      %c1_i32 = arith.constant 1 : i32
      %37 = tpu.memref_slice %arg20[%c1_i32] : memref<3x!tpu.dma_semaphore, #tpu.memory_space<semaphore_mem>> -> memref<1x!tpu.dma_semaphore, #tpu.memory_space<semaphore_mem>>
      %38 = tpu.memref_squeeze %37 : memref<1x!tpu.dma_semaphore, #tpu.memory_space<semaphore_mem>> -> memref<!tpu.dma_semaphore, #tpu.memory_space<semaphore_mem>>
      tpu.wait_dma2 semaphore(%38 : memref<!tpu.dma_semaphore, #tpu.memory_space<semaphore_mem>>) src(%arg13 : memref<512x256xbf16, #tpu.memory_space<any>>) dst(%arg18 : memref<512x256xbf16, #tpu.memory_space<vmem>>)
      %c2_i32 = arith.constant 2 : i32
      %39 = tpu.memref_slice %arg20[%c2_i32] : memref<3x!tpu.dma_semaphore, #tpu.memory_space<semaphore_mem>> -> memref<1x!tpu.dma_semaphore, #tpu.memory_space<semaphore_mem>>
      %40 = tpu.memref_squeeze %39 : memref<1x!tpu.dma_semaphore, #tpu.memory_space<semaphore_mem>> -> memref<!tpu.dma_semaphore, #tpu.memory_space<semaphore_mem>>
      tpu.wait_dma2 semaphore(%40 : memref<!tpu.dma_semaphore, #tpu.memory_space<semaphore_mem>>) src(%arg14 : memref<256x128xbf16, #tpu.memory_space<any>>) dst(%arg19 : memref<256x128xbf16, #tpu.memory_space<vmem>>)
      %c0_27 = arith.constant 0 : index
      %c0_28 = arith.constant 0 : index
      %41 = vector.load %arg16[%c0_27, %c0_28] : memref<2x1024xf32, #tpu.memory_space<vmem>>, vector<2x1024xf32>
      %42 = arith.truncf %41 : vector<2x1024xf32> to vector<2x1024xbf16>
      %c0_29 = arith.constant 0 : index
      %c0_30 = arith.constant 0 : index
      %43 = vector.load %arg17[%c0_29, %c0_30] : memref<1024x512xbf16, #tpu.memory_space<vmem>>, vector<1024x512xbf16>
      %cst_31 = arith.constant dense<0.000000e+00> : vector<2x512xf32>
      %44 = tpu.matmul %42, %43, %cst_31 {dimension_numbers = #tpu.dot_dimension_numbers<[1], [0], [0], [1], [0, 0, 1, 1], [], []>} : vector<2x1024xbf16>, vector<1024x512xbf16>, vector<2x512xf32> -> vector<2x512xf32>
      %c0_32 = arith.constant 0 : index
      %c0_33 = arith.constant 0 : index
      %45 = vector.load %arg9[%c0_32, %c0_33] : memref<1x512xf32, #tpu.memory_space<vmem>>, vector<1x512xf32>
      %46 = vector.broadcast %45 : vector<1x512xf32> to vector<2x512xf32>
      %47 = arith.addf %44, %46 : vector<2x512xf32>
      %cst_34 = arith.constant 0.000000e+00 : f32
      %48 = vector.broadcast %cst_34 : f32 to vector<2x512xf32>
      %49 = arith.maximumf %47, %48 : vector<2x512xf32>
      %50 = arith.truncf %49 : vector<2x512xf32> to vector<2x512xbf16>
      %c0_35 = arith.constant 0 : index
      %c0_36 = arith.constant 0 : index
      %51 = vector.load %arg18[%c0_35, %c0_36] : memref<512x256xbf16, #tpu.memory_space<vmem>>, vector<512x256xbf16>
      %cst_37 = arith.constant dense<0.000000e+00> : vector<2x256xf32>
      %52 = tpu.matmul %50, %51, %cst_37 {dimension_numbers = #tpu.dot_dimension_numbers<[1], [0], [0], [1], [0, 0, 1, 1], [], []>} : vector<2x512xbf16>, vector<512x256xbf16>, vector<2x256xf32> -> vector<2x256xf32>
      %c0_38 = arith.constant 0 : index
      %c0_39 = arith.constant 0 : index
      %53 = vector.load %arg10[%c0_38, %c0_39] : memref<1x256xf32, #tpu.memory_space<vmem>>, vector<1x256xf32>
      %54 = vector.broadcast %53 : vector<1x256xf32> to vector<2x256xf32>
      %55 = arith.addf %52, %54 : vector<2x256xf32>
      %cst_40 = arith.constant 0.000000e+00 : f32
      %56 = vector.broadcast %cst_40 : f32 to vector<2x256xf32>
      %57 = arith.maximumf %55, %56 : vector<2x256xf32>
      %58 = arith.truncf %57 : vector<2x256xf32> to vector<2x256xbf16>
      %c0_41 = arith.constant 0 : index
      %c0_42 = arith.constant 0 : index
      %59 = vector.load %arg19[%c0_41, %c0_42] : memref<256x128xbf16, #tpu.memory_space<vmem>>, vector<256x128xbf16>
      %cst_43 = arith.constant dense<0.000000e+00> : vector<2x128xf32>
      %60 = tpu.matmul %58, %59, %cst_43 {dimension_numbers = #tpu.dot_dimension_numbers<[1], [0], [0], [1], [0, 0, 1, 1], [], []>} : vector<2x256xbf16>, vector<256x128xbf16>, vector<2x128xf32> -> vector<2x128xf32>
      %c0_44 = arith.constant 0 : index
      %c0_45 = arith.constant 0 : index
      %61 = vector.load %arg11[%c0_44, %c0_45] : memref<1x128xf32, #tpu.memory_space<vmem>>, vector<1x128xf32>
      %62 = vector.broadcast %61 : vector<1x128xf32> to vector<2x128xf32>
      %63 = arith.addf %60, %62 : vector<2x128xf32>
      %c0_46 = arith.constant 0 : index
      %c0_47 = arith.constant 0 : index
      %64 = vector.load %arg15[%c0_46, %c0_47] : memref<2x128xf32, #tpu.memory_space<vmem>>, vector<2x128xf32>
      tpu.vector_store %arg15[%c0_46, %c0_47], %63 {strides = array<i32>} : memref<2x128xf32, #tpu.memory_space<vmem>>, vector<2x128xf32>,
    } else {
    }
    return
  }
  func.func @transform_0(%arg0: i32, %arg1: i32) -> (i32, i32, i32) {
    %c0_i32 = arith.constant 0 : i32
    %c0_i32_0 = arith.constant 0 : i32
    return %arg0, %c0_i32, %arg1 : i32, i32, i32
  }
  func.func @transform_1(%arg0: i32, %arg1: i32) -> (i32, i32) {
    %c0_i32 = arith.constant 0 : i32
    %c0_i32_0 = arith.constant 0 : i32
    %c0_i32_1 = arith.constant 0 : i32
    return %c0_i32, %c0_i32_0 : i32, i32
  }
  func.func @transform_2(%arg0: i32, %arg1: i32) -> (i32, i32) {
    %c0_i32 = arith.constant 0 : i32
    %c0_i32_0 = arith.constant 0 : i32
    %c0_i32_1 = arith.constant 0 : i32
    return %c0_i32, %c0_i32_0 : i32, i32
  }
  func.func @transform_3(%arg0: i32, %arg1: i32) -> (i32, i32) {
    %c0_i32 = arith.constant 0 : i32
    %c0_i32_0 = arith.constant 0 : i32
    %c0_i32_1 = arith.constant 0 : i32
    return %c0_i32, %c0_i32_0 : i32, i32
  }
  func.func @transform_4(%arg0: i32, %arg1: i32) -> (i32, i32) {
    %c0_i32 = arith.constant 0 : i32
    %c0_i32_0 = arith.constant 0 : i32
    %c0_i32_1 = arith.constant 0 : i32
    return %c0_i32, %c0_i32_0 : i32, i32
  }
  func.func @transform_5(%arg0: i32, %arg1: i32) -> (i32, i32) {
    %c0_i32 = arith.constant 0 : i32
    %c0_i32_0 = arith.constant 0 : i32
    %c0_i32_1 = arith.constant 0 : i32
    return %c0_i32, %c0_i32_0 : i32, i32
  }
  func.func @transform_6(%arg0: i32, %arg1: i32) -> (i32, i32) {
    %c0_i32 = arith.constant 0 : i32
    %c0_i32_0 = arith.constant 0 : i32
    %c0_i32_1 = arith.constant 0 : i32
    return %c0_i32, %c0_i32_0 : i32, i32
  }
  func.func @transform_7(%arg0: i32, %arg1: i32) -> (i32, i32) {
    %c0_i32 = arith.constant 0 : i32
    %c0_i32_0 = arith.constant 0 : i32
    %c0_i32_1 = arith.constant 0 : i32
    return %c0_i32, %c0_i32_0 : i32, i32
  }
  func.func @transform_8(%arg0: i32, %arg1: i32) -> (i32, i32) {
    %c0_i32 = arith.constant 0 : i32
    %c0_i32_0 = arith.constant 0 : i32
    %c0_i32_1 = arith.constant 0 : i32
    return %c0_i32, %c0_i32_0 : i32, i32
  }
  func.func @transform_9(%arg0: i32, %arg1: i32) -> (i32, i32) {
    %c0_i32 = arith.constant 0 : i32
    %c0_i32_0 = arith.constant 0 : i32
    %c0_i32_1 = arith.constant 0 : i32
    return %c0_i32, %c0_i32_0 : i32, i32
  }
  func.func @transform_13(%arg0: i32, %arg1: i32) -> (i32, i32) {
    %c0_i32 = arith.constant 0 : i32
    %c0_i32_0 = arith.constant 0 : i32
    return %arg0, %c0_i32 : i32, i32
  }
}

</mosaic_0001>

<bundles_post_ra>
// kernel: tpu_custom_call.1
= control target key start
LH: loop header
LB: loop body
LE: loop exit
PB: predicated region body
PF: predicated region fallthrough
CT: control target
= control target key end

     0   :  { %18 = vsyncpa [#allocation8], 0  ;;  %s6219_s0 = inlined_call_operand.vmem [shape: f32[2,3,64], index: 0, kind: input, shape index: {}]   ;;  %s6220_s1 = inlined_call_operand.vmem [shape: f32[3,64], index: 1, kind: input, shape index: {}]   ;;  %s6221_s2 = inlined_call_operand.vmem [shape: f32[1,64], index: 2, kind: input, shape index: {}]   ;;  %s6222_s3 = inlined_call_operand.hbm [shape: bf16[64,128], index: 3, kind: input, shape index: {}]   ;;  %s6223_s4 = inlined_call_operand.vmem [shape: f32[1,128], index: 4, kind: input, shape index: {}]   ;;  %s6224_s5 = inlined_call_operand.hbm [shape: bf16[128,1024], index: 5, kind: input, shape index: {}]   ;;  %s6225_s6 = inlined_call_operand.vmem [shape: f32[1,1024], index: 6, kind: input, shape index: {}]   ;;  %s6226_s7 = inlined_call_operand.vmem [shape: f32[1,512], index: 7, kind: input, shape index: {}]   ;;  %s6227_s8 = inlined_call_operand.vmem [shape: f32[1,256], index: 8, kind: input, shape index: {}]   ;;  %s6228_s9 = inlined_call_operand.vmem [shape: f32[1,128], index: 9, kind: input, shape index: {}]   ;;  %s6229_s10 = inlined_call_operand.hbm [shape: bf16[1024,512], index: 10, kind: input, shape index: {}]   ;;  %s6230_s11 = inlined_call_operand.hbm [shape: bf16[512,256], index: 11, kind: input, shape index: {}]   ;;  %s6231_s12 = inlined_call_operand.hbm [shape: bf16[256,128], index: 12, kind: input, shape index: {}]   ;;  %s6232_s13 = inlined_call_operand.hbm [shape: f32[2,128], index: 13, kind: output, shape index: {}]  }
   0x1   :  { %19 = vsyncpa [#allocation11], 0 }
   0x2   :  { %20 = vsyncpa [#allocation9], 0  ;;  %s5628_s25 = smov [#allocation7]  }
   0x3   :  { %s32_s26 = sshll.u32 %s5628_s25, 4  ;;  %s33_s26 = int_to_ptr.vmem [resolvable:$true] %s32_s26 }
   0x4   :  { %s5504_s27 = scalar_lea.vmem %s33_s26, 512  ;;  %p5509_p1 = scmp.lt.s32.totalorder %s33_s26, %s33_s26 }
   0x5   :  { %p5505_p0 = scmp.ne.s32.totalorder %s33_s26, %s5504_s27  ;;  %p5510_p2 = scmp.lt.s32.totalorder %s5504_s27, %s5504_s27 }
   0x7   :  { %p5511_p3 = por %p5510_p2, %p5509_p1 }
   0x9   :  { %p5512_p4 = pnand %p5511_p3, %p5505_p0 }
   0xb   :  { %5515 = shalt.err (!%p5512_p4)
}
   0xc   :  { %s5629_s28 = smov 64   ;;  %s5630_s29 = smov 4  }
   0xd   :  { %38 = dma.hbm_to_vmem [thread:$0]  %s6222_s3, 512, %s33_s26, [#allocation8], %s5629_s28, %s5629_s28, %s5630_s29  }
   0xe   :  { %s5631_s15 = smov [#allocation10]  }
   0xf   :  { %s46_s16 = sshll.u32 %s5631_s15, 4  ;;  %s47_s16 = int_to_ptr.vmem [resolvable:$true] %s46_s16 }
  0x10   :  { %s5524_s17 = scalar_lea.vmem %s47_s16, 8192  ;;  %p5529_p6 = scmp.lt.s32.totalorder %s47_s16, %s47_s16 }
  0x11   :  { %p5525_p5 = scmp.ne.s32.totalorder %s47_s16, %s5524_s17  ;;  %p5530_p7 = scmp.lt.s32.totalorder %s5524_s17, %s5524_s17 }
  0x13   :  { %p5531_p8 = por %p5530_p7, %p5529_p6 }
  0x15   :  { %p5532_p9 = pnand %p5531_p8, %p5525_p5 }
  0x17   :  { %5535 = shalt.err (!%p5532_p9)
}
  0x18   :  { %s5632_s18 = smov 512   ;;  %s5633_s19 = smov 32  }
  0x19   :  { %52 = dma.hbm_to_vmem [thread:$0]  %s6224_s5, 8192, %s47_s16, [#allocation11], %s5632_s18, %s5632_s18, %s5633_s19  }
  0x1a   :  { %5616 = dma.done.wait [#allocation8], 512  }
  0x1b   :  { %5617 = vsyncadd [#allocation8], 4294966784 }
  0x1c   :  { %5618 = dma.done.wait [#allocation11], 8192  }
  0x1d   :  { %5619 = vsyncadd [#allocation11], 4294959104  ;;  %vm232_vm0 = vcmask 1042432   ;;  %v109_v0 = vld [vmem:[%s6219_s0] sm:$0x7]  ;;  %vm183_vm1 = vcmask 23552  }
  0x1e   :  { %v175_v1 = vld [vmem:[%s6220_s1] sm:$0x7]  ;;  %111 = vxpose.xlu0.b32.start.end [1/1] (short) (narrow) %v109_v0, 64  ;;  %v110_v2 = vld [vmem:[%s6219_s0 + $0x4] sm:$0x7]  ;;  %v4996_v19 = vld [vmem:[#allocation7 + $0x18] sm:$0xff]  }
  0x1f   :  { %4933 = vmatprep.subr.msk.mxu0 %vm232_vm0, %v175_v1  ;;  %4959 = vmatprep.subr.bf16.mxu1 %v4996_v19  ;;  %v4997_v20 = vld [vmem:[#allocation7 + $0x10] sm:$0xff]   ;;  %v4998_v21 = vld [vmem:[#allocation7 + $0x8] sm:$0xff]   ;;  %v4999_v22 = vld [vmem:[#allocation7] sm:$0xff]   ;;  %vm444_vm2 = vcmask 523264   ;;  %s5636_s29 = smov [#allocation4]  }
  0x20   :  { %4934 = vmatpush3.msk.msra.mxu0 %vm232_vm0, %v175_v1  ;;  %4960 = vmatpush3.bf16.msra.mxu1 %v4996_v19  ;;  %v646_v23 = vld [vmem:[#allocation10 + $0x1c0] sm:$0xff]  ;;  %v647_v25 = vld [vmem:[#allocation10 + $0x1c8] sm:$0xff]  ;;  %s91_s30 = sshll.u32 %s5636_s29, 4  ;;  %s92_s30 = int_to_ptr.vmem [resolvable:$true] %s91_s30 }
  0x21   :  { %4961 = vmatprep.subr.bf16.mxu1 %v4997_v20  ;;  %v650_v24 = vld [vmem:[#allocation10 + $0x1e0] sm:$0xff]  ;;  %v651_v28 = vld [vmem:[#allocation10 + $0x1e8] sm:$0xff] }
  0x22   :  { %v4534_v26 = vcombine.low %v646_v23, %v650_v24  ;;  %v4535_v27 = vcombine.high %v646_v23, %v650_v24  ;;  %v638_v29 = vld [vmem:[#allocation10 + $0x180] sm:$0xff]  ;;  %v4536_v31 = vcombine.low %v647_v25, %v651_v28  ;;  %v4537_v32 = vcombine.high %v647_v25, %v651_v28  ;;  %v639_v59 = vld [vmem:[#allocation10 + $0x188] sm:$0xff] }
  0x23   :  { %v642_v30 = vld [vmem:[#allocation10 + $0x1a0] sm:$0xff]  ;;  %v643_v60 = vld [vmem:[#allocation10 + $0x1a8] sm:$0xff] }
  0x24   :  { %4962 = vmatpush3.bf16.msra.mxu1 %v4997_v20  ;;  %v4527_v33 = vcombine.high %v638_v29, %v642_v30  ;;  %v630_v34 = vld [vmem:[#allocation10 + $0x140] sm:$0xff]  ;;  %1016 = vmatprep.subr.bf16.mxu0 %v4535_v27  ;;  %v4526_v36 = vcombine.low %v638_v29, %v642_v30  ;;  %v4529_v0 = vcombine.high %v639_v59, %v643_v60 }
  0x25   :  { %4963 = vmatprep.subr.bf16.mxu1 %v4998_v21  ;;  %v634_v35 = vld [vmem:[#allocation10 + $0x160] sm:$0xff] }
  0x26   :  { %v4519_v37 = vcombine.high %v630_v34, %v634_v35  ;;  %v622_v38 = vld [vmem:[#allocation10 + $0x100] sm:$0xff]  ;;  %v4518_v40 = vcombine.low %v630_v34, %v634_v35 }
  0x27   :  { %v626_v39 = vld [vmem:[#allocation10 + $0x120] sm:$0xff] }
  0x28   :  { %4964 = vmatpush3.bf16.msra.mxu1 %v4998_v21  ;;  %v4511_v41 = vcombine.high %v622_v38, %v626_v39  ;;  %v614_v42 = vld [vmem:[#allocation10 + $0xc0] sm:$0xff]  ;;  %v4510_v44 = vcombine.low %v622_v38, %v626_v39 }
  0x29   :  { %4965 = vmatprep.subr.bf16.mxu1 %v4999_v22  ;;  %v618_v43 = vld [vmem:[#allocation10 + $0xe0] sm:$0xff] }
  0x2a   :  { %v4503_v45 = vcombine.high %v614_v42, %v618_v43  ;;  %v4502_v46 = vcombine.low %v614_v42, %v618_v43  ;;  %v5744_v47 = vld [vmem:[%s6221_s2] ss:$0 sm:$0xff] }
  0x2c   :  { %4966 = vmatpush3.bf16.msra.mxu1 %v4999_v22 }
  0x2d   :  { %1129 = vmatprep.subr.bf16.mxu1 %v4537_v32 }
  0x3b   :  { %143 = vxpose.xlu0.b32.start.end [1/1] (short) (narrow) %v110_v2, 64  ;;  %v631_v2 = vld [vmem:[#allocation10 + $0x148] sm:$0xff] }
  0x9a   :  { %v127_v3 = vpop.trf.xlu0 }
  0x9b   :  { %4935 = vmatprep.mubr.msk.f32.mxu0 %vm183_vm1, %v127_v3  ;;  %v635_v3 = vld [vmem:[#allocation10 + $0x168] sm:$0xff] }
  0x9e   :  { %v128_v4 = vpop.trf.xlu0 }
  0x9f   :  { %4936 = vmatmul.mubr.msk.f32.vlgmr.msra.gmra.mxu0 %vm183_vm1, %v128_v4 }
  0xa0   :  { %1017 = vmatpush1.bf16.msra.mxu0 %v4534_v26 }
  0xa1   :  { %1018 = vmatprep.subr.bf16.mxu0 %v4527_v33 }
  0xa2   :  { %v129_v5 = vpop.trf.xlu0 }
  0xa3   :  { %4938 = vmatprep.mubr.msk.f32.mxu0 %vm183_vm1, %v129_v5 }
  0xa4   :  { %1019 = vmatpush1.bf16.msra.mxu0 %v4526_v36 }
  0xa5   :  { %1020 = vmatprep.subr.bf16.mxu0 %v4519_v37 }
  0xa6   :  { %v130_v6 = vpop.trf.xlu0 }
  0xa7   :  { %4939 = vmatmul.mubr.msk.f32.gmra.mxu0 %vm183_vm1, %v130_v6  ;;  %v4528_v6 = vcombine.low %v639_v59, %v643_v60  ;;  %v607_v59 = vld [vmem:[#allocation10 + $0x88] sm:$0xff] }
  0xa8   :  { %1021 = vmatpush1.bf16.msra.mxu0 %v4518_v40 }
  0xa9   :  { %1022 = vmatprep.subr.bf16.mxu0 %v4511_v41 }
  0xaa   :  { %v131_v7 = vpop.trf.xlu0 }
  0xab   :  { %4941 = vmatprep.mubr.msk.f32.mxu0 %vm183_vm1, %v131_v7 }
  0xac   :  { %1023 = vmatpush1.bf16.msra.mxu0 %v4510_v44 }
  0xad   :  { %1024 = vmatprep.subr.bf16.mxu0 %v4503_v45 }
  0xae   :  { %v132_v8 = vpop.trf.xlu0 }
  0xaf   :  { %4942 = vmatmul.mubr.msk.f32.gmra.mxu0 %vm183_vm1, %v132_v8  ;;  %v4521_v8 = vcombine.high %v631_v2, %v635_v3 }
  0xb0   :  { %1025 = vmatpush1.bf16.msra.mxu0 %v4502_v46 }
  0xb2   :  { %v133_v9 = vpop.trf.xlu0 }
  0xb3   :  { %4944 = vmatprep.mubr.msk.f32.mxu0 %vm183_vm1, %v133_v9  ;;  %v623_v9 = vld [vmem:[#allocation10 + $0x108] sm:$0xff] }
  0xb6   :  { %v134_v10 = vpop.trf.xlu0 }
  0xb7   :  { %4945 = vmatmul.mubr.msk.f32.gmra.mxu0 %vm183_vm1, %v134_v10  ;;  %v627_v10 = vld [vmem:[#allocation10 + $0x128] sm:$0xff] }
  0xb8   :  { %v4512_v21 = vcombine.low %v623_v9, %v627_v10 }
  0xba   :  { %v159_v11 = vpop.trf.xlu0 }
  0xbb   :  { %4947 = vmatprep.mubr.msk.f32.mxu0 %vm183_vm1, %v159_v11 }
  0xbe   :  { %v160_v12 = vpop.trf.xlu0 }
  0xbf   :  { %4948 = vmatmul.mubr.msk.f32.gmra.mxu0 %vm183_vm1, %v160_v12 }
  0xc2   :  { %v161_v13 = vpop.trf.xlu0 }
  0xc3   :  { %4950 = vmatprep.mubr.msk.f32.mxu0 %vm183_vm1, %v161_v13  ;;  %v4520_v13 = vcombine.low %v631_v2, %v635_v3  ;;  %v602_v2 = vld [vmem:[#allocation10 + $0x60] sm:$0xff]  ;;  %v599_v3 = vld [vmem:[#allocation10 + $0x48] sm:$0xff] }
  0xc6   :  { %v162_v14 = vpop.trf.xlu0 }
  0xc7   :  { %4951 = vmatmul.mubr.msk.f32.gmra.mxu0 %vm183_vm1, %v162_v14 }
  0xca   :  { %v163_v15 = vpop.trf.xlu0 }
  0xcb   :  { %4953 = vmatprep.mubr.msk.f32.mxu0 %vm183_vm1, %v163_v15  ;;  %v4513_v15 = vcombine.high %v623_v9, %v627_v10  ;;  %v594_v9 = vld [vmem:[#allocation10 + $0x20] sm:$0xff]  ;;  %v591_v10 = vld [vmem:[#allocation10 + $0x8] sm:$0xff] }
  0xce   :  { %v164_v16 = vpop.trf.xlu0 }
  0xcf   :  { %4954 = vmatmul.mubr.msk.f32.gmra.mxu0 %vm183_vm1, %v164_v16 }
  0xd2   :  { %v165_v17 = vpop.trf.xlu0 }
  0xd3   :  { %4956 = vmatprep.mubr.msk.f32.mxu0 %vm183_vm1, %v165_v17  ;;  %v615_v17 = vld [vmem:[#allocation10 + $0xc8] sm:$0xff] }
  0xd6   :  { %v166_v18 = vpop.trf.xlu0 }
  0xd7   :  { %4957 = vmatmul.mubr.msk.f32.gmra.mxu0 %vm183_vm1, %v166_v18  ;;  %v619_v18 = vld [vmem:[#allocation10 + $0xe8] sm:$0xff] }
  0xd8   :  { %v4505_v23 = vcombine.high %v615_v17, %v619_v18  ;;  %v4504_v26 = vcombine.low %v615_v17, %v619_v18  ;;  %v652_v17 = vld [vmem:[#allocation10 + $0x1f0] sm:$0xff]  ;;  %v649_v18 = vld [vmem:[#allocation10 + $0x1d8] sm:$0xff] }
 0x15f   :  { %v4937_v48 = vpop.f32.mrf.mxu0 }
 0x160   :  { %v308_v49 = vadd.f32 %v4937_v48, %v5744_v47 }
 0x161   :  { %v302_v50 = vpop.f32.mrf.mxu0 }
 0x162   :  { %v303_v51 = vadd.f32 %v5744_v47, %v302_v50  ;;  %v382_v52 = vmax.f32 %v308_v49, 0.0 }
 0x164   :  { %v381_v53 = vmax.f32 %v303_v51, 0.0 }
 0x166   :  { %v397_v54 = vpack.c.bf16 %v382_v52, %v381_v53 }
 0x167   :  { %v4940_v55 = vpop.f32.mrf.mxu0 }
 0x168   :  { %v318_v56 = vadd.f32 %v4940_v55, %v5744_v47  ;;  %4967 = vmatprep.mubr.msk.bf16.mxu1 %vm444_vm2, %v397_v54 }
 0x169   :  { %v312_v57 = vpop.f32.mrf.mxu0 }
 0x16a   :  { %v313_v58 = vadd.f32 %v5744_v47, %v312_v57  ;;  %v384_v61 = vmax.f32 %v318_v56, 0.0  ;;  %v606_v57 = vld [vmem:[#allocation10 + $0x80] sm:$0xff] }
 0x16c   :  { %v383_v62 = vmax.f32 %v313_v58, 0.0  ;;  %v610_v58 = vld [vmem:[#allocation10 + $0xa0] sm:$0xff] }
 0x16d   :  { %v4495_v60 = vcombine.high %v606_v57, %v610_v58 }
 0x16e   :  { %v398_v63 = vpack.c.bf16 %v384_v61, %v383_v62  ;;  %v611_v61 = vld [vmem:[#allocation10 + $0xa8] sm:$0xff]  ;;  %v4494_v62 = vcombine.low %v606_v57, %v610_v58  ;;  %v625_v57 = vld [vmem:[#allocation10 + $0x118] sm:$0xff] }
 0x16f   :  { %v4943_v1 = vpop.f32.mrf.mxu0  ;;  %1026 = vmatprep.subr.bf16.mxu0 %v4495_v60  ;;  %v629_v58 = vld [vmem:[#allocation10 + $0x138] sm:$0xff] }
 0x170   :  { %v328_v4 = vadd.f32 %v4943_v1, %v5744_v47  ;;  %4968 = vmatmul.mubr.msk.bf16.vlgmr.msra.gmra.mxu1 %vm444_vm2, %v398_v63  ;;  %v4496_v63 = vcombine.low %v607_v59, %v611_v61  ;;  %1027 = vmatpush1.bf16.msra.mxu0 %v4494_v62  ;;  %v598_v1 = vld [vmem:[#allocation10 + $0x40] sm:$0xff] }
 0x171   :  { %v322_v5 = vpop.f32.mrf.mxu0  ;;  %1130 = vmatpush1.bf16.msra.mxu1 %v4536_v31 }
 0x172   :  { %v323_v7 = vadd.f32 %v5744_v47, %v322_v5  ;;  %1131 = vmatprep.subr.bf16.mxu1 %v4529_v0  ;;  %v386_v11 = vmax.f32 %v328_v4, 0.0  ;;  %v4497_v0 = vcombine.high %v607_v59, %v611_v61  ;;  %v603_v4 = vld [vmem:[#allocation10 + $0x68] sm:$0xff]  ;;  %v4486_v5 = vcombine.low %v598_v1, %v602_v2 }
 0x174   :  { %v385_v12 = vmax.f32 %v323_v7, 0.0  ;;  %v4489_v7 = vcombine.high %v599_v3, %v603_v4 }
 0x175   :  { %1132 = vmatpush1.bf16.msra.mxu1 %v4528_v6  ;;  %v4488_v6 = vcombine.low %v599_v3, %v603_v4  ;;  %v617_v4 = vld [vmem:[#allocation10 + $0xd8] sm:$0xff] }
 0x176   :  { %v399_v14 = vpack.c.bf16 %v386_v11, %v385_v12  ;;  %1133 = vmatprep.subr.bf16.mxu1 %v4521_v8  ;;  %v590_v8 = vld [vmem:[#allocation10] sm:$0xff]  ;;  %v595_v12 = vld [vmem:[#allocation10 + $0x28] sm:$0xff] }
 0x177   :  { %v4946_v16 = vpop.f32.mrf.mxu0  ;;  %v4479_v11 = vcombine.high %v590_v8, %v594_v9 }
 0x178   :  { %v338_v19 = vadd.f32 %v4946_v16, %v5744_v47  ;;  %4971 = vmatprep.mubr.msk.bf16.mxu1 %vm444_vm2, %v399_v14  ;;  %v4480_v14 = vcombine.low %v591_v10, %v595_v12  ;;  %v648_v16 = vld [vmem:[#allocation10 + $0x1d0] sm:$0xff] }
 0x179   :  { %v332_v20 = vpop.f32.mrf.mxu0  ;;  %1134 = vmatpush1.bf16.msra.mxu1 %v4520_v13  ;;  %v4478_v13 = vcombine.low %v590_v8, %v594_v9  ;;  %v4516_v9 = vcombine.low %v625_v57, %v629_v58 }
 0x17a   :  { %v333_v22 = vadd.f32 %v5744_v47, %v332_v20  ;;  %1135 = vmatprep.subr.bf16.mxu1 %v4513_v15  ;;  %v388_v24 = vmax.f32 %v338_v19, 0.0  ;;  %v4481_v15 = vcombine.high %v591_v10, %v595_v12  ;;  %v5634_v19 = vmov 0   ;;  %v608_v12 = vld [vmem:[#allocation10 + $0x90] sm:$0xff] }
 0x17b   :  { %1048 = vmatprep.mubr.bf16.mxu0 %v5634_v19  ;;  %v4538_v20 = vcombine.low %v648_v16, %v652_v17 }
 0x17c   :  { %v387_v25 = vmax.f32 %v333_v22, 0.0  ;;  %v653_v22 = vld [vmem:[#allocation10 + $0x1f8] sm:$0xff] }
 0x17d   :  { %1136 = vmatpush1.bf16.msra.mxu1 %v4512_v21  ;;  %v4539_v21 = vcombine.high %v648_v16, %v652_v17  ;;  %v609_v16 = vld [vmem:[#allocation10 + $0x98] sm:$0xff] }
 0x17e   :  { %v400_v27 = vpack.c.bf16 %v388_v24, %v387_v25  ;;  %1137 = vmatprep.subr.bf16.mxu1 %v4505_v23  ;;  %v4540_v23 = vcombine.low %v649_v18, %v653_v22  ;;  %v4541_v24 = vcombine.high %v649_v18, %v653_v22  ;;  %v613_v17 = vld [vmem:[#allocation10 + $0xb8] sm:$0xff] }
 0x17f   :  { %v4949_v28 = vpop.f32.mrf.mxu0 }
 0x180   :  { %v348_v29 = vadd.f32 %v4949_v28, %v5744_v47  ;;  %4972 = vmatmul.mubr.msk.bf16.gmra.mxu1 %vm444_vm2, %v400_v27  ;;  %v5775_v27 = vld [vmem:[%s6223_s4] ss:$0 sm:$0xff] }
 0x181   :  { %v342_v30 = vpop.f32.mrf.mxu0  ;;  %1138 = vmatpush1.bf16.msra.mxu1 %v4504_v26 }
 0x182   :  { %v343_v31 = vadd.f32 %v5744_v47, %v342_v30  ;;  %v390_v32 = vmax.f32 %v348_v29, 0.0  ;;  %1139 = vmatprep.subr.bf16.mxu1 %v4497_v0 }
 0x184   :  { %v389_v33 = vmax.f32 %v343_v31, 0.0 }
 0x185   :  { %1140 = vmatpush1.bf16.msra.mxu1 %v4496_v63 }
 0x186   :  { %v401_v34 = vpack.c.bf16 %v390_v32, %v389_v33  ;;  %1141 = vmatprep.subr.bf16.mxu1 %v4489_v7  ;;  %v640_v32 = vld [vmem:[#allocation10 + $0x190] sm:$0xff] }
 0x187   :  { %v4952_v35 = vpop.f32.mrf.mxu0 }
 0x188   :  { %v358_v36 = vadd.f32 %v4952_v35, %v5744_v47  ;;  %4975 = vmatprep.mubr.msk.bf16.mxu1 %vm444_vm2, %v401_v34  ;;  %v644_v35 = vld [vmem:[#allocation10 + $0x1b0] sm:$0xff] }
 0x189   :  { %v352_v37 = vpop.f32.mrf.mxu0  ;;  %1142 = vmatpush1.bf16.msra.mxu1 %v4488_v6 }
 0x18a   :  { %v353_v38 = vadd.f32 %v5744_v47, %v352_v37  ;;  %v392_v39 = vmax.f32 %v358_v36, 0.0  ;;  %1143 = vmatprep.subr.bf16.mxu1 %v4481_v15  ;;  %v641_v36 = vld [vmem:[#allocation10 + $0x198] sm:$0xff]  ;;  %v612_v15 = vld [vmem:[#allocation10 + $0xb0] sm:$0xff] }
 0x18b   :  { %v645_v37 = vld [vmem:[#allocation10 + $0x1b8] sm:$0xff] }
 0x18c   :  { %v391_v40 = vmax.f32 %v353_v38, 0.0 }
 0x18d   :  { %1144 = vmatpush1.bf16.msra.mxu1 %v4480_v14 }
 0x18e   :  { %v402_v41 = vpack.c.bf16 %v392_v39, %v391_v40  ;;  %1355 = vmatprep.subr.bf16.mxu1 %v4541_v24  ;;  %v632_v40 = vld [vmem:[#allocation10 + $0x150] sm:$0xff]  ;;  %v4501_v24 = vcombine.high %v609_v16, %v613_v17 }
 0x18f   :  { %v4955_v42 = vpop.f32.mrf.mxu0 }
 0x190   :  { %v368_v43 = vadd.f32 %v4955_v42, %v5744_v47  ;;  %4976 = vmatmul.mubr.msk.bf16.gmra.mxu1 %vm444_vm2, %v402_v41  ;;  %v4531_v41 = vcombine.high %v640_v32, %v644_v35  ;;  %v4533_v42 = vcombine.high %v641_v36, %v645_v37 }
 0x191   :  { %v362_v44 = vpop.f32.mrf.mxu0 }
 0x192   :  { %v363_v45 = vadd.f32 %v5744_v47, %v362_v44  ;;  %v394_v46 = vmax.f32 %v368_v43, 0.0  ;;  %v636_v43 = vld [vmem:[#allocation10 + $0x170] sm:$0xff]  ;;  %v633_v44 = vld [vmem:[#allocation10 + $0x158] sm:$0xff] }
 0x193   :  { %v4522_v61 = vcombine.low %v632_v40, %v636_v43 }
 0x194   :  { %v393_v48 = vmax.f32 %v363_v45, 0.0  ;;  %v637_v45 = vld [vmem:[#allocation10 + $0x178] sm:$0xff] }
 0x195   :  { %v4524_v62 = vcombine.low %v633_v44, %v637_v45 }
 0x196   :  { %v403_v49 = vpack.c.bf16 %v394_v46, %v393_v48  ;;  %v4530_v48 = vcombine.low %v640_v32, %v644_v35  ;;  %v4498_v32 = vcombine.low %v608_v12, %v612_v15 }
 0x197   :  { %v4958_v50 = vpop.f32.mrf.mxu0 }
 0x198   :  { %v378_v51 = vadd.f32 %v4958_v50, %v5744_v47  ;;  %4979 = vmatprep.mubr.msk.bf16.mxu1 %vm444_vm2, %v403_v49  ;;  %v4532_v49 = vcombine.low %v641_v36, %v645_v37  ;;  %v592_v37 = vld [vmem:[#allocation10 + $0x10] sm:$0xff] }
 0x199   :  { %v372_v52 = vpop.f32.mrf.mxu0 }
 0x19a   :  { %v373_v53 = vadd.f32 %v5744_v47, %v372_v52  ;;  %v396_v54 = vmax.f32 %v378_v51, 0.0  ;;  %v4487_v47 = vcombine.high %v598_v1, %v602_v2  ;;  %v4523_v51 = vcombine.high %v632_v40, %v636_v43  ;;  %v616_v2 = vld [vmem:[#allocation10 + $0xd0] sm:$0xff] }
 0x19b   :  { %v4525_v52 = vcombine.high %v633_v44, %v637_v45  ;;  %v4517_v1 = vcombine.high %v625_v57, %v629_v58  ;;  %v596_v40 = vld [vmem:[#allocation10 + $0x30] sm:$0xff] }
 0x19c   :  { %v395_v55 = vmax.f32 %v373_v53, 0.0  ;;  %1028 = vmatprep.subr.bf16.mxu0 %v4487_v47  ;;  %v620_v47 = vld [vmem:[#allocation10 + $0xf0] sm:$0xff] }
 0x19d   :  { %1029 = vmatpush1.bf16.msra.mxu0 %v4486_v5  ;;  %v621_v5 = vld [vmem:[#allocation10 + $0xf8] sm:$0xff]  ;;  %v4507_v10 = vcombine.high %v616_v2, %v620_v47  ;;  %v4506_v18 = vcombine.low %v616_v2, %v620_v47 }
 0x19e   :  { %v404_v56 = vpack.c.bf16 %v396_v54, %v395_v55  ;;  %1030 = vmatprep.subr.bf16.mxu0 %v4479_v11  ;;  %v624_v54 = vld [vmem:[#allocation10 + $0x110] sm:$0xff]  ;;  %v4509_v11 = vcombine.high %v617_v4, %v621_v5  ;;  %v4508_v22 = vcombine.low %v617_v4, %v621_v5 }
 0x1a0   :  { %4980 = vmatmul.mubr.msk.bf16.gmra.mxu1 %vm444_vm2, %v404_v56  ;;  %v628_v56 = vld [vmem:[#allocation10 + $0x130] sm:$0xff] }
 0x1a1   :  { %1031 = vmatpush1.bf16.msra.mxu0 %v4478_v13  ;;  %1161 = vmatprep.mubr.bf16.mxu1 %v5634_v19  ;;  %v4515_v0 = vcombine.high %v624_v54, %v628_v56  ;;  %v4514_v8 = vcombine.low %v624_v54, %v628_v56  ;;  %v4482_v54 = vcombine.low %v592_v37, %v596_v40 }
 0x1a2   :  { %1242 = vmatprep.subr.bf16.mxu0 %v4539_v21 }
 0x230   :  { %v4969_v25 = vpop.f32.mrf.mxu1 }
 0x231   :  { %v512_v46 = vadd.f32 %v4969_v25, %v5775_v27  ;;  %v600_v25 = vld [vmem:[#allocation10 + $0x50] sm:$0xff] }
 0x232   :  { %v503_v26 = vpop.f32.mrf.mxu1 }
 0x233   :  { %v504_v29 = vadd.f32 %v5775_v27, %v503_v26  ;;  %v568_v55 = vmax.f32 %v512_v46, 0.0 }
 0x234   :  { %v4970_v28 = vpop.f32.mrf.mxu1 }
 0x235   :  { %v566_v33 = vmax.f32 %v504_v29, 0.0  ;;  %v515_v38 = vadd.f32 %v4970_v28, %v5775_v27  ;;  %v604_v28 = vld [vmem:[#allocation10 + $0x70] sm:$0xff]  ;;  %v601_v29 = vld [vmem:[#allocation10 + $0x58] sm:$0xff] }
 0x236   :  { %v506_v30 = vpop.f32.mrf.mxu1  ;;  %v4491_v35 = vcombine.high %v600_v25, %v604_v28  ;;  %v4490_v45 = vcombine.low %v600_v25, %v604_v28 }
 0x237   :  { %v507_v31 = vadd.f32 %v5775_v27, %v506_v30  ;;  %v569_v50 = vmax.f32 %v515_v38, 0.0  ;;  %v605_v30 = vld [vmem:[#allocation10 + $0x78] sm:$0xff] }
 0x238   :  { %v4493_v36 = vcombine.high %v601_v29, %v605_v30  ;;  %v4492_v46 = vcombine.low %v601_v29, %v605_v30 }
 0x239   :  { %v567_v34 = vmax.f32 %v507_v31, 0.0  ;;  %v5787_v60 = vpack.c.bf16 %v569_v50, %v568_v55 }
 0x23b   :  { %v5780_v39 = vpack.c.bf16 %v567_v34, %v566_v33  ;;  %v4500_v33 = vcombine.low %v609_v16, %v613_v17 }
 0x23d   :  { %1049 = vmatmul.mubr.bf16.vlgmr.msra.gmra.mxu0 %v5780_v39  ;;  %1162 = vmatmul.mubr.bf16.vlgmr.msra.gmra.mxu1 %v5780_v39 }
 0x23e   :  { %1243 = vmatpush1.bf16.msra.mxu0 %v4538_v20  ;;  %1356 = vmatpush1.bf16.msra.mxu1 %v4540_v23  ;;  %v4499_v23 = vcombine.high %v608_v12, %v612_v15  ;;  %v5856_v15 = vld [vmem:[%s6225_s6] sm:$0xff]  ;;  %s5635_s6 = smov [#allocation3]  }
 0x23f   :  { %1058 = vmatprep.mubr.bf16.mxu0 %v5634_v19  ;;  %1171 = vmatprep.mubr.bf16.mxu1 %v5634_v19  ;;  %s79_s28 = sshll.u32 %s5635_s6, 4  ;;  %s80_s28 = int_to_ptr.vmem [resolvable:$true] %s79_s28 }
 0x240   :  { %v4973_v53 = vpop.f32.mrf.mxu1  ;;  %1244 = vmatprep.subr.bf16.mxu0 %v4531_v41  ;;  %1357 = vmatprep.subr.bf16.mxu1 %v4533_v42  ;;  %v593_v41 = vld [vmem:[#allocation10 + $0x18] sm:$0xff]  ;;  %s5544_s14 = scalar_lea.vmem %s80_s28, 32768  ;;  %p5549_p11 = scmp.lt.s32.totalorder %s80_s28, %s80_s28 }
 0x241   :  { %v528_v26 = vadd.f32 %v4973_v53, %v5775_v27  ;;  %v597_v42 = vld [vmem:[#allocation10 + $0x38] sm:$0xff]  ;;  %p5545_p10 = scmp.ne.s32.totalorder %s80_s28, %s5544_s14  ;;  %p5550_p12 = scmp.lt.s32.totalorder %s5544_s14, %s5544_s14 }
 0x242   :  { %v519_v59 = vpop.f32.mrf.mxu1  ;;  %1245 = vmatpush1.bf16.msra.mxu0 %v4530_v48  ;;  %1358 = vmatpush1.bf16.msra.mxu1 %v4532_v49  ;;  %v4483_v49 = vcombine.high %v592_v37, %v596_v40  ;;  %v4485_v50 = vcombine.high %v593_v41, %v597_v42  ;;  %v4484_v55 = vcombine.low %v593_v41, %v597_v42 }
 0x243   :  { %1246 = vmatprep.subr.bf16.mxu0 %v4523_v51  ;;  %1359 = vmatprep.subr.bf16.mxu1 %v4525_v52  ;;  %v520_v3 = vadd.f32 %v5775_v27, %v519_v59  ;;  %v572_v38 = vmax.f32 %v528_v26, 0.0  ;;  %p5551_p13 = por %p5550_p12, %p5549_p11 }
 0x244   :  { %v4974_v63 = vpop.f32.mrf.mxu1 }
 0x245   :  { %1059 = vmatmul.mubr.bf16.gmra.mxu0 %v5787_v60  ;;  %1172 = vmatmul.mubr.bf16.gmra.mxu1 %v5787_v60  ;;  %v570_v13 = vmax.f32 %v520_v3, 0.0  ;;  %v531_v20 = vadd.f32 %v4974_v63, %v5775_v27  ;;  %p5552_p0 = pnand %p5551_p13, %p5545_p10 }
 0x246   :  { %v522_v6 = vpop.f32.mrf.mxu1  ;;  %1068 = vmatprep.mubr.bf16.mxu0 %v5634_v19  ;;  %1181 = vmatprep.mubr.bf16.mxu1 %v5634_v19 }
 0x247   :  { %v523_v7 = vadd.f32 %v5775_v27, %v522_v6  ;;  %1247 = vmatpush1.bf16.msra.mxu0 %v4522_v61  ;;  %1360 = vmatpush1.bf16.msra.mxu1 %v4524_v62  ;;  %v573_v31 = vmax.f32 %v531_v20, 0.0 }
 0x248   :  { %1248 = vmatprep.subr.bf16.mxu0 %v4515_v0  ;;  %1361 = vmatprep.subr.bf16.mxu1 %v4517_v1 }
 0x249   :  { %v571_v14 = vmax.f32 %v523_v7, 0.0  ;;  %v5803_v44 = vpack.c.bf16 %v573_v31, %v572_v38 }
 0x24b   :  { %v5796_v21 = vpack.c.bf16 %v571_v14, %v570_v13  ;;  %1249 = vmatpush1.bf16.msra.mxu0 %v4514_v8  ;;  %1362 = vmatpush1.bf16.msra.mxu1 %v4516_v9 }
 0x24c   :  { %1250 = vmatprep.subr.bf16.mxu0 %v4507_v10  ;;  %1363 = vmatprep.subr.bf16.mxu1 %v4509_v11 }
 0x24d   :  { %1069 = vmatmul.mubr.bf16.gmra.mxu0 %v5796_v21  ;;  %1182 = vmatmul.mubr.bf16.gmra.mxu1 %v5796_v21 }
 0x24e   :  { %1078 = vmatprep.mubr.bf16.mxu0 %v5634_v19  ;;  %1191 = vmatprep.mubr.bf16.mxu1 %v5634_v19 }
 0x24f   :  { %1251 = vmatpush1.bf16.msra.mxu0 %v4506_v18  ;;  %1364 = vmatpush1.bf16.msra.mxu1 %v4508_v22 }
 0x250   :  { %v4977_v34 = vpop.f32.mrf.mxu1  ;;  %1252 = vmatprep.subr.bf16.mxu0 %v4499_v23  ;;  %1365 = vmatprep.subr.bf16.mxu1 %v4501_v24 }
 0x251   :  { %v544_v61 = vadd.f32 %v4977_v34, %v5775_v27 }
 0x252   :  { %v535_v43 = vpop.f32.mrf.mxu1 }
 0x253   :  { %1253 = vmatpush1.bf16.msra.mxu0 %v4498_v32  ;;  %1366 = vmatpush1.bf16.msra.mxu1 %v4500_v33  ;;  %v536_v51 = vadd.f32 %v5775_v27, %v535_v43  ;;  %v576_v0 = vmax.f32 %v544_v61, 0.0 }
 0x254   :  { %v4978_v48 = vpop.f32.mrf.mxu1  ;;  %1254 = vmatprep.subr.bf16.mxu0 %v4491_v35  ;;  %1367 = vmatprep.subr.bf16.mxu1 %v4493_v36 }
 0x255   :  { %1079 = vmatmul.mubr.bf16.gmra.mxu0 %v5803_v44  ;;  %1192 = vmatmul.mubr.bf16.gmra.mxu1 %v5803_v44  ;;  %v574_v56 = vmax.f32 %v536_v51, 0.0  ;;  %v547_v58 = vadd.f32 %v4978_v48, %v5775_v27 }
 0x256   :  { %v538_v52 = vpop.f32.mrf.mxu1  ;;  %1088 = vmatprep.mubr.bf16.mxu0 %v5634_v19  ;;  %1201 = vmatprep.mubr.bf16.mxu1 %v5634_v19 }
 0x257   :  { %v539_v53 = vadd.f32 %v5775_v27, %v538_v52  ;;  %1255 = vmatpush1.bf16.msra.mxu0 %v4490_v45  ;;  %1368 = vmatpush1.bf16.msra.mxu1 %v4492_v46  ;;  %v577_v62 = vmax.f32 %v547_v58, 0.0 }
 0x258   :  { %1256 = vmatprep.subr.bf16.mxu0 %v4483_v49  ;;  %1369 = vmatprep.subr.bf16.mxu1 %v4485_v50 }
 0x259   :  { %v575_v57 = vmax.f32 %v539_v53, 0.0  ;;  %v587_v2 = vpack.c.bf16 %v577_v62, %v576_v0 }
 0x25b   :  { %v586_v59 = vpack.c.bf16 %v575_v57, %v574_v56  ;;  %1257 = vmatpush1.bf16.msra.mxu0 %v4482_v54  ;;  %1370 = vmatpush1.bf16.msra.mxu1 %v4484_v55 }
 0x25d   :  { %1089 = vmatmul.mubr.bf16.gmra.mxu0 %v586_v59  ;;  %1202 = vmatmul.mubr.bf16.gmra.mxu1 %v586_v59 }
 0x25e   :  { %1098 = vmatprep.mubr.bf16.mxu0 %v5634_v19  ;;  %1211 = vmatprep.mubr.bf16.mxu1 %v5634_v19 }
 0x260   :  { %v4981_v63 = vpop.f32.mrf.mxu1 }
 0x261   :  { %v560_v10 = vadd.f32 %v4981_v63, %v5775_v27 }
 0x262   :  { %v551_v1 = vpop.f32.mrf.mxu1 }
 0x263   :  { %v552_v47 = vadd.f32 %v5775_v27, %v551_v1  ;;  %v580_v12 = vmax.f32 %v560_v10, 0.0 }
 0x264   :  { %v4982_v3 = vpop.f32.mrf.mxu1 }
 0x265   :  { %1099 = vmatmul.mubr.bf16.gmra.mxu0 %v587_v2  ;;  %1212 = vmatmul.mubr.bf16.gmra.mxu1 %v587_v2  ;;  %v578_v6 = vmax.f32 %v552_v47, 0.0  ;;  %v563_v8 = vadd.f32 %v4982_v3, %v5775_v27 }
 0x266   :  { %v554_v4 = vpop.f32.mrf.mxu1  ;;  %1108 = vmatprep.mubr.bf16.mxu0 %v5634_v19  ;;  %1221 = vmatprep.mubr.bf16.mxu1 %v5634_v19 }
 0x267   :  { %v555_v5 = vadd.f32 %v5775_v27, %v554_v4  ;;  %v581_v11 = vmax.f32 %v563_v8, 0.0  ;;  %v656_v27 = vlaneseq }
 0x269   :  { %v579_v7 = vmax.f32 %v555_v5, 0.0  ;;  %v589_v13 = vpack.c.bf16 %v581_v11, %v580_v12 }
 0x26b   :  { %v588_v9 = vpack.c.bf16 %v579_v7, %v578_v6 }
 0x26d   :  { %1109 = vmatmul.mubr.bf16.gmra.mxu0 %v588_v9  ;;  %1222 = vmatmul.mubr.bf16.gmra.mxu1 %v588_v9 }
 0x26e   :  { %1118 = vmatprep.mubr.bf16.mxu0 %v5634_v19  ;;  %1231 = vmatprep.mubr.bf16.mxu1 %v5634_v19 }
 0x275   :  { %1119 = vmatmul.mubr.bf16.gmra.mxu0 %v589_v13  ;;  %1232 = vmatmul.mubr.bf16.gmra.mxu1 %v589_v13 }
 0x276   :  { %1274 = vmatprep.mubr.bf16.mxu0 %v5634_v19  ;;  %1387 = vmatprep.mubr.bf16.mxu1 %v5634_v19 }
 0x27d   :  { %1275 = vmatmul.mubr.bf16.vlgmr.msra.gmra.mxu0 %v5780_v39  ;;  %1388 = vmatmul.mubr.bf16.vlgmr.msra.gmra.mxu1 %v5780_v39  ;;  %v5847_v39 = vshrl.u32 %v656_v27, 7 }
 0x27e   :  { %1284 = vmatprep.mubr.bf16.mxu0 %v5634_v19  ;;  %1397 = vmatprep.mubr.bf16.mxu1 %v5634_v19 }
 0x27f   :  { %v666_v14 = vsub.s32 2, %v5847_v39  ;;  %v5859_v16 = vsub.s32 1, %v5847_v39 }
 0x281   :  { %v5873_v22 = vrot.slane %v5856_v15, %v5859_v16 }
 0x285   :  { %1285 = vmatmul.mubr.bf16.gmra.mxu0 %v5787_v60  ;;  %1398 = vmatmul.mubr.bf16.gmra.mxu1 %v5787_v60  ;;  %v5850_v60 = vsub.s32 0, %v5847_v39 }
 0x286   :  { %1294 = vmatprep.mubr.bf16.mxu0 %v5634_v19  ;;  %1407 = vmatprep.mubr.bf16.mxu1 %v5634_v19 }
 0x287   :  { %v5864_v20 = vrot.slane %v5856_v15, %v5850_v60 }
 0x28d   :  { %1295 = vmatmul.mubr.bf16.gmra.mxu0 %v5796_v21  ;;  %1408 = vmatmul.mubr.bf16.gmra.mxu1 %v5796_v21  ;;  %v5869_v21 = vrot.slane %v5856_v15, %v666_v14 }
 0x28e   :  { %1304 = vmatprep.mubr.bf16.mxu0 %v5634_v19  ;;  %1417 = vmatprep.mubr.bf16.mxu1 %v5634_v19 }
 0x295   :  { %1305 = vmatmul.mubr.bf16.gmra.mxu0 %v5803_v44  ;;  %1418 = vmatmul.mubr.bf16.gmra.mxu1 %v5803_v44 }
 0x296   :  { %1314 = vmatprep.mubr.bf16.mxu0 %v5634_v19  ;;  %1427 = vmatprep.mubr.bf16.mxu1 %v5634_v19 }
 0x29d   :  { %1315 = vmatmul.mubr.bf16.gmra.mxu0 %v586_v59  ;;  %1428 = vmatmul.mubr.bf16.gmra.mxu1 %v586_v59 }
 0x29e   :  { %1324 = vmatprep.mubr.bf16.mxu0 %v5634_v19  ;;  %1437 = vmatprep.mubr.bf16.mxu1 %v5634_v19 }
 0x2a5   :  { %1325 = vmatmul.mubr.bf16.gmra.mxu0 %v587_v2  ;;  %1438 = vmatmul.mubr.bf16.gmra.mxu1 %v587_v2 }
 0x2a6   :  { %1334 = vmatprep.mubr.bf16.mxu0 %v5634_v19  ;;  %1447 = vmatprep.mubr.bf16.mxu1 %v5634_v19 }
 0x2ad   :  { %1335 = vmatmul.mubr.bf16.gmra.mxu0 %v588_v9  ;;  %1448 = vmatmul.mubr.bf16.gmra.mxu1 %v588_v9 }
 0x2ae   :  { %1344 = vmatprep.mubr.bf16.mxu0 %v5634_v19  ;;  %1457 = vmatprep.mubr.bf16.mxu1 %v5634_v19  ;;  %v670_v19 = vsub.s32 3, %v5847_v39 }
 0x2b0   :  { %v5878_v24 = vrot.slane %v5856_v15, %v670_v19 }
 0x2b5   :  { %1345 = vmatmul.mubr.bf16.gmra.mxu0 %v589_v13  ;;  %1458 = vmatmul.mubr.bf16.gmra.mxu1 %v589_v13 }
 0x2fd   :  { %v1050_v17 = vpop.f32.mrf.mxu0  ;;  %v1163_v18 = vpop.f32.mrf.mxu1 }
 0x2fe   :  { %v1051_v29 = vadd.f32 %v1050_v17, %v5864_v20  ;;  %v1164_v30 = vadd.f32 %v1163_v18, %v5869_v21 }
 0x2ff   :  { %v1052_v23 = vpop.f32.mrf.mxu0  ;;  %v1165_v25 = vpop.f32.mrf.mxu1 }
 0x300   :  { %v1053_v33 = vadd.f32 %v1052_v23, %v5873_v22  ;;  %v1166_v34 = vadd.f32 %v1165_v25, %v5878_v24 }
 0x301   :  { %v1054_v26 = vpop.f32.mrf.mxu0  ;;  %v1167_v28 = vpop.f32.mrf.mxu1 }
 0x302   :  { %v1055_v31 = vadd.f32 %v1054_v26, %v5864_v20  ;;  %v1168_v32 = vadd.f32 %v1167_v28, %v5869_v21 }
 0x303   :  { %v1056_v35 = vpop.f32.mrf.mxu0  ;;  %v1169_v36 = vpop.f32.mrf.mxu1 }
 0x304   :  { %v1468_v37 = vmax.f32 %v1051_v29, %v1055_v31  ;;  %v1494_v38 = vmax.f32 %v1164_v30, %v1168_v32  ;;  %v1057_v40 = vadd.f32 %v1056_v35, %v5873_v22  ;;  %v1170_v41 = vadd.f32 %v1169_v36, %v5878_v24 }
 0x305   :  { %v1060_v42 = vpop.f32.mrf.mxu0  ;;  %v1173_v43 = vpop.f32.mrf.mxu1 }
 0x306   :  { %v1481_v44 = vmax.f32 %v1053_v33, %v1057_v40  ;;  %v1507_v45 = vmax.f32 %v1166_v34, %v1170_v41  ;;  %v1061_v46 = vadd.f32 %v1060_v42, %v5864_v20  ;;  %v1174_v48 = vadd.f32 %v1173_v43, %v5869_v21 }
 0x307   :  { %v1062_v49 = vpop.f32.mrf.mxu0  ;;  %v1175_v50 = vpop.f32.mrf.mxu1 }
 0x308   :  { %v1469_v51 = vmax.f32 %v1468_v37, %v1061_v46  ;;  %v1495_v52 = vmax.f32 %v1494_v38, %v1174_v48  ;;  %v1063_v53 = vadd.f32 %v1062_v49, %v5873_v22  ;;  %v1176_v54 = vadd.f32 %v1175_v50, %v5878_v24 }
 0x309   :  { %v1064_v55 = vpop.f32.mrf.mxu0  ;;  %v1177_v56 = vpop.f32.mrf.mxu1 }
 0x30a   :  { %v1482_v57 = vmax.f32 %v1481_v44, %v1063_v53  ;;  %v1508_v58 = vmax.f32 %v1507_v45, %v1176_v54  ;;  %v1065_v59 = vadd.f32 %v1064_v55, %v5864_v20  ;;  %v1178_v61 = vadd.f32 %v1177_v56, %v5869_v21 }
 0x30b   :  { %v1066_v62 = vpop.f32.mrf.mxu0  ;;  %v1179_v63 = vpop.f32.mrf.mxu1 }
 0x30c   :  { %v1470_v0 = vmax.f32 %v1469_v51, %v1065_v59  ;;  %v1496_v1 = vmax.f32 %v1495_v52, %v1178_v61  ;;  %v1067_v2 = vadd.f32 %v1066_v62, %v5873_v22  ;;  %v1180_v3 = vadd.f32 %v1179_v63, %v5878_v24 }
 0x30d   :  { %v1070_v47 = vpop.f32.mrf.mxu0  ;;  %v1183_v4 = vpop.f32.mrf.mxu1 }
 0x30e   :  { %v1483_v5 = vmax.f32 %v1482_v57, %v1067_v2  ;;  %v1509_v6 = vmax.f32 %v1508_v58, %v1180_v3  ;;  %v1071_v7 = vadd.f32 %v1070_v47, %v5864_v20  ;;  %v1184_v8 = vadd.f32 %v1183_v4, %v5869_v21 }
 0x30f   :  { %v1072_v9 = vpop.f32.mrf.mxu0  ;;  %v1185_v10 = vpop.f32.mrf.mxu1 }
 0x310   :  { %v1471_v11 = vmax.f32 %v1470_v0, %v1071_v7  ;;  %v1497_v12 = vmax.f32 %v1496_v1, %v1184_v8  ;;  %v1073_v13 = vadd.f32 %v1072_v9, %v5873_v22  ;;  %v1186_v27 = vadd.f32 %v1185_v10, %v5878_v24 }
 0x311   :  { %v1074_v17 = vpop.f32.mrf.mxu0  ;;  %v1187_v18 = vpop.f32.mrf.mxu1 }
 0x312   :  { %v1484_v23 = vmax.f32 %v1483_v5, %v1073_v13  ;;  %v1510_v25 = vmax.f32 %v1509_v6, %v1186_v27  ;;  %v1075_v26 = vadd.f32 %v1074_v17, %v5864_v20  ;;  %v1188_v28 = vadd.f32 %v1187_v18, %v5869_v21 }
 0x313   :  { %v1076_v29 = vpop.f32.mrf.mxu0  ;;  %v1189_v30 = vpop.f32.mrf.mxu1 }
 0x314   :  { %v1472_v31 = vmax.f32 %v1471_v11, %v1075_v26  ;;  %v1498_v32 = vmax.f32 %v1497_v12, %v1188_v28  ;;  %v1077_v33 = vadd.f32 %v1076_v29, %v5873_v22  ;;  %v1190_v34 = vadd.f32 %v1189_v30, %v5878_v24 }
 0x315   :  { %v1080_v35 = vpop.f32.mrf.mxu0  ;;  %v1193_v36 = vpop.f32.mrf.mxu1 }
 0x316   :  { %v1485_v37 = vmax.f32 %v1484_v23, %v1077_v33  ;;  %v1511_v38 = vmax.f32 %v1510_v25, %v1190_v34  ;;  %v1081_v40 = vadd.f32 %v1080_v35, %v5864_v20  ;;  %v1194_v41 = vadd.f32 %v1193_v36, %v5869_v21 }
 0x317   :  { %5555 = shalt.err (!%p5552_p0)  }
 0x318   :  { %82 = dma.hbm_to_vmem [thread:$0]  %s6229_s10, 32768, %s80_s28, [#allocation6]  ;;  %v1082_v42 = vpop.f32.mrf.mxu0  ;;  %v1195_v43 = vpop.f32.mrf.mxu1  ;;  %v1473_v44 = vmax.f32 %v1472_v31, %v1081_v40  ;;  %v1499_v45 = vmax.f32 %v1498_v32, %v1194_v41 }
 0x319   :  { %v1083_v46 = vadd.f32 %v1082_v42, %v5873_v22  ;;  %v1196_v48 = vadd.f32 %v1195_v43, %v5878_v24  ;;  %s5564_s17 = scalar_lea.vmem %s92_s30, 8192  ;;  %p5569_p2 = scmp.lt.s32.totalorder %s92_s30, %s92_s30 }
 0x31a   :  { %p5565_p1 = scmp.ne.s32.totalorder %s92_s30, %s5564_s17  ;;  %p5570_p3 = scmp.lt.s32.totalorder %s5564_s17, %s5564_s17 }
 0x31c   :  { %p5571_p4 = por %p5570_p3, %p5569_p2 }
 0x31e   :  { %p5572_p5 = pnand %p5571_p4, %p5565_p1 }
 0x320   :  { %5575 = shalt.err (!%p5572_p5)  }
 0x321   :  { %94 = dma.hbm_to_vmem [thread:$0]  %s6230_s11, 8192, %s92_s30, [#allocation6 + $0x1]  ;;  %v1084_v49 = vpop.f32.mrf.mxu0  ;;  %v1197_v50 = vpop.f32.mrf.mxu1  ;;  %v5637_v51 = vmov 1983009808   ;;  %v1486_v53 = vmax.f32 %v1485_v37, %v1083_v46  ;;  %v1512_v54 = vmax.f32 %v1511_v38, %v1196_v48 }
 0x322   :  { %v1697_v52 = vunpack.c.l.s4 %v5637_v51  ;;  %s5638_s10 = smov [#allocation5]   ;;  %v1085_v55 = vadd.f32 %v1084_v49, %v5864_v20  ;;  %v1198_v56 = vadd.f32 %v1197_v50, %v5869_v21 }
 0x323   :  { %s103_s20 = sshll.u32 %s5638_s10, 4  ;;  %v1086_v57 = vpop.f32.mrf.mxu0  ;;  %v1199_v58 = vpop.f32.mrf.mxu1  ;;  %s104_s20 = int_to_ptr.vmem [resolvable:$true] %s103_s20 }
 0x324   :  { %s5584_s21 = scalar_lea.vmem %s104_s20, 2048  ;;  %p5589_p7 = scmp.lt.s32.totalorder %s104_s20, %s104_s20 }
 0x325   :  { %p5585_p6 = scmp.ne.s32.totalorder %s104_s20, %s5584_s21  ;;  %p5590_p8 = scmp.lt.s32.totalorder %s5584_s21, %s5584_s21 }
 0x327   :  { %p5591_p9 = por %p5590_p8, %p5589_p7 }
 0x329   :  { %p5592_p10 = pnand %p5591_p9, %p5585_p6 }
 0x32b   :  { %5595 = shalt.err (!%p5592_p10)  }
 0x32c   :  { %106 = dma.hbm_to_vmem [thread:$0]  %s6231_s12, 2048, %s104_s20, [#allocation6 + $0x2]  ;;  %v1474_v59 = vmax.f32 %v1473_v44, %v1085_v55  ;;  %v1500_v61 = vmax.f32 %v1499_v45, %v1198_v56  ;;  %v1087_v62 = vadd.f32 %v1086_v57, %v5873_v22  ;;  %v1200_v63 = vadd.f32 %v1199_v58, %v5878_v24  ;;  %v1090_v1 = vpop.f32.mrf.mxu0  ;;  %v1203_v2 = vpop.f32.mrf.mxu1 }
 0x32d   :  { %v1698_v0 = vunpack.c.0.s8 %v1697_v52  ;;  %v1091_v13 = vadd.f32 %v1090_v1, %v5864_v20  ;;  %v1204_v27 = vadd.f32 %v1203_v2, %v5869_v21  ;;  %vm1767_vm3 = vcmask 1041409  }
 0x32e   :  { %v1475_v3 = vrot.slane %v1474_v59, 4  ;;  %v1501_v47 = vrot.slane %v1500_v61, 4  ;;  %v1487_v4 = vmax.f32 %v1486_v53, %v1087_v62  ;;  %v1513_v5 = vmax.f32 %v1512_v54, %v1200_v63  ;;  %v1092_v6 = vpop.f32.mrf.mxu0  ;;  %v1205_v7 = vpop.f32.mrf.mxu1 }
 0x32f   :  { %v5922_v12 = vsub.s32 %v1698_v0, %v5847_v39  ;;  %v1093_v29 = vadd.f32 %v1092_v6, %v5873_v22  ;;  %v1206_v30 = vadd.f32 %v1205_v7, %v5878_v24  ;;  %vm1769_vm4 = vcmask 1043459  }
 0x330   :  { %v1476_v8 = vmax.f32 %v1474_v59, %v1475_v3  ;;  %v1502_v9 = vmax.f32 %v1500_v61, %v1501_v47  ;;  %v1488_v10 = vrot.slane %v1487_v4, 4  ;;  %v1514_v11 = vrot.slane %v1513_v5, 4  ;;  %v1094_v17 = vpop.f32.mrf.mxu0  ;;  %v1207_v18 = vpop.f32.mrf.mxu1 }
 0x331   :  { %v1095_v31 = vadd.f32 %v1094_v17, %v5864_v20  ;;  %v1208_v32 = vadd.f32 %v1207_v18, %v5869_v21  ;;  %vm1771_vm5 = vcmask 1045509   ;;  %vm1773_vm6 = vcmask 1047559  }
 0x332   :  { %v1477_v23 = vrot.slane %v1476_v8, 2  ;;  %v1503_v25 = vrot.slane %v1502_v9, 2  ;;  %v1489_v26 = vmax.f32 %v1487_v4, %v1488_v10  ;;  %v1515_v28 = vmax.f32 %v1513_v5, %v1514_v11  ;;  %v1096_v33 = vpop.f32.mrf.mxu0  ;;  %v1209_v34 = vpop.f32.mrf.mxu1 }
 0x333   :  { %v1572_v40 = vmax.f32 %v1091_v13, %v1095_v31  ;;  %v1598_v41 = vmax.f32 %v1204_v27, %v1208_v32  ;;  %v1097_v42 = vadd.f32 %v1096_v33, %v5873_v22  ;;  %v1210_v43 = vadd.f32 %v1209_v34, %v5878_v24 }
 0x334   :  { %v1478_v35 = vmax.f32 %v1476_v8, %v1477_v23  ;;  %v1504_v36 = vmax.f32 %v1502_v9, %v1503_v25  ;;  %v1490_v37 = vrot.slane %v1489_v26, 2  ;;  %v1516_v38 = vrot.slane %v1515_v28, 2  ;;  %v1100_v44 = vpop.f32.mrf.mxu0  ;;  %v1213_v45 = vpop.f32.mrf.mxu1 }
 0x335   :  { %v1585_v51 = vmax.f32 %v1093_v29, %v1097_v42  ;;  %v1611_v52 = vmax.f32 %v1206_v30, %v1210_v43  ;;  %v1101_v53 = vadd.f32 %v1100_v44, %v5864_v20  ;;  %v1214_v54 = vadd.f32 %v1213_v45, %v5869_v21 }
 0x336   :  { %v1479_v46 = vrot.slane %v1478_v35, 1  ;;  %v1505_v48 = vrot.slane %v1504_v36, 1  ;;  %v1491_v49 = vmax.f32 %v1489_v26, %v1490_v37  ;;  %v1517_v50 = vmax.f32 %v1515_v28, %v1516_v38  ;;  %v1102_v55 = vpop.f32.mrf.mxu0  ;;  %v1215_v56 = vpop.f32.mrf.mxu1 }
 0x337   :  { %v1573_v62 = vmax.f32 %v1572_v40, %v1101_v53  ;;  %v1599_v63 = vmax.f32 %v1598_v41, %v1214_v54  ;;  %v1103_v0 = vadd.f32 %v1102_v55, %v5873_v22  ;;  %v1216_v1 = vadd.f32 %v1215_v56, %v5878_v24 }
 0x338   :  { %v1480_v57 = vmax.f32 %v1478_v35, %v1479_v46  ;;  %v1506_v58 = vmax.f32 %v1504_v36, %v1505_v48  ;;  %v1492_v59 = vrot.slane %v1491_v49, 1  ;;  %v1518_v61 = vrot.slane %v1517_v50, 1  ;;  %v1104_v2 = vpop.f32.mrf.mxu0  ;;  %v1217_v3 = vpop.f32.mrf.mxu1 }
 0x339   :  { %v1105_v5 = vadd.f32 %v1104_v2, %v5864_v20  ;;  %v1218_v6 = vadd.f32 %v1217_v3, %v5869_v21  ;;  %v1586_v7 = vmax.f32 %v1585_v51, %v1103_v0  ;;  %v1612_v8 = vmax.f32 %v1611_v52, %v1216_v1 }
 0x33a   :  { %v1493_v47 = vmax.f32 %v1491_v49, %v1492_v59  ;;  %v1519_v4 = vmax.f32 %v1517_v50, %v1518_v61  ;;  %v1106_v9 = vpop.f32.mrf.mxu0  ;;  %v1219_v10 = vpop.f32.mrf.mxu1 }
 0x33b   :  { %v1574_v27 = vmax.f32 %v1573_v62, %v1105_v5  ;;  %v1600_v17 = vmax.f32 %v1599_v63, %v1218_v6  ;;  %v1107_v18 = vadd.f32 %v1106_v9, %v5873_v22  ;;  %v1220_v23 = vadd.f32 %v1219_v10, %v5878_v24 }
 0x33c   :  { %v1694_v11 = vcombine.low %v1480_v57, %v1493_v47  ;;  %v1695_v13 = vcombine.low %v1506_v58, %v1519_v4  ;;  %v1110_v25 = vpop.f32.mrf.mxu0  ;;  %v1223_v26 = vpop.f32.mrf.mxu1 }
 0x33d   :  { %v1111_v30 = vadd.f32 %v1110_v25, %v5864_v20  ;;  %v1224_v31 = vadd.f32 %v1223_v26, %v5869_v21  ;;  %v1587_v32 = vmax.f32 %v1586_v7, %v1107_v18  ;;  %v1613_v33 = vmax.f32 %v1612_v8, %v1220_v23 }
 0x33e   :  { %v5941_v28 = vrot.slane %v1694_v11, %v5922_v12  ;;  %v5944_v29 = vrot.slane %v1695_v13, %v5922_v12  ;;  %v1112_v34 = vpop.f32.mrf.mxu0  ;;  %v1225_v35 = vpop.f32.mrf.mxu1 }
 0x33f   :  { %v1575_v37 = vmax.f32 %v1574_v27, %v1111_v30  ;;  %v1601_v38 = vmax.f32 %v1600_v17, %v1224_v31  ;;  %v1113_v40 = vadd.f32 %v1112_v34, %v5873_v22  ;;  %v1226_v41 = vadd.f32 %v1225_v35, %v5878_v24 }
 0x340   :  { %v1710_v36 = vcombine.low %v5941_v28, %v5944_v29  ;;  %v1114_v42 = vpop.f32.mrf.mxu0  ;;  %v1227_v43 = vpop.f32.mrf.mxu1 }
 0x341   :  { %v1588_v44 = vmax.f32 %v1587_v32, %v1113_v40  ;;  %v1115_v45 = vadd.f32 %v1114_v42, %v5864_v20  ;;  %v1228_v46 = vadd.f32 %v1227_v43, %v5869_v21  ;;  %v1614_v48 = vmax.f32 %v1613_v33, %v1226_v41 }
 0x342   :  { %v1116_v49 = vpop.f32.mrf.mxu0  ;;  %v1229_v50 = vpop.f32.mrf.mxu1 }
 0x343   :  { %v1576_v51 = vmax.f32 %v1575_v37, %v1115_v45  ;;  %v1602_v52 = vmax.f32 %v1601_v38, %v1228_v46  ;;  %v1117_v53 = vadd.f32 %v1116_v49, %v5873_v22  ;;  %v1230_v54 = vadd.f32 %v1229_v50, %v5878_v24 }
 0x344   :  { %v1120_v55 = vpop.f32.mrf.mxu0  ;;  %v1233_v56 = vpop.f32.mrf.mxu1 }
 0x345   :  { %v1589_v57 = vmax.f32 %v1588_v44, %v1117_v53  ;;  %v1615_v58 = vmax.f32 %v1614_v48, %v1230_v54  ;;  %v1121_v59 = vadd.f32 %v1120_v55, %v5864_v20  ;;  %v1234_v61 = vadd.f32 %v1233_v56, %v5869_v21 }
 0x346   :  { %v1122_v62 = vpop.f32.mrf.mxu0  ;;  %v1235_v63 = vpop.f32.mrf.mxu1 }
 0x347   :  { %v1577_v0 = vmax.f32 %v1576_v51, %v1121_v59  ;;  %v1603_v1 = vmax.f32 %v1602_v52, %v1234_v61  ;;  %v1123_v2 = vadd.f32 %v1122_v62, %v5873_v22  ;;  %v1236_v3 = vadd.f32 %v1235_v63, %v5878_v24 }
 0x348   :  { %v1124_v47 = vpop.f32.mrf.mxu0  ;;  %v1237_v4 = vpop.f32.mrf.mxu1 }
 0x349   :  { %v1590_v5 = vmax.f32 %v1589_v57, %v1123_v2  ;;  %v1616_v6 = vmax.f32 %v1615_v58, %v1236_v3  ;;  %v1125_v7 = vadd.f32 %v1124_v47, %v5864_v20  ;;  %v1238_v8 = vadd.f32 %v1237_v4, %v5869_v21 }
 0x34a   :  { %v1126_v9 = vpop.f32.mrf.mxu0  ;;  %v1239_v10 = vpop.f32.mrf.mxu1 }
 0x34b   :  { %v1578_v11 = vmax.f32 %v1577_v0, %v1125_v7  ;;  %v1604_v13 = vmax.f32 %v1603_v1, %v1238_v8  ;;  %v1127_v27 = vadd.f32 %v1126_v9, %v5873_v22  ;;  %v1240_v17 = vadd.f32 %v1239_v10, %v5878_v24 }
 0x34c   :  { %v5964_v18 = vpop.f32.mrf.mxu0  ;;  %v5966_v23 = vpop.f32.mrf.mxu1 }
 0x34d   :  { %v1579_v25 = vrot.slane %v1578_v11, 4  ;;  %v1605_v26 = vrot.slane %v1604_v13, 4  ;;  %v1591_v30 = vmax.f32 %v1590_v5, %v1127_v27  ;;  %v1617_v31 = vmax.f32 %v1616_v6, %v1240_v17 }
 0x34e   :  { %v5968_v32 = vpop.f32.mrf.mxu0  ;;  %v5970_v20 = vpop.f32.mrf.mxu1  ;;  %v686_v27 = vsub.s32 7, %v5847_v39 }
 0x34f   :  { %v1580_v21 = vmax.f32 %v1578_v11, %v1579_v25  ;;  %v1606_v33 = vmax.f32 %v1604_v13, %v1605_v26  ;;  %v1592_v34 = vrot.slane %v1591_v30, 4  ;;  %v1618_v35 = vrot.slane %v1617_v31, 4 }
 0x350   :  { %v5972_v37 = vpop.f32.mrf.mxu0  ;;  %v5974_v22 = vpop.f32.mrf.mxu1  ;;  %v678_v13 = vsub.s32 5, %v5847_v39 }
 0x351   :  { %v1581_v24 = vrot.slane %v1580_v21, 2  ;;  %v1607_v38 = vrot.slane %v1606_v33, 2  ;;  %v1593_v40 = vmax.f32 %v1591_v30, %v1592_v34  ;;  %v1619_v41 = vmax.f32 %v1617_v31, %v1618_v35 }
 0x352   :  { %v1282_v42 = vpop.f32.mrf.mxu0  ;;  %v1395_v43 = vpop.f32.mrf.mxu1  ;;  %v674_v30 = vsub.s32 4, %v5847_v39  ;;  %v682_v31 = vsub.s32 6, %v5847_v39 }
 0x353   :  { %v1582_v44 = vmax.f32 %v1580_v21, %v1581_v24  ;;  %v1608_v45 = vmax.f32 %v1606_v33, %v1607_v38  ;;  %v1594_v46 = vrot.slane %v1593_v40, 2  ;;  %v1620_v48 = vrot.slane %v1619_v41, 2 }
 0x354   :  { %v5976_v49 = vpop.f32.mrf.mxu0  ;;  %v5978_v50 = vpop.f32.mrf.mxu1  ;;  %v6004_v24 = vrot.slane %v5856_v15, %v678_v13  ;;  %v6007_v38 = vrot.slane %v5856_v15, %v686_v27  ;;  %v6014_v28 = vrot.slane %v5856_v15, %v682_v31 }
 0x355   :  { %v1583_v51 = vrot.slane %v1582_v44, 1  ;;  %v1609_v52 = vrot.slane %v1608_v45, 1  ;;  %v1595_v53 = vmax.f32 %v1593_v40, %v1594_v46  ;;  %v1621_v54 = vmax.f32 %v1619_v41, %v1620_v48 }
 0x356   :  { %v1288_v55 = vpop.f32.mrf.mxu0  ;;  %v1401_v56 = vpop.f32.mrf.mxu1  ;;  %v1396_v46 = vadd.f32 %v1395_v43, %v6007_v38 }
 0x357   :  { %v1596_v57 = vrot.slane %v1595_v53, 1  ;;  %v1622_v58 = vrot.slane %v1621_v54, 1  ;;  %v1584_v62 = vmax.f32 %v1582_v44, %v1583_v51  ;;  %v1610_v63 = vmax.f32 %v1608_v45, %v1609_v52 }
 0x358   :  { %v5980_v59 = vpop.f32.mrf.mxu0  ;;  %v5982_v61 = vpop.f32.mrf.mxu1  ;;  %v6011_v45 = vrot.slane %v5856_v15, %v674_v30  ;;  %v1392_v15 = vadd.f32 %v5970_v20, %v6007_v38 }
 0x359   :  { %v1597_v0 = vmax.f32 %v1595_v53, %v1596_v57  ;;  %v1623_v1 = vmax.f32 %v1621_v54, %v1622_v58  ;;  %v1394_v53 = vadd.f32 %v5974_v22, %v6014_v28  ;;  %v1279_v54 = vadd.f32 %v5968_v32, %v6004_v24 }
 0x35a   :  { %v1292_v2 = vpop.f32.mrf.mxu0  ;;  %v1405_v3 = vpop.f32.mrf.mxu1  ;;  %v1281_v52 = vadd.f32 %v5972_v37, %v6011_v45  ;;  %v1289_v57 = vadd.f32 %v1288_v55, %v6004_v24  ;;  %v1390_v37 = vadd.f32 %v5966_v23, %v6014_v28  ;;  %v1287_v22 = vadd.f32 %v5976_v49, %v6011_v45 }
 0x35b   :  { %v1728_v47 = vcombine.low %v1584_v62, %v1597_v0  ;;  %v1729_v4 = vcombine.low %v1610_v63, %v1623_v1  ;;  %v1277_v62 = vadd.f32 %v5964_v18, %v6011_v45  ;;  %v1400_v32 = vadd.f32 %v5978_v50, %v6014_v28 }
 0x35c   :  { %v5984_v5 = vpop.f32.mrf.mxu0  ;;  %v5986_v6 = vpop.f32.mrf.mxu1  ;;  %v1559_v20 = vmax.f32 %v1392_v15, %v1396_v46  ;;  %v1293_v55 = vadd.f32 %v1292_v2, %v6004_v24  ;;  %v1291_v18 = vadd.f32 %v5980_v59, %v6011_v45  ;;  %v1404_v23 = vadd.f32 %v5982_v61, %v6014_v28 }
 0x35d   :  { %v1736_v7 = vrot.slane %v1728_v47, %v5922_v12  ;;  %v1743_v8 = vrot.slane %v1729_v4, %v5922_v12  ;;  %v1520_v47 = vmax.f32 %v1277_v62, %v1281_v52  ;;  %v1546_v4 = vmax.f32 %v1390_v37, %v1394_v53 }
 0x35e   :  { %v1298_v9 = vpop.f32.mrf.mxu0  ;;  %v1411_v10 = vpop.f32.mrf.mxu1  ;;  %v1297_v27 = vadd.f32 %v5984_v5, %v6011_v45 }
 0x35f   :  { %v1744_v11 = vcombine.low %v1736_v7, %v1743_v8  ;;  %v1299_v50 = vadd.f32 %v1298_v9, %v6004_v24  ;;  %v1412_v8 = vadd.f32 %v1411_v10, %v6007_v38  ;;  %v1521_v13 = vmax.f32 %v1520_v47, %v1287_v22 }
 0x360   :  { %v5992_v17 = vpop.f32.mrf.mxu0  ;;  %v5994_v25 = vpop.f32.mrf.mxu1 }
 0x361   :  { %v1766_v26 = vrot.slane %v1744_v11, 7 }
 0x362   :  { %v1302_v21 = vpop.f32.mrf.mxu0  ;;  %v1415_v33 = vpop.f32.mrf.mxu1 }
 0x363   :  { %v1768_v34 = vsel %vm1767_vm3, %v1766_v26, %v1710_v36  ;;  %v1283_v36 = vadd.f32 %v1282_v42, %v6004_v24  ;;  %v1402_v42 = vadd.f32 %v1401_v56, %v6007_v38  ;;  %v1406_v56 = vadd.f32 %v1405_v3, %v6007_v38 }
 0x364   :  { %v1770_v35 = vsel %vm1769_vm4, %v1766_v26, %v1768_v34  ;;  %v1306_v40 = vpop.f32.mrf.mxu0  ;;  %v1419_v41 = vpop.f32.mrf.mxu1  ;;  %v1547_v3 = vmax.f32 %v1546_v4, %v1400_v32  ;;  %v1303_v61 = vadd.f32 %v1302_v21, %v6004_v24  ;;  %v1416_v31 = vadd.f32 %v1415_v33, %v6007_v38 }
 0x365   :  { %v1772_v44 = vsel %vm1771_vm5, %v1766_v26, %v1770_v35  ;;  %v1533_v63 = vmax.f32 %v1279_v54, %v1283_v36  ;;  %v1560_v7 = vmax.f32 %v1559_v20, %v1402_v42  ;;  %v1522_v35 = vmax.f32 %v1521_v13, %v1291_v18 }
 0x366   :  { %v6017_v29 = vsel %vm1773_vm6, %v1766_v26, %v1772_v44  ;;  %v1308_v48 = vpop.f32.mrf.mxu0  ;;  %v1421_v51 = vpop.f32.mrf.mxu1  ;;  %v1410_v26 = vadd.f32 %v5986_v6, %v6014_v28  ;;  %v1548_v10 = vmax.f32 %v1547_v3, %v1404_v23  ;;  %v1301_v44 = vadd.f32 %v5992_v17, %v6011_v45 }
 0x367   :  { %v1534_v49 = vmax.f32 %v1533_v63, %v1289_v57  ;;  %v1561_v30 = vmax.f32 %v1560_v7, %v1406_v56  ;;  %v1414_v36 = vadd.f32 %v5994_v25, %v6014_v28  ;;  %v1309_v6 = vadd.f32 %v1308_v48, %v6004_v24 }
 0x368   :  { %v1310_v58 = vpop.f32.mrf.mxu0  ;;  %v1423_v43 = vpop.f32.mrf.mxu1  ;;  %v1422_v52 = vadd.f32 %v1421_v51, %v6007_v38  ;;  %v1523_v54 = vmax.f32 %v1522_v35, %v1297_v27  ;;  %v1549_v33 = vmax.f32 %v1548_v10, %v1410_v26  ;;  %v1307_v15 = vadd.f32 %v1306_v40, %v6011_v45 }
 0x369   :  { %v1535_v59 = vmax.f32 %v1534_v49, %v1293_v55  ;;  %v1562_v46 = vmax.f32 %v1561_v30, %v1412_v8  ;;  %v1420_v57 = vadd.f32 %v1419_v41, %v6014_v28  ;;  %v1311_v51 = vadd.f32 %v1310_v58, %v6011_v45 }
 0x36a   :  { %v1312_v0 = vpop.f32.mrf.mxu0  ;;  %v1425_v1 = vpop.f32.mrf.mxu1  ;;  %v1524_v32 = vmax.f32 %v1523_v54, %v1301_v44  ;;  %v1550_v48 = vmax.f32 %v1549_v33, %v1414_v36  ;;  %v1424_v63 = vadd.f32 %v1423_v43, %v6014_v28 }
 0x36b   :  { %v1536_v5 = vmax.f32 %v1535_v59, %v1299_v50  ;;  %v1563_v62 = vmax.f32 %v1562_v46, %v1416_v31  ;;  %v1313_v17 = vadd.f32 %v1312_v0, %v6004_v24  ;;  %v1426_v25 = vadd.f32 %v1425_v1, %v6007_v38 }
 0x36c   :  { %v1316_v11 = vpop.f32.mrf.mxu0  ;;  %v1429_v2 = vpop.f32.mrf.mxu1  ;;  %v1525_v47 = vmax.f32 %v1524_v32, %v1307_v15  ;;  %v1551_v41 = vmax.f32 %v1550_v48, %v1420_v57 }
 0x36d   :  { %v1537_v42 = vmax.f32 %v1536_v5, %v1303_v61  ;;  %v1564_v55 = vmax.f32 %v1563_v62, %v1422_v52  ;;  %v1317_v30 = vadd.f32 %v1316_v11, %v6011_v45  ;;  %v1430_v61 = vadd.f32 %v1429_v2, %v6014_v28 }
 0x36e   :  { %v1318_v34 = vpop.f32.mrf.mxu0  ;;  %v1431_v9 = vpop.f32.mrf.mxu1  ;;  %v1526_v49 = vmax.f32 %v1525_v47, %v1311_v51  ;;  %v1552_v1 = vmax.f32 %v1551_v41, %v1424_v63 }
 0x36f   :  { %v1538_v20 = vmax.f32 %v1537_v42, %v1309_v6  ;;  %v1565_v18 = vmax.f32 %v1564_v55, %v1426_v25  ;;  %v1319_v36 = vadd.f32 %v1318_v34, %v6004_v24  ;;  %v1432_v5 = vadd.f32 %v1431_v9, %v6007_v38 }
 0x370   :  { %v1320_v53 = vpop.f32.mrf.mxu0  ;;  %v1433_v21 = vpop.f32.mrf.mxu1  ;;  %v1527_v27 = vrot.slane %v1526_v49, 4  ;;  %v1553_v43 = vrot.slane %v1552_v1, 4 }
 0x371   :  { %v1539_v4 = vmax.f32 %v1538_v20, %v1313_v17  ;;  %v1566_v13 = vrot.slane %v1565_v18, 4  ;;  %v1321_v26 = vadd.f32 %v1320_v53, %v6011_v45  ;;  %v1434_v59 = vadd.f32 %v1433_v21, %v6014_v28 }
 0x372   :  { %v1322_v37 = vpop.f32.mrf.mxu0  ;;  %v1435_v22 = vpop.f32.mrf.mxu1 }
 0x373   :  { %v1540_v8 = vrot.slane %v1539_v4, 4  ;;  %v1323_v31 = vadd.f32 %v1322_v37, %v6004_v24  ;;  %v1436_v35 = vadd.f32 %v1435_v22, %v6007_v38  ;;  %v6077_v53 = vmax.f32 %v1565_v18, %v1566_v13 }
 0x374   :  { %v1326_v56 = vpop.f32.mrf.mxu0  ;;  %v1439_v40 = vpop.f32.mrf.mxu1  ;;  %v1624_v33 = vmax.f32 %v1317_v30, %v1321_v26  ;;  %v1650_v15 = vmax.f32 %v1430_v61, %v1434_v59  ;;  %v1528_v61 = vmax.f32 %v1526_v49, %v1527_v27 }
 0x375   :  { %v1327_v46 = vadd.f32 %v1326_v56, %v6011_v45  ;;  %v1440_v6 = vadd.f32 %v1439_v40, %v6014_v28  ;;  %v6075_v52 = vmax.f32 %v1539_v4, %v1540_v8  ;;  %v1637_v57 = vmax.f32 %v1319_v36, %v1323_v31 }
 0x376   :  { %v1328_v23 = vpop.f32.mrf.mxu0  ;;  %v1441_v0 = vpop.f32.mrf.mxu1  ;;  %v1663_v42 = vmax.f32 %v1432_v5, %v1436_v35  ;;  %v1554_v31 = vmax.f32 %v1552_v1, %v1553_v43 }
 0x377   :  { %v1329_v11 = vadd.f32 %v1328_v23, %v6004_v24  ;;  %v1442_v2 = vadd.f32 %v1441_v0, %v6007_v38  ;;  %v1625_v22 = vmax.f32 %v1624_v33, %v1327_v46  ;;  %v1651_v32 = vmax.f32 %v1650_v15, %v1440_v6 }
 0x378   :  { %v1330_v7 = vpop.f32.mrf.mxu0  ;;  %v1443_v50 = vpop.f32.mrf.mxu1 }
 0x379   :  { %v1331_v34 = vadd.f32 %v1330_v7, %v6011_v45  ;;  %v1444_v9 = vadd.f32 %v1443_v50, %v6014_v28  ;;  %v1638_v63 = vmax.f32 %v1637_v57, %v1329_v11  ;;  %v1664_v20 = vmax.f32 %v1663_v42, %v1442_v2 }
 0x37a   :  { %v1332_v3 = vpop.f32.mrf.mxu0  ;;  %v1445_v58 = vpop.f32.mrf.mxu1  ;;  %v1542_v2 = vrot.slane %v6075_v52, 2  ;;  %v1555_v57 = vrot.slane %v1554_v31, 2 }
 0x37b   :  { %v1333_v62 = vadd.f32 %v1332_v3, %v6004_v24  ;;  %v1446_v17 = vadd.f32 %v1445_v58, %v6007_v38  ;;  %v1626_v41 = vmax.f32 %v1625_v22, %v1331_v34  ;;  %v1652_v4 = vmax.f32 %v1651_v32, %v1444_v9 }
 0x37c   :  { %v1336_v10 = vpop.f32.mrf.mxu0  ;;  %v1449_v44 = vpop.f32.mrf.mxu1  ;;  %v1529_v9 = vrot.slane %v1528_v61, 2 }
 0x37d   :  { %v1337_v48 = vadd.f32 %v1336_v10, %v6011_v45  ;;  %v1450_v51 = vadd.f32 %v1449_v44, %v6014_v28  ;;  %v1639_v0 = vmax.f32 %v1638_v63, %v1333_v62  ;;  %v1665_v7 = vmax.f32 %v1664_v20, %v1446_v17 }
 0x37e   :  { %v1338_v21 = vpop.f32.mrf.mxu0  ;;  %v1451_v54 = vpop.f32.mrf.mxu1 }
 0x37f   :  { %v1339_v55 = vadd.f32 %v1338_v21, %v6004_v24  ;;  %v1452_v56 = vadd.f32 %v1451_v54, %v6007_v38  ;;  %v1627_v58 = vmax.f32 %v1626_v41, %v1337_v48  ;;  %v1653_v26 = vmax.f32 %v1652_v4, %v1450_v51 }
 0x380   :  { %v1340_v25 = vpop.f32.mrf.mxu0  ;;  %v1453_v37 = vpop.f32.mrf.mxu1  ;;  %v1568_v21 = vrot.slane %v6077_v53, 2  ;;  %v1543_v51 = vmax.f32 %v6075_v52, %v1542_v2 }
 0x381   :  { %v1341_v18 = vadd.f32 %v1340_v25, %v6011_v45  ;;  %v1454_v23 = vadd.f32 %v1453_v37, %v6014_v28  ;;  %v1640_v35 = vmax.f32 %v1639_v0, %v1339_v55  ;;  %v1666_v10 = vmax.f32 %v1665_v7, %v1452_v56 }
 0x382   :  { %v1342_v40 = vpop.f32.mrf.mxu0  ;;  %v1455_v47 = vpop.f32.mrf.mxu1  ;;  %v1569_v63 = vmax.f32 %v6077_v53, %v1568_v21  ;;  %v1530_v56 = vmax.f32 %v1528_v61, %v1529_v9 }
 0x383   :  { %v1343_v50 = vadd.f32 %v1342_v40, %v6004_v24  ;;  %v1456_v8 = vadd.f32 %v1455_v47, %v6007_v38  ;;  %v1628_v5 = vmax.f32 %v1627_v58, %v1341_v18  ;;  %v1654_v46 = vmax.f32 %v1653_v26, %v1454_v23 }
 0x384   :  { %v1346_v13 = vpop.f32.mrf.mxu0  ;;  %v1459_v3 = vpop.f32.mrf.mxu1  ;;  %v1556_v40 = vmax.f32 %v1554_v31, %v1555_v57  ;;  %v1544_v23 = vrot.slane %v1543_v51, 1  ;;  %v1570_v0 = vrot.slane %v1569_v63, 1 }
 0x385   :  { %v1347_v59 = vadd.f32 %v1346_v13, %v6011_v45  ;;  %v1460_v30 = vadd.f32 %v1459_v3, %v6014_v28  ;;  %v1641_v54 = vmax.f32 %v1640_v35, %v1343_v50  ;;  %v1667_v33 = vmax.f32 %v1666_v10, %v1456_v8 }
 0x386   :  { %v1348_v44 = vpop.f32.mrf.mxu0  ;;  %v1461_v36 = vpop.f32.mrf.mxu1  ;;  %v1531_v8 = vrot.slane %v1530_v56, 1  ;;  %v1557_v52 = vrot.slane %v1556_v40, 1  ;;  %v1545_v26 = vmax.f32 %v1543_v51, %v1544_v23 }
 0x387   :  { %v1349_v6 = vadd.f32 %v1348_v44, %v6004_v24  ;;  %v1462_v11 = vadd.f32 %v1461_v36, %v6007_v38  ;;  %v1629_v49 = vmax.f32 %v1628_v5, %v1347_v59  ;;  %v1655_v1 = vmax.f32 %v1654_v46, %v1460_v30 }
 0x388   :  { %v1350_v15 = vpop.f32.mrf.mxu0  ;;  %v1463_v34 = vpop.f32.mrf.mxu1  ;;  %v1571_v59 = vmax.f32 %v1569_v63, %v1570_v0  ;;  %v1532_v10 = vmax.f32 %v1530_v56, %v1531_v8  ;;  %v1558_v44 = vmax.f32 %v1556_v40, %v1557_v52 }
 0x389   :  { %v1351_v27 = vadd.f32 %v1350_v15, %v6011_v45  ;;  %v1464_v43 = vadd.f32 %v1463_v34, %v6014_v28  ;;  %v1642_v42 = vmax.f32 %v1641_v54, %v1349_v6  ;;  %v1668_v62 = vmax.f32 %v1667_v33, %v1462_v11 }
 0x38a   :  { %v1352_v17 = vpop.f32.mrf.mxu0  ;;  %v1465_v25 = vpop.f32.mrf.mxu1  ;;  %v1711_v46 = vcombine.low %v1532_v10, %v1545_v26  ;;  %v1712_v6 = vcombine.low %v1558_v44, %v1571_v59 }
 0x38b   :  { %v1630_v37 = vmax.f32 %v1629_v49, %v1351_v27  ;;  %v1656_v22 = vmax.f32 %v1655_v1, %v1464_v43  ;;  %v1353_v32 = vadd.f32 %v1352_v17, %v6004_v24  ;;  %v1466_v48 = vadd.f32 %v1465_v25, %v6007_v38 }
 0x38c   :  { %v1719_v34 = vrot.slane %v1711_v46, %v5922_v12  ;;  %v1726_v49 = vrot.slane %v1712_v6, %v5922_v12 }
 0x38d   :  { %v1631_v20 = vrot.slane %v1630_v37, 4  ;;  %v1657_v45 = vrot.slane %v1656_v22, 4  ;;  %v1643_v55 = vmax.f32 %v1642_v42, %v1353_v32  ;;  %v1669_v28 = vmax.f32 %v1668_v62, %v1466_v48 }
 0x38e   :  { %v1727_v9 = vcombine.low %v1719_v34, %v1726_v49 }
 0x38f   :  { %v1632_v47 = vmax.f32 %v1630_v37, %v1631_v20  ;;  %v1658_v41 = vmax.f32 %v1656_v22, %v1657_v45  ;;  %v1644_v4 = vrot.slane %v1643_v55, 4  ;;  %v1670_v18 = vrot.slane %v1669_v28, 4 }
 0x391   :  { %v1633_v7 = vrot.slane %v1632_v47, 2  ;;  %v1659_v24 = vrot.slane %v1658_v41, 2  ;;  %v1645_v50 = vmax.f32 %v1643_v55, %v1644_v4  ;;  %v1671_v38 = vmax.f32 %v1669_v28, %v1670_v18 }
 0x393   :  { %v1634_v13 = vmax.f32 %v1632_v47, %v1633_v7  ;;  %v1660_v53 = vmax.f32 %v1658_v41, %v1659_v24  ;;  %v1646_v3 = vrot.slane %v1645_v50, 2  ;;  %v1672_v58 = vrot.slane %v1671_v38, 2 }
 0x395   :  { %v1635_v30 = vrot.slane %v1634_v13, 1  ;;  %v1661_v61 = vrot.slane %v1660_v53, 1  ;;  %v1647_v31 = vmax.f32 %v1645_v50, %v1646_v3  ;;  %v1673_v35 = vmax.f32 %v1671_v38, %v1672_v58 }
 0x397   :  { %v1648_v36 = vrot.slane %v1647_v31, 1  ;;  %v1674_v5 = vrot.slane %v1673_v35, 1  ;;  %v1636_v11 = vmax.f32 %v1634_v13, %v1635_v30  ;;  %v1662_v2 = vmax.f32 %v1660_v53, %v1661_v61 }
 0x399   :  { %v1649_v21 = vmax.f32 %v1647_v31, %v1648_v36  ;;  %v1675_v54 = vmax.f32 %v1673_v35, %v1674_v5 }
 0x39b   :  { %v1745_v33 = vcombine.low %v1636_v11, %v1649_v21  ;;  %v1746_v15 = vcombine.low %v1662_v2, %v1675_v54 }
 0x39d   :  { %v1753_v1 = vrot.slane %v1745_v33, %v5922_v12  ;;  %v1760_v27 = vrot.slane %v1746_v15, %v5922_v12 }
 0x39f   :  { %v1761_v43 = vcombine.low %v1753_v1, %v1760_v27 }
 0x3a1   :  { %v1777_v57 = vrot.slane %v1761_v43, 7 }
 0x3a3   :  { %v1778_v42 = vsel %vm1767_vm3, %v1777_v57, %v1727_v9 }
 0x3a4   :  { %v1779_v62 = vsel %vm1769_vm4, %v1777_v57, %v1778_v42 }
 0x3a5   :  { %v1780_v17 = vsel %vm1771_vm5, %v1777_v57, %v1779_v62 }
 0x3a6   :  { %v6113_v25 = vsel %vm1773_vm6, %v1777_v57, %v1780_v17 }
 0x3a7   :  { %5620 = dma.done.wait [#allocation6], 32768 }
 0x3a8   :  { %5621 = vsyncadd [#allocation6], 4294934528 }
 0x3a9   :  { %5622 = dma.done.wait [#allocation6 + $0x1], 8192 }
 0x3aa   :  { %5623 = vsyncadd [#allocation6 + $0x1], 4294959104 }
 0x3ab   :  { %5624 = dma.done.wait [#allocation6 + $0x2], 2048 }
 0x3ac   :  { %5625 = vsyncadd [#allocation6 + $0x2], 4294965248  ;;  %v6117_v37 = vrot.slane %v6017_v29, %v5922_v12  ;;  %v1809_v22 = vcombine.high %v6017_v29, %v6017_v29  ;;  %v5000_v45 = vld [vmem:[#allocation3 + $0xe4] ss:$16 sps:$4 sm:$0xff]   ;;  %v5004_v29 = vld [vmem:[#allocation3 + $0xe0] ss:$16 sps:$4 sm:$0xff]  }
 0x3ad   :  { %v5002_v55 = vld [vmem:[#allocation3 + $0x2e4] ss:$16 sps:$4 sm:$0xff]   ;;  %3417 = vmatprep.subr.bf16.mxu0 %v5000_v45  ;;  %v5005_v28 = vld [vmem:[#allocation3 + $0x2e0] ss:$16 sps:$4 sm:$0xff]   ;;  %s5639_s25 = smov [#allocation12]  }
 0x3ae   :  { %v1824_v32 = vcombine.high %v6117_v37, %v6117_v37  ;;  %v6124_v48 = vrot.slane %v1809_v22, %v5922_v12  ;;  %3458 = vmatprep.subr.bf16.mxu1 %v5002_v55  ;;  %v5006_v56 = vld [vmem:[#allocation3 + $0xc4] ss:$16 sps:$4 sm:$0xff]   ;;  %3418 = vmatpush1.bf16.msra.mxu0 %v5004_v29  ;;  %v5010_v47 = vld [vmem:[#allocation3 + $0xc0] ss:$16 sps:$4 sm:$0xff]   ;;  %s4417_s26 = sshll.u32 %s5639_s25, 4  ;;  %s4418_s26 = int_to_ptr.vmem [resolvable:$true] %s4417_s26 }
 0x3af   :  { %3459 = vmatpush1.bf16.msra.mxu1 %v5005_v28  ;;  %v5008_v40 = vld [vmem:[#allocation3 + $0x2c4] ss:$16 sps:$4 sm:$0xff]   ;;  %3419 = vmatprep.subr.bf16.mxu0 %v5006_v56  ;;  %v5011_v41 = vld [vmem:[#allocation3 + $0x2c0] ss:$16 sps:$4 sm:$0xff]   ;;  %s5596_s0 = scalar_lea.vmem %s4418_s26, 32  ;;  %p5601_p12 = scmp.lt.s32.totalorder %s4418_s26, %s4418_s26 }
 0x3b0   :  { %v6126_v51 = vpack.c.bf16 %v1824_v32, %v1824_v32  ;;  %v1825_v63 = vcombine.high %v6124_v48, %v6124_v48  ;;  %3460 = vmatprep.subr.bf16.mxu1 %v5008_v40  ;;  %v5012_v4 = vld [vmem:[#allocation3 + $0xa4] ss:$16 sps:$4 sm:$0xff]   ;;  %v5016_v23 = vld [vmem:[#allocation3 + $0xa0] ss:$16 sps:$4 sm:$0xff]   ;;  %v1826_v40 = vcombine.high %v6113_v25, %v6113_v25  ;;  %p5597_p11 = scmp.ne.s32.totalorder %s4418_s26, %s5596_s0  ;;  %p5602_p13 = scmp.lt.s32.totalorder %s5596_s0, %s5596_s0 }
 0x3b1   :  { %v5014_v18 = vld [vmem:[#allocation3 + $0x2a4] ss:$16 sps:$4 sm:$0xff]   ;;  %v5017_v0 = vld [vmem:[#allocation3 + $0x2a0] ss:$16 sps:$4 sm:$0xff]  }
 0x3b2   :  { %3449 = vmatprep.mubr.bf16.mxu0 %v6126_v51  ;;  %v6131_v20 = vpack.c.bf16 %v1825_v63, %v1825_v63  ;;  %3420 = vmatpush1.bf16.msra.mxu0 %v5010_v47  ;;  %v5018_v7 = vld [vmem:[#allocation3 + $0x84] ss:$16 sps:$4 sm:$0xff]   ;;  %v5022_v50 = vld [vmem:[#allocation3 + $0x80] ss:$16 sps:$4 sm:$0xff]   ;;  %p5603_p0 = por %p5602_p13, %p5601_p12 }
 0x3b3   :  { %3461 = vmatpush1.bf16.msra.mxu1 %v5011_v41  ;;  %3421 = vmatprep.subr.bf16.mxu0 %v5012_v4  ;;  %v5020_v24 = vld [vmem:[#allocation3 + $0x284] ss:$16 sps:$4 sm:$0xff]   ;;  %v5023_v38 = vld [vmem:[#allocation3 + $0x280] ss:$16 sps:$4 sm:$0xff]  }
 0x3b4   :  { %3490 = vmatprep.mubr.bf16.mxu1 %v6131_v20  ;;  %3462 = vmatprep.subr.bf16.mxu1 %v5014_v18  ;;  %v5024_v8 = vld [vmem:[#allocation3 + $0x64] ss:$16 sps:$4 sm:$0xff]   ;;  %v5028_v13 = vld [vmem:[#allocation3 + $0x60] ss:$16 sps:$4 sm:$0xff]   ;;  %p5604_p1 = pnand %p5603_p0, %p5597_p11 }
 0x3b5   :  { %v5026_v52 = vld [vmem:[#allocation3 + $0x264] ss:$16 sps:$4 sm:$0xff]   ;;  %v5029_v53 = vld [vmem:[#allocation3 + $0x260] ss:$16 sps:$4 sm:$0xff]  }
 0x3b6   :  { %3422 = vmatpush1.bf16.msra.mxu0 %v5016_v23  ;;  %v5030_v3 = vld [vmem:[#allocation3 + $0x44] ss:$16 sps:$4 sm:$0xff]   ;;  %v5034_v26 = vld [vmem:[#allocation3 + $0x40] ss:$16 sps:$4 sm:$0xff]   ;;  %v6138_v23 = vrot.slane %v6113_v25, %v5922_v12  ;;  %v6149_v25 = vpack.c.bf16 %v6117_v37, %v6117_v37 }
 0x3b7   :  { %3463 = vmatpush1.bf16.msra.mxu1 %v5017_v0  ;;  %3423 = vmatprep.subr.bf16.mxu0 %v5018_v7  ;;  %v5032_v58 = vld [vmem:[#allocation3 + $0x244] ss:$16 sps:$4 sm:$0xff]   ;;  %v5035_v59 = vld [vmem:[#allocation3 + $0x240] ss:$16 sps:$4 sm:$0xff]   ;;  %v6141_v0 = vrot.slane %v1826_v40, %v5922_v12  ;;  %v6153_v12 = vpack.c.bf16 %v6124_v48, %v6124_v48 }
 0x3b8   :  { %3464 = vmatprep.subr.bf16.mxu1 %v5020_v24  ;;  %v5036_v30 = vld [vmem:[#allocation3 + $0x24] ss:$16 sps:$4 sm:$0xff]   ;;  %v5040_v31 = vld [vmem:[#allocation3 + $0x20] ss:$16 sps:$4 sm:$0xff]  }
 0x3b9   :  { %v5038_v61 = vld [vmem:[#allocation3 + $0x224] ss:$16 sps:$4 sm:$0xff]   ;;  %v5041_v35 = vld [vmem:[#allocation3 + $0x220] ss:$16 sps:$4 sm:$0xff]  }
 0x3ba   :  { %3424 = vmatpush1.bf16.msra.mxu0 %v5022_v50  ;;  %v5042_v10 = vld [vmem:[#allocation3 + $0x4] ss:$16 sps:$4 sm:$0xff]   ;;  %v5046_v36 = vld [vmem:[#allocation3] ss:$16 sps:$4 sm:$0xff]  }
 0x3bb   :  { %3465 = vmatpush1.bf16.msra.mxu1 %v5023_v38  ;;  %3425 = vmatprep.subr.bf16.mxu0 %v5024_v8  ;;  %v5044_v44 = vld [vmem:[#allocation3 + $0x204] ss:$16 sps:$4 sm:$0xff]   ;;  %v5047_v5 = vld [vmem:[#allocation3 + $0x200] ss:$16 sps:$4 sm:$0xff]   ;;  %v1841_v8 = vcombine.high %v6138_v23, %v6138_v23 }
 0x3bc   :  { %3466 = vmatprep.subr.bf16.mxu1 %v5026_v52  ;;  %v5048_v46 = vld [vmem:[#allocation3 + $0x1e4] ss:$16 sps:$4 sm:$0xff]   ;;  %v5052_v11 = vld [vmem:[#allocation3 + $0x1e0] ss:$16 sps:$4 sm:$0xff]   ;;  %v1842_v52 = vcombine.high %v6141_v0, %v6141_v0 }
 0x3bd   :  { %v5050_v6 = vld [vmem:[#allocation3 + $0x3e4] ss:$16 sps:$4 sm:$0xff]   ;;  %v5053_v2 = vld [vmem:[#allocation3 + $0x3e0] ss:$16 sps:$4 sm:$0xff]  }
 0x3be   :  { %3426 = vmatpush1.bf16.msra.mxu0 %v5028_v13  ;;  %v5054_v21 = vld [vmem:[#allocation3 + $0x1c4] ss:$16 sps:$4 sm:$0xff]   ;;  %v5058_v33 = vld [vmem:[#allocation3 + $0x1c0] ss:$16 sps:$4 sm:$0xff]  }
 0x3bf   :  { %3467 = vmatpush1.bf16.msra.mxu1 %v5029_v53  ;;  %3427 = vmatprep.subr.bf16.mxu0 %v5030_v3  ;;  %v5056_v54 = vld [vmem:[#allocation3 + $0x3c4] ss:$16 sps:$4 sm:$0xff]   ;;  %v5059_v15 = vld [vmem:[#allocation3 + $0x3c0] ss:$16 sps:$4 sm:$0xff]  }
 0x3c0   :  { %3468 = vmatprep.subr.bf16.mxu1 %v5032_v58  ;;  %v5060_v34 = vld [vmem:[#allocation3 + $0x1a4] ss:$16 sps:$4 sm:$0xff]   ;;  %v5064_v1 = vld [vmem:[#allocation3 + $0x1a0] ss:$16 sps:$4 sm:$0xff]  }
 0x3c1   :  { %v5062_v49 = vld [vmem:[#allocation3 + $0x3a4] ss:$16 sps:$4 sm:$0xff]   ;;  %v5065_v27 = vld [vmem:[#allocation3 + $0x3a0] ss:$16 sps:$4 sm:$0xff]  }
 0x3c2   :  { %3428 = vmatpush1.bf16.msra.mxu0 %v5034_v26  ;;  %v5066_v43 = vld [vmem:[#allocation3 + $0x184] ss:$16 sps:$4 sm:$0xff]   ;;  %v5070_v57 = vld [vmem:[#allocation3 + $0x180] ss:$16 sps:$4 sm:$0xff]   ;;  %v6155_v26 = vpack.c.bf16 %v1841_v8, %v1841_v8 }
 0x3c3   :  { %3469 = vmatpush1.bf16.msra.mxu1 %v5035_v59  ;;  %3429 = vmatprep.subr.bf16.mxu0 %v5036_v30  ;;  %v5068_v9 = vld [vmem:[#allocation3 + $0x384] ss:$16 sps:$4 sm:$0xff]   ;;  %v5071_v42 = vld [vmem:[#allocation3 + $0x380] ss:$16 sps:$4 sm:$0xff]   ;;  %v6157_v59 = vpack.c.bf16 %v1842_v52, %v1842_v52 }
 0x3c4   :  { %3470 = vmatprep.subr.bf16.mxu1 %v5038_v61  ;;  %v5072_v62 = vld [vmem:[#allocation3 + $0x164] ss:$16 sps:$4 sm:$0xff]   ;;  %v5076_v22 = vld [vmem:[#allocation3 + $0x160] ss:$16 sps:$4 sm:$0xff]  }
 0x3c5   :  { %v5074_v17 = vld [vmem:[#allocation3 + $0x364] ss:$16 sps:$4 sm:$0xff]   ;;  %v5077_v32 = vld [vmem:[#allocation3 + $0x360] ss:$16 sps:$4 sm:$0xff]  }
 0x3c6   :  { %3430 = vmatpush1.bf16.msra.mxu0 %v5040_v31  ;;  %v5078_v63 = vld [vmem:[#allocation3 + $0x144] ss:$16 sps:$4 sm:$0xff]   ;;  %v5082_v55 = vld [vmem:[#allocation3 + $0x140] ss:$16 sps:$4 sm:$0xff]  }
 0x3c7   :  { %3471 = vmatpush1.bf16.msra.mxu1 %v5041_v35  ;;  %3431 = vmatprep.subr.bf16.mxu0 %v5042_v10  ;;  %v5080_v45 = vld [vmem:[#allocation3 + $0x344] ss:$16 sps:$4 sm:$0xff]   ;;  %v5083_v29 = vld [vmem:[#allocation3 + $0x340] ss:$16 sps:$4 sm:$0xff]  }
 0x3c8   :  { %3472 = vmatprep.subr.bf16.mxu1 %v5044_v44  ;;  %v5084_v28 = vld [vmem:[#allocation3 + $0x124] ss:$16 sps:$4 sm:$0xff]   ;;  %v5088_v47 = vld [vmem:[#allocation3 + $0x120] ss:$16 sps:$4 sm:$0xff]  }
 0x3c9   :  { %v5086_v56 = vld [vmem:[#allocation3 + $0x324] ss:$16 sps:$4 sm:$0xff]   ;;  %v5089_v41 = vld [vmem:[#allocation3 + $0x320] ss:$16 sps:$4 sm:$0xff]  }
 0x3ca   :  { %3432 = vmatpush1.bf16.msra.mxu0 %v5046_v36  ;;  %v5090_v4 = vld [vmem:[#allocation3 + $0x104] ss:$16 sps:$4 sm:$0xff]   ;;  %v5094_v7 = vld [vmem:[#allocation3 + $0x100] ss:$16 sps:$4 sm:$0xff]  }
 0x3cb   :  { %3473 = vmatpush1.bf16.msra.mxu1 %v5047_v5  ;;  %3433 = vmatprep.subr.bf16.mxu0 %v5048_v46  ;;  %v5092_v18 = vld [vmem:[#allocation3 + $0x304] ss:$16 sps:$4 sm:$0xff]   ;;  %v5095_v24 = vld [vmem:[#allocation3 + $0x300] ss:$16 sps:$4 sm:$0xff]  }
 0x3cc   :  { %3474 = vmatprep.subr.bf16.mxu1 %v5050_v6  ;;  %v5098_v50 = vld [vmem:[#allocation3 + $0x4e4] ss:$16 sps:$4 sm:$0xff]   ;;  %v5096_v13 = vld [vmem:[#allocation3 + $0x4e0] ss:$16 sps:$4 sm:$0xff]  }
 0x3cd   :  { %v5101_v38 = vld [vmem:[#allocation3 + $0x6e4] ss:$16 sps:$4 sm:$0xff]   ;;  %v5099_v53 = vld [vmem:[#allocation3 + $0x6e0] ss:$16 sps:$4 sm:$0xff]  }
 0x3ce   :  { %3434 = vmatpush2.bf16.msra.mxu0 %v5052_v11  ;;  %v5104_v3 = vld [vmem:[#allocation3 + $0x4c4] ss:$16 sps:$4 sm:$0xff]   ;;  %v5102_v37 = vld [vmem:[#allocation3 + $0x4c0] ss:$16 sps:$4 sm:$0xff]  }
 0x3cf   :  { %3475 = vmatpush2.bf16.msra.mxu1 %v5053_v2  ;;  %3435 = vmatprep.subr.bf16.mxu0 %v5054_v21  ;;  %v5107_v58 = vld [vmem:[#allocation3 + $0x6c4] ss:$16 sps:$4 sm:$0xff]   ;;  %v5105_v30 = vld [vmem:[#allocation3 + $0x6c0] ss:$16 sps:$4 sm:$0xff]  }
 0x3d0   :  { %3476 = vmatprep.subr.bf16.mxu1 %v5056_v54  ;;  %v5110_v48 = vld [vmem:[#allocation3 + $0x4a4] ss:$16 sps:$4 sm:$0xff]   ;;  %v5108_v31 = vld [vmem:[#allocation3 + $0x4a0] ss:$16 sps:$4 sm:$0xff]  }
 0x3d1   :  { %v5113_v61 = vld [vmem:[#allocation3 + $0x6a4] ss:$16 sps:$4 sm:$0xff]   ;;  %v5111_v35 = vld [vmem:[#allocation3 + $0x6a0] ss:$16 sps:$4 sm:$0xff]  }
 0x3d2   :  { %3436 = vmatpush2.bf16.msra.mxu0 %v5058_v33  ;;  %v5116_v10 = vld [vmem:[#allocation3 + $0x484] ss:$16 sps:$4 sm:$0xff]   ;;  %v5114_v36 = vld [vmem:[#allocation3 + $0x480] ss:$16 sps:$4 sm:$0xff]  }
 0x3d3   :  { %3477 = vmatpush2.bf16.msra.mxu1 %v5059_v15  ;;  %3437 = vmatprep.subr.bf16.mxu0 %v5060_v34  ;;  %v5119_v44 = vld [vmem:[#allocation3 + $0x684] ss:$16 sps:$4 sm:$0xff]   ;;  %v5117_v5 = vld [vmem:[#allocation3 + $0x680] ss:$16 sps:$4 sm:$0xff]  }
 0x3d4   :  { %3478 = vmatprep.subr.bf16.mxu1 %v5062_v49  ;;  %v5122_v46 = vld [vmem:[#allocation3 + $0x464] ss:$16 sps:$4 sm:$0xff]   ;;  %v5120_v11 = vld [vmem:[#allocation3 + $0x460] ss:$16 sps:$4 sm:$0xff]  }
 0x3d5   :  { %v5125_v6 = vld [vmem:[#allocation3 + $0x664] ss:$16 sps:$4 sm:$0xff]   ;;  %v5123_v2 = vld [vmem:[#allocation3 + $0x660] ss:$16 sps:$4 sm:$0xff]  }
 0x3d6   :  { %3438 = vmatpush2.bf16.msra.mxu0 %v5064_v1  ;;  %v5128_v21 = vld [vmem:[#allocation3 + $0x444] ss:$16 sps:$4 sm:$0xff]   ;;  %v5126_v33 = vld [vmem:[#allocation3 + $0x440] ss:$16 sps:$4 sm:$0xff]  }
 0x3d7   :  { %3479 = vmatpush2.bf16.msra.mxu1 %v5065_v27  ;;  %3439 = vmatprep.subr.bf16.mxu0 %v5066_v43  ;;  %v5131_v54 = vld [vmem:[#allocation3 + $0x644] ss:$16 sps:$4 sm:$0xff]   ;;  %v5129_v15 = vld [vmem:[#allocation3 + $0x640] ss:$16 sps:$4 sm:$0xff]  }
 0x3d8   :  { %3480 = vmatprep.subr.bf16.mxu1 %v5068_v9  ;;  %v5134_v34 = vld [vmem:[#allocation3 + $0x424] ss:$16 sps:$4 sm:$0xff]   ;;  %v5132_v1 = vld [vmem:[#allocation3 + $0x420] ss:$16 sps:$4 sm:$0xff]  }
 0x3d9   :  { %v5137_v49 = vld [vmem:[#allocation3 + $0x624] ss:$16 sps:$4 sm:$0xff]   ;;  %v5135_v27 = vld [vmem:[#allocation3 + $0x620] ss:$16 sps:$4 sm:$0xff]  }
 0x3da   :  { %3440 = vmatpush2.bf16.msra.mxu0 %v5070_v57  ;;  %v5140_v43 = vld [vmem:[#allocation3 + $0x404] ss:$16 sps:$4 sm:$0xff]   ;;  %v5138_v57 = vld [vmem:[#allocation3 + $0x400] ss:$16 sps:$4 sm:$0xff]  }
 0x3db   :  { %3481 = vmatpush2.bf16.msra.mxu1 %v5071_v42  ;;  %3441 = vmatprep.subr.bf16.mxu0 %v5072_v62  ;;  %v5143_v9 = vld [vmem:[#allocation3 + $0x604] ss:$16 sps:$4 sm:$0xff]   ;;  %v5141_v42 = vld [vmem:[#allocation3 + $0x600] ss:$16 sps:$4 sm:$0xff]  }
 0x3dc   :  { %3482 = vmatprep.subr.bf16.mxu1 %v5074_v17  ;;  %v5146_v62 = vld [vmem:[#allocation3 + $0x5e4] ss:$16 sps:$4 sm:$0xff]   ;;  %v5156_v40 = vld [vmem:[#allocation3 + $0x5a0] ss:$16 sps:$4 sm:$0xff]  }
 0x3dd   :  { %v5149_v17 = vld [vmem:[#allocation3 + $0x7e4] ss:$16 sps:$4 sm:$0xff]   ;;  %v5171_v8 = vld [vmem:[#allocation3 + $0x760] ss:$16 sps:$4 sm:$0xff]  }
 0x3de   :  { %3442 = vmatpush2.bf16.msra.mxu0 %v5076_v22  ;;  %v5144_v22 = vld [vmem:[#allocation3 + $0x5e0] ss:$16 sps:$4 sm:$0xff]   ;;  %v5176_v52 = vld [vmem:[#allocation3 + $0x544] ss:$16 sps:$4 sm:$0xff]  }
 0x3df   :  { %3483 = vmatpush2.bf16.msra.mxu1 %v5077_v32  ;;  %3443 = vmatprep.subr.bf16.mxu0 %v5078_v63  ;;  %v5147_v32 = vld [vmem:[#allocation3 + $0x7e0] ss:$16 sps:$4 sm:$0xff]   ;;  %v5152_v63 = vld [vmem:[#allocation3 + $0x5c4] ss:$16 sps:$4 sm:$0xff]  }
 0x3e0   :  { %3484 = vmatprep.subr.bf16.mxu1 %v5080_v45  ;;  %v5155_v45 = vld [vmem:[#allocation3 + $0x7c4] ss:$16 sps:$4 sm:$0xff]  }
 0x3e2   :  { %3444 = vmatpush2.bf16.msra.mxu0 %v5082_v55  ;;  %v5150_v55 = vld [vmem:[#allocation3 + $0x5c0] ss:$16 sps:$4 sm:$0xff]  }
 0x3e3   :  { %3485 = vmatpush2.bf16.msra.mxu1 %v5083_v29  ;;  %3445 = vmatprep.subr.bf16.mxu0 %v5084_v28  ;;  %v5153_v29 = vld [vmem:[#allocation3 + $0x7c0] ss:$16 sps:$4 sm:$0xff]   ;;  %v5158_v28 = vld [vmem:[#allocation3 + $0x5a4] ss:$16 sps:$4 sm:$0xff]  }
 0x3e4   :  { %3486 = vmatprep.subr.bf16.mxu1 %v5086_v56  ;;  %v5161_v56 = vld [vmem:[#allocation3 + $0x7a4] ss:$16 sps:$4 sm:$0xff]  }
 0x3e6   :  { %3446 = vmatpush2.bf16.msra.mxu0 %v5088_v47  ;;  %v5159_v47 = vld [vmem:[#allocation3 + $0x7a0] ss:$16 sps:$4 sm:$0xff]  }
 0x3e7   :  { %3487 = vmatpush2.bf16.msra.mxu1 %v5089_v41  ;;  %3447 = vmatprep.subr.bf16.mxu0 %v5090_v4  ;;  %v5164_v41 = vld [vmem:[#allocation3 + $0x584] ss:$16 sps:$4 sm:$0xff]  }
 0x3e8   :  { %3488 = vmatprep.subr.bf16.mxu1 %v5092_v18  ;;  %v5167_v4 = vld [vmem:[#allocation3 + $0x784] ss:$16 sps:$4 sm:$0xff]   ;;  %v5162_v18 = vld [vmem:[#allocation3 + $0x580] ss:$16 sps:$4 sm:$0xff]  }
 0x3ea   :  { %3448 = vmatpush2.bf16.msra.mxu0 %v5094_v7  ;;  %v5165_v7 = vld [vmem:[#allocation3 + $0x780] ss:$16 sps:$4 sm:$0xff]  }
 0x3eb   :  { %3489 = vmatpush2.bf16.msra.mxu1 %v5095_v24  ;;  %3499 = vmatprep.subr.bf16.mxu0 %v5098_v50  ;;  %v5170_v24 = vld [vmem:[#allocation3 + $0x564] ss:$16 sps:$4 sm:$0xff]  }
 0x3ec   :  { %3540 = vmatprep.subr.bf16.mxu1 %v5101_v38  ;;  %v5173_v50 = vld [vmem:[#allocation3 + $0x764] ss:$16 sps:$4 sm:$0xff]   ;;  %v5168_v38 = vld [vmem:[#allocation3 + $0x560] ss:$16 sps:$4 sm:$0xff]  }
 0x3ed   :  { %3450 = vmatmul.mubr.bf16.vlgmr.msra.gmra.mxu0 %v6149_v25 }
 0x3ee   :  { %3491 = vmatmul.mubr.bf16.vlgmr.msra.gmra.mxu1 %v6153_v12  ;;  %3500 = vmatpush1.bf16.msra.mxu0 %v5096_v13  ;;  %v5179_v13 = vld [vmem:[#allocation3 + $0x744] ss:$16 sps:$4 sm:$0xff]  }
 0x3ef   :  { %3541 = vmatpush1.bf16.msra.mxu1 %v5099_v53  ;;  %3501 = vmatprep.subr.bf16.mxu0 %v5104_v3  ;;  %v5174_v53 = vld [vmem:[#allocation3 + $0x540] ss:$16 sps:$4 sm:$0xff]  }
 0x3f0   :  { %3542 = vmatprep.subr.bf16.mxu1 %v5107_v58  ;;  %3531 = vmatprep.mubr.bf16.mxu0 %v6155_v26  ;;  %v5177_v3 = vld [vmem:[#allocation3 + $0x740] ss:$16 sps:$4 sm:$0xff]   ;;  %v5182_v58 = vld [vmem:[#allocation3 + $0x524] ss:$16 sps:$4 sm:$0xff]  }
 0x3f1   :  { %3572 = vmatprep.mubr.bf16.mxu1 %v6157_v59 }
 0x3f2   :  { %3502 = vmatpush1.bf16.msra.mxu0 %v5102_v37  ;;  %v5185_v37 = vld [vmem:[#allocation3 + $0x724] ss:$16 sps:$4 sm:$0xff]  }
 0x3f3   :  { %3543 = vmatpush1.bf16.msra.mxu1 %v5105_v30  ;;  %3503 = vmatprep.subr.bf16.mxu0 %v5110_v48  ;;  %v5180_v30 = vld [vmem:[#allocation3 + $0x520] ss:$16 sps:$4 sm:$0xff]  }
 0x3f4   :  { %3544 = vmatprep.subr.bf16.mxu1 %v5113_v61  ;;  %v5183_v48 = vld [vmem:[#allocation3 + $0x720] ss:$16 sps:$4 sm:$0xff]   ;;  %v5188_v61 = vld [vmem:[#allocation3 + $0x504] ss:$16 sps:$4 sm:$0xff]  }
 0x3f6   :  { %3504 = vmatpush1.bf16.msra.mxu0 %v5108_v31  ;;  %v5191_v31 = vld [vmem:[#allocation3 + $0x704] ss:$16 sps:$4 sm:$0xff]  }
 0x3f7   :  { %3545 = vmatpush1.bf16.msra.mxu1 %v5111_v35  ;;  %3505 = vmatprep.subr.bf16.mxu0 %v5116_v10  ;;  %v5186_v35 = vld [vmem:[#allocation3 + $0x500] ss:$16 sps:$4 sm:$0xff]  }
 0x3f8   :  { %3546 = vmatprep.subr.bf16.mxu1 %v5119_v44  ;;  %v5189_v10 = vld [vmem:[#allocation3 + $0x700] ss:$16 sps:$4 sm:$0xff]   ;;  %v5194_v44 = vld [vmem:[#allocation3 + $0xec] ss:$16 sps:$4 sm:$0xff]  }
 0x3fa   :  { %3506 = vmatpush1.bf16.msra.mxu0 %v5114_v36  ;;  %v5197_v36 = vld [vmem:[#allocation3 + $0x2ec] ss:$16 sps:$4 sm:$0xff]  }
 0x3fb   :  { %3547 = vmatpush1.bf16.msra.mxu1 %v5117_v5  ;;  %3507 = vmatprep.subr.bf16.mxu0 %v5122_v46  ;;  %v6165_v5 = vpack.c.bf16 %v6138_v23, %v6138_v23  ;;  %v6169_v46 = vpack.c.bf16 %v6141_v0, %v6141_v0  ;;  %v5206_v23 = vld [vmem:[#allocation3 + $0xac] ss:$16 sps:$4 sm:$0xff]  }
 0x3fc   :  { %3548 = vmatprep.subr.bf16.mxu1 %v5125_v6  ;;  %v5192_v6 = vld [vmem:[#allocation3 + $0xe8] ss:$16 sps:$4 sm:$0xff]   ;;  %v5209_v0 = vld [vmem:[#allocation3 + $0x2ac] ss:$16 sps:$4 sm:$0xff]  }
 0x3fe   :  { %3508 = vmatpush1.bf16.msra.mxu0 %v5120_v11  ;;  %v5195_v11 = vld [vmem:[#allocation3 + $0x2e8] ss:$16 sps:$4 sm:$0xff]  }
 0x3ff   :  { %3549 = vmatpush1.bf16.msra.mxu1 %v5123_v2  ;;  %3509 = vmatprep.subr.bf16.mxu0 %v5128_v21  ;;  %v5200_v2 = vld [vmem:[#allocation3 + $0xcc] ss:$16 sps:$4 sm:$0xff]  }
 0x400   :  { %3550 = vmatprep.subr.bf16.mxu1 %v5131_v54  ;;  %v5203_v21 = vld [vmem:[#allocation3 + $0x2cc] ss:$16 sps:$4 sm:$0xff]   ;;  %v5198_v54 = vld [vmem:[#allocation3 + $0xc8] ss:$16 sps:$4 sm:$0xff]  }
 0x402   :  { %3510 = vmatpush1.bf16.msra.mxu0 %v5126_v33  ;;  %v5201_v33 = vld [vmem:[#allocation3 + $0x2c8] ss:$16 sps:$4 sm:$0xff]  }
 0x403   :  { %3551 = vmatpush1.bf16.msra.mxu1 %v5129_v15  ;;  %3511 = vmatprep.subr.bf16.mxu0 %v5134_v34  ;;  %v5204_v15 = vld [vmem:[#allocation3 + $0xa8] ss:$16 sps:$4 sm:$0xff]  }
 0x404   :  { %3552 = vmatprep.subr.bf16.mxu1 %v5137_v49  ;;  %v5207_v34 = vld [vmem:[#allocation3 + $0x2a8] ss:$16 sps:$4 sm:$0xff]   ;;  %v5212_v49 = vld [vmem:[#allocation3 + $0x8c] ss:$16 sps:$4 sm:$0xff]  }
 0x406   :  { %3512 = vmatpush1.bf16.msra.mxu0 %v5132_v1  ;;  %v5215_v1 = vld [vmem:[#allocation3 + $0x28c] ss:$16 sps:$4 sm:$0xff]  }
 0x407   :  { %3553 = vmatpush1.bf16.msra.mxu1 %v5135_v27  ;;  %3513 = vmatprep.subr.bf16.mxu0 %v5140_v43  ;;  %v5210_v27 = vld [vmem:[#allocation3 + $0x88] ss:$16 sps:$4 sm:$0xff]  }
 0x408   :  { %3554 = vmatprep.subr.bf16.mxu1 %v5143_v9  ;;  %v5213_v43 = vld [vmem:[#allocation3 + $0x288] ss:$16 sps:$4 sm:$0xff]   ;;  %v5218_v9 = vld [vmem:[#allocation3 + $0x6c] ss:$16 sps:$4 sm:$0xff]  }
 0x40a   :  { %3514 = vmatpush1.bf16.msra.mxu0 %v5138_v57  ;;  %v5221_v57 = vld [vmem:[#allocation3 + $0x26c] ss:$16 sps:$4 sm:$0xff]  }
 0x40b   :  { %3555 = vmatpush1.bf16.msra.mxu1 %v5141_v42  ;;  %3515 = vmatprep.subr.bf16.mxu0 %v5146_v62  ;;  %v5216_v42 = vld [vmem:[#allocation3 + $0x68] ss:$16 sps:$4 sm:$0xff]   ;;  %v5227_v62 = vld [vmem:[#allocation3 + $0x24c] ss:$16 sps:$4 sm:$0xff]  }
 0x40c   :  { %3556 = vmatprep.subr.bf16.mxu1 %v5149_v17  ;;  %v5222_v17 = vld [vmem:[#allocation3 + $0x48] ss:$16 sps:$4 sm:$0xff]  }
 0x40e   :  { %3516 = vmatpush2.bf16.msra.mxu0 %v5144_v22  ;;  %v5225_v22 = vld [vmem:[#allocation3 + $0x248] ss:$16 sps:$4 sm:$0xff]  }
 0x40f   :  { %3557 = vmatpush2.bf16.msra.mxu1 %v5147_v32  ;;  %3517 = vmatprep.subr.bf16.mxu0 %v5152_v63  ;;  %v5230_v32 = vld [vmem:[#allocation3 + $0x2c] ss:$16 sps:$4 sm:$0xff]  }
 0x410   :  { %3558 = vmatprep.subr.bf16.mxu1 %v5155_v45  ;;  %v5233_v63 = vld [vmem:[#allocation3 + $0x22c] ss:$16 sps:$4 sm:$0xff]   ;;  %v5228_v45 = vld [vmem:[#allocation3 + $0x28] ss:$16 sps:$4 sm:$0xff]  }
 0x412   :  { %3518 = vmatpush2.bf16.msra.mxu0 %v5150_v55  ;;  %v5231_v55 = vld [vmem:[#allocation3 + $0x228] ss:$16 sps:$4 sm:$0xff]  }
 0x413   :  { %3559 = vmatpush2.bf16.msra.mxu1 %v5153_v29  ;;  %3519 = vmatprep.subr.bf16.mxu0 %v5158_v28  ;;  %v5236_v29 = vld [vmem:[#allocation3 + $0xc] ss:$16 sps:$4 sm:$0xff]  }
 0x414   :  { %3560 = vmatprep.subr.bf16.mxu1 %v5161_v56  ;;  %v5239_v28 = vld [vmem:[#allocation3 + $0x20c] ss:$16 sps:$4 sm:$0xff]   ;;  %v5234_v56 = vld [vmem:[#allocation3 + $0x8] ss:$16 sps:$4 sm:$0xff]  }
 0x416   :  { %3520 = vmatpush2.bf16.msra.mxu0 %v5156_v40  ;;  %v5237_v40 = vld [vmem:[#allocation3 + $0x208] ss:$16 sps:$4 sm:$0xff]  }
 0x417   :  { %3561 = vmatpush2.bf16.msra.mxu1 %v5159_v47  ;;  %3521 = vmatprep.subr.bf16.mxu0 %v5164_v41  ;;  %v5242_v47 = vld [vmem:[#allocation3 + $0x1ec] ss:$16 sps:$4 sm:$0xff]  }
 0x418   :  { %3562 = vmatprep.subr.bf16.mxu1 %v5167_v4  ;;  %v5245_v41 = vld [vmem:[#allocation3 + $0x3ec] ss:$16 sps:$4 sm:$0xff]   ;;  %v5240_v4 = vld [vmem:[#allocation3 + $0x1e8] ss:$16 sps:$4 sm:$0xff]  }
 0x41a   :  { %3522 = vmatpush2.bf16.msra.mxu0 %v5162_v18  ;;  %v5243_v18 = vld [vmem:[#allocation3 + $0x3e8] ss:$16 sps:$4 sm:$0xff]  }
 0x41b   :  { %3563 = vmatpush2.bf16.msra.mxu1 %v5165_v7  ;;  %3523 = vmatprep.subr.bf16.mxu0 %v5170_v24  ;;  %v5248_v7 = vld [vmem:[#allocation3 + $0x1cc] ss:$16 sps:$4 sm:$0xff]  }
 0x41c   :  { %3564 = vmatprep.subr.bf16.mxu1 %v5173_v50  ;;  %v5251_v24 = vld [vmem:[#allocation3 + $0x3cc] ss:$16 sps:$4 sm:$0xff]   ;;  %v5246_v50 = vld [vmem:[#allocation3 + $0x1c8] ss:$16 sps:$4 sm:$0xff]  }
 0x41e   :  { %3524 = vmatpush2.bf16.msra.mxu0 %v5168_v38  ;;  %v5249_v38 = vld [vmem:[#allocation3 + $0x3c8] ss:$16 sps:$4 sm:$0xff]  }
 0x41f   :  { %3565 = vmatpush2.bf16.msra.mxu1 %v5171_v8  ;;  %3525 = vmatprep.subr.bf16.mxu0 %v5176_v52  ;;  %v5254_v8 = vld [vmem:[#allocation3 + $0x1ac] ss:$16 sps:$4 sm:$0xff]  }
 0x420   :  { %3566 = vmatprep.subr.bf16.mxu1 %v5179_v13  ;;  %v5257_v52 = vld [vmem:[#allocation3 + $0x3ac] ss:$16 sps:$4 sm:$0xff]   ;;  %v5252_v13 = vld [vmem:[#allocation3 + $0x1a8] ss:$16 sps:$4 sm:$0xff]  }
 0x422   :  { %3526 = vmatpush2.bf16.msra.mxu0 %v5174_v53  ;;  %v5255_v53 = vld [vmem:[#allocation3 + $0x3a8] ss:$16 sps:$4 sm:$0xff]  }
 0x423   :  { %3567 = vmatpush2.bf16.msra.mxu1 %v5177_v3  ;;  %3527 = vmatprep.subr.bf16.mxu0 %v5182_v58  ;;  %v5260_v3 = vld [vmem:[#allocation3 + $0x18c] ss:$16 sps:$4 sm:$0xff]  }
 0x424   :  { %3568 = vmatprep.subr.bf16.mxu1 %v5185_v37  ;;  %v5263_v58 = vld [vmem:[#allocation3 + $0x38c] ss:$16 sps:$4 sm:$0xff]   ;;  %v5258_v37 = vld [vmem:[#allocation3 + $0x188] ss:$16 sps:$4 sm:$0xff]  }
 0x426   :  { %3528 = vmatpush2.bf16.msra.mxu0 %v5180_v30  ;;  %v5261_v30 = vld [vmem:[#allocation3 + $0x388] ss:$16 sps:$4 sm:$0xff]  }
 0x427   :  { %3569 = vmatpush2.bf16.msra.mxu1 %v5183_v48  ;;  %3529 = vmatprep.subr.bf16.mxu0 %v5188_v61  ;;  %v5266_v48 = vld [vmem:[#allocation3 + $0x16c] ss:$16 sps:$4 sm:$0xff]  }
 0x428   :  { %3570 = vmatprep.subr.bf16.mxu1 %v5191_v31  ;;  %v5269_v61 = vld [vmem:[#allocation3 + $0x36c] ss:$16 sps:$4 sm:$0xff]   ;;  %v5264_v31 = vld [vmem:[#allocation3 + $0x168] ss:$16 sps:$4 sm:$0xff]  }
 0x42a   :  { %3530 = vmatpush2.bf16.msra.mxu0 %v5186_v35  ;;  %v5267_v35 = vld [vmem:[#allocation3 + $0x368] ss:$16 sps:$4 sm:$0xff]  }
 0x42b   :  { %3571 = vmatpush2.bf16.msra.mxu1 %v5189_v10  ;;  %3581 = vmatprep.subr.bf16.mxu0 %v5194_v44  ;;  %v5272_v10 = vld [vmem:[#allocation3 + $0x14c] ss:$16 sps:$4 sm:$0xff]  }
 0x42c   :  { %3622 = vmatprep.subr.bf16.mxu1 %v5197_v36  ;;  %v5275_v44 = vld [vmem:[#allocation3 + $0x34c] ss:$16 sps:$4 sm:$0xff]   ;;  %v5270_v36 = vld [vmem:[#allocation3 + $0x148] ss:$16 sps:$4 sm:$0xff]  }
 0x42d   :  { %3532 = vmatmul.mubr.bf16.vlgmr.msra.gmra.mxu0 %v6165_v5 }
 0x42e   :  { %3573 = vmatmul.mubr.bf16.vlgmr.msra.gmra.mxu1 %v6169_v46  ;;  %3582 = vmatpush1.bf16.msra.mxu0 %v5192_v6  ;;  %v5273_v6 = vld [vmem:[#allocation3 + $0x348] ss:$16 sps:$4 sm:$0xff]  }
 0x42f   :  { %3623 = vmatpush1.bf16.msra.mxu1 %v5195_v11  ;;  %3583 = vmatprep.subr.bf16.mxu0 %v5200_v2  ;;  %v5278_v11 = vld [vmem:[#allocation3 + $0x12c] ss:$16 sps:$4 sm:$0xff]  }
 0x430   :  { %3624 = vmatprep.subr.bf16.mxu1 %v5203_v21  ;;  %3613 = vmatprep.mubr.bf16.mxu0 %v6126_v51  ;;  %v5219_v51 = vld [vmem:[#allocation3 + $0x268] ss:$16 sps:$4 sm:$0xff]   ;;  %v5281_v2 = vld [vmem:[#allocation3 + $0x32c] ss:$16 sps:$4 sm:$0xff]  }
 0x431   :  { %3654 = vmatprep.mubr.bf16.mxu1 %v6131_v20  ;;  %v5224_v20 = vld [vmem:[#allocation3 + $0x4c] ss:$16 sps:$4 sm:$0xff]   ;;  %v5276_v21 = vld [vmem:[#allocation3 + $0x128] ss:$16 sps:$4 sm:$0xff]  }
 0x432   :  { %3584 = vmatpush1.bf16.msra.mxu0 %v5198_v54  ;;  %v5279_v54 = vld [vmem:[#allocation3 + $0x328] ss:$16 sps:$4 sm:$0xff]  }
 0x433   :  { %3625 = vmatpush1.bf16.msra.mxu1 %v5201_v33  ;;  %3585 = vmatprep.subr.bf16.mxu0 %v5206_v23  ;;  %v5284_v33 = vld [vmem:[#allocation3 + $0x10c] ss:$16 sps:$4 sm:$0xff]  }
 0x434   :  { %3626 = vmatprep.subr.bf16.mxu1 %v5209_v0  ;;  %v5287_v23 = vld [vmem:[#allocation3 + $0x30c] ss:$16 sps:$4 sm:$0xff]   ;;  %v5282_v0 = vld [vmem:[#allocation3 + $0x108] ss:$16 sps:$4 sm:$0xff]  }
 0x436   :  { %3586 = vmatpush1.bf16.msra.mxu0 %v5204_v15  ;;  %v5285_v15 = vld [vmem:[#allocation3 + $0x308] ss:$16 sps:$4 sm:$0xff]  }
 0x437   :  { %3627 = vmatpush1.bf16.msra.mxu1 %v5207_v34  ;;  %3587 = vmatprep.subr.bf16.mxu0 %v5212_v49  ;;  %v5290_v34 = vld [vmem:[#allocation3 + $0x4ec] ss:$16 sps:$4 sm:$0xff]  }
 0x438   :  { %3628 = vmatprep.subr.bf16.mxu1 %v5215_v1  ;;  %v5293_v49 = vld [vmem:[#allocation3 + $0x6ec] ss:$16 sps:$4 sm:$0xff]   ;;  %v5288_v1 = vld [vmem:[#allocation3 + $0x4e8] ss:$16 sps:$4 sm:$0xff]  }
 0x43a   :  { %3588 = vmatpush1.bf16.msra.mxu0 %v5210_v27  ;;  %v5291_v27 = vld [vmem:[#allocation3 + $0x6e8] ss:$16 sps:$4 sm:$0xff]  }
 0x43b   :  { %3629 = vmatpush1.bf16.msra.mxu1 %v5213_v43  ;;  %3589 = vmatprep.subr.bf16.mxu0 %v5218_v9  ;;  %v5296_v43 = vld [vmem:[#allocation3 + $0x4cc] ss:$16 sps:$4 sm:$0xff]  }
 0x43c   :  { %3630 = vmatprep.subr.bf16.mxu1 %v5221_v57  ;;  %v5299_v9 = vld [vmem:[#allocation3 + $0x6cc] ss:$16 sps:$4 sm:$0xff]   ;;  %v5294_v57 = vld [vmem:[#allocation3 + $0x4c8] ss:$16 sps:$4 sm:$0xff]  }
 0x43e   :  { %3590 = vmatpush1.bf16.msra.mxu0 %v5216_v42  ;;  %v5297_v42 = vld [vmem:[#allocation3 + $0x6c8] ss:$16 sps:$4 sm:$0xff]  }
 0x43f   :  { %3631 = vmatpush1.bf16.msra.mxu1 %v5219_v51  ;;  %3591 = vmatprep.subr.bf16.mxu0 %v5224_v20  ;;  %v5302_v51 = vld [vmem:[#allocation3 + $0x4ac] ss:$16 sps:$4 sm:$0xff]  }
 0x440   :  { %3632 = vmatprep.subr.bf16.mxu1 %v5227_v62  ;;  %v5305_v20 = vld [vmem:[#allocation3 + $0x6ac] ss:$16 sps:$4 sm:$0xff]   ;;  %v5300_v62 = vld [vmem:[#allocation3 + $0x4a8] ss:$16 sps:$4 sm:$0xff]  }
 0x442   :  { %3592 = vmatpush1.bf16.msra.mxu0 %v5222_v17  ;;  %v5303_v17 = vld [vmem:[#allocation3 + $0x6a8] ss:$16 sps:$4 sm:$0xff]  }
 0x443   :  { %3633 = vmatpush1.bf16.msra.mxu1 %v5225_v22  ;;  %3593 = vmatprep.subr.bf16.mxu0 %v5230_v32  ;;  %v5308_v22 = vld [vmem:[#allocation3 + $0x48c] ss:$16 sps:$4 sm:$0xff]   ;;  %v5306_v32 = vld [vmem:[#allocation3 + $0x488] ss:$16 sps:$4 sm:$0xff]  }
 0x444   :  { %3634 = vmatprep.subr.bf16.mxu1 %v5233_v63  ;;  %v5314_v63 = vld [vmem:[#allocation3 + $0x46c] ss:$16 sps:$4 sm:$0xff]  }
 0x446   :  { %3594 = vmatpush1.bf16.msra.mxu0 %v5228_v45  ;;  %v5317_v45 = vld [vmem:[#allocation3 + $0x66c] ss:$16 sps:$4 sm:$0xff]  }
 0x447   :  { %3635 = vmatpush1.bf16.msra.mxu1 %v5231_v55  ;;  %3595 = vmatprep.subr.bf16.mxu0 %v5236_v29  ;;  %v5312_v55 = vld [vmem:[#allocation3 + $0x468] ss:$16 sps:$4 sm:$0xff]  }
 0x448   :  { %3636 = vmatprep.subr.bf16.mxu1 %v5239_v28  ;;  %v5315_v29 = vld [vmem:[#allocation3 + $0x668] ss:$16 sps:$4 sm:$0xff]   ;;  %v5320_v28 = vld [vmem:[#allocation3 + $0x44c] ss:$16 sps:$4 sm:$0xff]  }
 0x44a   :  { %3596 = vmatpush1.bf16.msra.mxu0 %v5234_v56  ;;  %v5321_v56 = vld [vmem:[#allocation3 + $0x648] ss:$16 sps:$4 sm:$0xff]  }
 0x44b   :  { %3637 = vmatpush1.bf16.msra.mxu1 %v5237_v40  ;;  %3597 = vmatprep.subr.bf16.mxu0 %v5242_v47  ;;  %v5326_v40 = vld [vmem:[#allocation3 + $0x42c] ss:$16 sps:$4 sm:$0xff]  }
 0x44c   :  { %3638 = vmatprep.subr.bf16.mxu1 %v5245_v41  ;;  %v5329_v47 = vld [vmem:[#allocation3 + $0x62c] ss:$16 sps:$4 sm:$0xff]   ;;  %v5324_v41 = vld [vmem:[#allocation3 + $0x428] ss:$16 sps:$4 sm:$0xff]  }
 0x44e   :  { %3598 = vmatpush2.bf16.msra.mxu0 %v5240_v4  ;;  %v5327_v4 = vld [vmem:[#allocation3 + $0x628] ss:$16 sps:$4 sm:$0xff]  }
 0x44f   :  { %3639 = vmatpush2.bf16.msra.mxu1 %v5243_v18  ;;  %3599 = vmatprep.subr.bf16.mxu0 %v5248_v7  ;;  %v5332_v18 = vld [vmem:[#allocation3 + $0x40c] ss:$16 sps:$4 sm:$0xff]  }
 0x450   :  { %3640 = vmatprep.subr.bf16.mxu1 %v5251_v24  ;;  %v5335_v7 = vld [vmem:[#allocation3 + $0x60c] ss:$16 sps:$4 sm:$0xff]   ;;  %v5330_v24 = vld [vmem:[#allocation3 + $0x408] ss:$16 sps:$4 sm:$0xff]  }
 0x452   :  { %3600 = vmatpush2.bf16.msra.mxu0 %v5246_v50  ;;  %v5333_v50 = vld [vmem:[#allocation3 + $0x608] ss:$16 sps:$4 sm:$0xff]  }
 0x453   :  { %3641 = vmatpush2.bf16.msra.mxu1 %v5249_v38  ;;  %3601 = vmatprep.subr.bf16.mxu0 %v5254_v8  ;;  %v5338_v38 = vld [vmem:[#allocation3 + $0x5ec] ss:$16 sps:$4 sm:$0xff]  }
 0x454   :  { %3642 = vmatprep.subr.bf16.mxu1 %v5257_v52  ;;  %v5341_v8 = vld [vmem:[#allocation3 + $0x7ec] ss:$16 sps:$4 sm:$0xff]   ;;  %v5336_v52 = vld [vmem:[#allocation3 + $0x5e8] ss:$16 sps:$4 sm:$0xff]  }
 0x456   :  { %3602 = vmatpush2.bf16.msra.mxu0 %v5252_v13  ;;  %v5339_v13 = vld [vmem:[#allocation3 + $0x7e8] ss:$16 sps:$4 sm:$0xff]  }
 0x457   :  { %3643 = vmatpush2.bf16.msra.mxu1 %v5255_v53  ;;  %3603 = vmatprep.subr.bf16.mxu0 %v5260_v3  ;;  %v5344_v53 = vld [vmem:[#allocation3 + $0x5cc] ss:$16 sps:$4 sm:$0xff]  }
 0x458   :  { %3644 = vmatprep.subr.bf16.mxu1 %v5263_v58  ;;  %v5347_v3 = vld [vmem:[#allocation3 + $0x7cc] ss:$16 sps:$4 sm:$0xff]   ;;  %v5342_v58 = vld [vmem:[#allocation3 + $0x5c8] ss:$16 sps:$4 sm:$0xff]  }
 0x45a   :  { %3604 = vmatpush2.bf16.msra.mxu0 %v5258_v37  ;;  %v5345_v37 = vld [vmem:[#allocation3 + $0x7c8] ss:$16 sps:$4 sm:$0xff]  }
 0x45b   :  { %3645 = vmatpush2.bf16.msra.mxu1 %v5261_v30  ;;  %3605 = vmatprep.subr.bf16.mxu0 %v5266_v48  ;;  %v5350_v30 = vld [vmem:[#allocation3 + $0x5ac] ss:$16 sps:$4 sm:$0xff]  }
 0x45c   :  { %3646 = vmatprep.subr.bf16.mxu1 %v5269_v61  ;;  %v5353_v48 = vld [vmem:[#allocation3 + $0x7ac] ss:$16 sps:$4 sm:$0xff]   ;;  %v5348_v61 = vld [vmem:[#allocation3 + $0x5a8] ss:$16 sps:$4 sm:$0xff]  }
 0x45e   :  { %3606 = vmatpush2.bf16.msra.mxu0 %v5264_v31  ;;  %v5351_v31 = vld [vmem:[#allocation3 + $0x7a8] ss:$16 sps:$4 sm:$0xff]  }
 0x45f   :  { %3647 = vmatpush2.bf16.msra.mxu1 %v5267_v35  ;;  %3607 = vmatprep.subr.bf16.mxu0 %v5272_v10  ;;  %v5356_v35 = vld [vmem:[#allocation3 + $0x58c] ss:$16 sps:$4 sm:$0xff]  }
 0x460   :  { %3648 = vmatprep.subr.bf16.mxu1 %v5275_v44  ;;  %v5359_v10 = vld [vmem:[#allocation3 + $0x78c] ss:$16 sps:$4 sm:$0xff]   ;;  %v5354_v44 = vld [vmem:[#allocation3 + $0x588] ss:$16 sps:$4 sm:$0xff]  }
 0x462   :  { %3608 = vmatpush2.bf16.msra.mxu0 %v5270_v36  ;;  %v5357_v36 = vld [vmem:[#allocation3 + $0x788] ss:$16 sps:$4 sm:$0xff]  }
 0x463   :  { %3649 = vmatpush2.bf16.msra.mxu1 %v5273_v6  ;;  %3609 = vmatprep.subr.bf16.mxu0 %v5278_v11  ;;  %v5362_v6 = vld [vmem:[#allocation3 + $0x56c] ss:$16 sps:$4 sm:$0xff]  }
 0x464   :  { %3650 = vmatprep.subr.bf16.mxu1 %v5281_v2  ;;  %v5365_v11 = vld [vmem:[#allocation3 + $0x76c] ss:$16 sps:$4 sm:$0xff]   ;;  %v5360_v2 = vld [vmem:[#allocation3 + $0x568] ss:$16 sps:$4 sm:$0xff]  }
 0x466   :  { %3610 = vmatpush2.bf16.msra.mxu0 %v5276_v21  ;;  %v5363_v21 = vld [vmem:[#allocation3 + $0x768] ss:$16 sps:$4 sm:$0xff]  }
 0x467   :  { %3651 = vmatpush2.bf16.msra.mxu1 %v5279_v54  ;;  %3611 = vmatprep.subr.bf16.mxu0 %v5284_v33  ;;  %v5368_v54 = vld [vmem:[#allocation3 + $0x54c] ss:$16 sps:$4 sm:$0xff]  }
 0x468   :  { %3652 = vmatprep.subr.bf16.mxu1 %v5287_v23  ;;  %v5371_v33 = vld [vmem:[#allocation3 + $0x74c] ss:$16 sps:$4 sm:$0xff]   ;;  %v5366_v23 = vld [vmem:[#allocation3 + $0x548] ss:$16 sps:$4 sm:$0xff]  }
 0x46a   :  { %3612 = vmatpush2.bf16.msra.mxu0 %v5282_v0  ;;  %v5369_v0 = vld [vmem:[#allocation3 + $0x748] ss:$16 sps:$4 sm:$0xff]  }
 0x46b   :  { %3653 = vmatpush2.bf16.msra.mxu1 %v5285_v15  ;;  %3663 = vmatprep.subr.bf16.mxu0 %v5290_v34  ;;  %v5374_v15 = vld [vmem:[#allocation3 + $0x52c] ss:$16 sps:$4 sm:$0xff]  }
 0x46c   :  { %3704 = vmatprep.subr.bf16.mxu1 %v5293_v49  ;;  %v5377_v34 = vld [vmem:[#allocation3 + $0x72c] ss:$16 sps:$4 sm:$0xff]   ;;  %v5372_v49 = vld [vmem:[#allocation3 + $0x528] ss:$16 sps:$4 sm:$0xff]  }
 0x46d   :  { %3614 = vmatmul.mubr.bf16.vlgmr.msra.gmra.mxu0 %v6149_v25  ;;  %v5311_v25 = vld [vmem:[#allocation3 + $0x68c] ss:$16 sps:$4 sm:$0xff]  }
 0x46e   :  { %3655 = vmatmul.mubr.bf16.vlgmr.msra.gmra.mxu1 %v6153_v12  ;;  %3664 = vmatpush1.bf16.msra.mxu0 %v5288_v1  ;;  %v5309_v12 = vld [vmem:[#allocation3 + $0x688] ss:$16 sps:$4 sm:$0xff]  }
 0x46f   :  { %3705 = vmatpush1.bf16.msra.mxu1 %v5291_v27  ;;  %3665 = vmatprep.subr.bf16.mxu0 %v5296_v43  ;;  %v5375_v1 = vld [vmem:[#allocation3 + $0x728] ss:$16 sps:$4 sm:$0xff]   ;;  %v5380_v27 = vld [vmem:[#allocation3 + $0x50c] ss:$16 sps:$4 sm:$0xff]  }
 0x470   :  { %3706 = vmatprep.subr.bf16.mxu1 %v5299_v9  ;;  %3695 = vmatprep.mubr.bf16.mxu0 %v6155_v26  ;;  %v5323_v26 = vld [vmem:[#allocation3 + $0x64c] ss:$16 sps:$4 sm:$0xff]   ;;  %v5378_v9 = vld [vmem:[#allocation3 + $0x508] ss:$16 sps:$4 sm:$0xff]  }
 0x471   :  { %3736 = vmatprep.mubr.bf16.mxu1 %v6157_v59  ;;  %v5318_v59 = vld [vmem:[#allocation3 + $0x448] ss:$16 sps:$4 sm:$0xff]   ;;  %v5383_v43 = vld [vmem:[#allocation3 + $0x70c] ss:$16 sps:$4 sm:$0xff]  }
 0x472   :  { %3666 = vmatpush1.bf16.msra.mxu0 %v5294_v57  ;;  %v5381_v57 = vld [vmem:[#allocation3 + $0x708] ss:$16 sps:$4 sm:$0xff]  }
 0x473   :  { %3707 = vmatpush1.bf16.msra.mxu1 %v5297_v42  ;;  %3667 = vmatprep.subr.bf16.mxu0 %v5302_v51  ;;  %v5386_v42 = vld [vmem:[#allocation4 + $0x74] ss:$8 sps:$4 sm:$0xff]   ;;  %v5384_v51 = vld [vmem:[#allocation4 + $0x70] ss:$8 sps:$4 sm:$0xff]  }
 0x474   :  { %3708 = vmatprep.subr.bf16.mxu1 %v5305_v20  ;;  %v5389_v20 = vld [vmem:[#allocation4 + $0x64] ss:$8 sps:$4 sm:$0xff]  }
 0x476   :  { %3668 = vmatpush1.bf16.msra.mxu0 %v5300_v62 }
 0x477   :  { %3709 = vmatpush1.bf16.msra.mxu1 %v5303_v17  ;;  %3669 = vmatprep.subr.bf16.mxu0 %v5308_v22  ;;  %v5387_v22 = vld [vmem:[#allocation4 + $0x60] ss:$8 sps:$4 sm:$0xff]  }
 0x478   :  { %3710 = vmatprep.subr.bf16.mxu1 %v5311_v25 }
 0x47a   :  { %3670 = vmatpush1.bf16.msra.mxu0 %v5306_v32 }
 0x47b   :  { %3711 = vmatpush1.bf16.msra.mxu1 %v5309_v12  ;;  %3671 = vmatprep.subr.bf16.mxu0 %v5314_v63  ;;  %v5392_v12 = vld [vmem:[#allocation4 + $0x54] ss:$8 sps:$4 sm:$0xff]  }
 0x47c   :  { %3712 = vmatprep.subr.bf16.mxu1 %v5317_v45 }
 0x47e   :  { %3672 = vmatpush1.bf16.msra.mxu0 %v5312_v55  ;;  %v5390_v55 = vld [vmem:[#allocation4 + $0x50] ss:$8 sps:$4 sm:$0xff]  }
 0x47f   :  { %3713 = vmatpush1.bf16.msra.mxu1 %v5315_v29  ;;  %3673 = vmatprep.subr.bf16.mxu0 %v5320_v28 }
 0x480   :  { %3714 = vmatprep.subr.bf16.mxu1 %v5323_v26  ;;  %v5395_v26 = vld [vmem:[#allocation4 + $0x44] ss:$8 sps:$4 sm:$0xff]  }
 0x482   :  { %3674 = vmatpush1.bf16.msra.mxu0 %v5318_v59  ;;  %v5432_v59 = vld [vmem:[#allocation4 + $0x170] ss:$8 sps:$4 sm:$0xff]  }
 0x483   :  { %3715 = vmatpush1.bf16.msra.mxu1 %v5321_v56  ;;  %3675 = vmatprep.subr.bf16.mxu0 %v5326_v40  ;;  %v5437_v56 = vld [vmem:[#allocation4 + $0x164] ss:$8 sps:$4 sm:$0xff]   ;;  %v5435_v40 = vld [vmem:[#allocation4 + $0x160] ss:$8 sps:$4 sm:$0xff]  }
 0x484   :  { %3716 = vmatprep.subr.bf16.mxu1 %v5329_v47  ;;  %v5398_v47 = vld [vmem:[#allocation4 + $0x34] ss:$8 sps:$4 sm:$0xff]  }
 0x486   :  { %3676 = vmatpush1.bf16.msra.mxu0 %v5324_v41  ;;  %v5440_v41 = vld [vmem:[#allocation4 + $0x154] ss:$8 sps:$4 sm:$0xff]  }
 0x487   :  { %3717 = vmatpush1.bf16.msra.mxu1 %v5327_v4  ;;  %3677 = vmatprep.subr.bf16.mxu0 %v5332_v18  ;;  %v5396_v4 = vld [vmem:[#allocation4 + $0x30] ss:$8 sps:$4 sm:$0xff]  }
 0x488   :  { %3718 = vmatprep.subr.bf16.mxu1 %v5335_v7  ;;  %v5438_v18 = vld [vmem:[#allocation4 + $0x150] ss:$8 sps:$4 sm:$0xff]   ;;  %v5401_v7 = vld [vmem:[#allocation4 + $0x24] ss:$8 sps:$4 sm:$0xff]  }
 0x48a   :  { %3678 = vmatpush1.bf16.msra.mxu0 %v5330_v24  ;;  %v5443_v24 = vld [vmem:[#allocation4 + $0x144] ss:$8 sps:$4 sm:$0xff]  }
 0x48b   :  { %3719 = vmatpush1.bf16.msra.mxu1 %v5333_v50  ;;  %3679 = vmatprep.subr.bf16.mxu0 %v5338_v38  ;;  %v5399_v50 = vld [vmem:[#allocation4 + $0x20] ss:$8 sps:$4 sm:$0xff]  }
 0x48c   :  { %3720 = vmatprep.subr.bf16.mxu1 %v5341_v8  ;;  %v5441_v38 = vld [vmem:[#allocation4 + $0x140] ss:$8 sps:$4 sm:$0xff]   ;;  %v5404_v8 = vld [vmem:[#allocation4 + $0x14] ss:$8 sps:$4 sm:$0xff]  }
 0x48e   :  { %3680 = vmatpush2.bf16.msra.mxu0 %v5336_v52  ;;  %v5446_v52 = vld [vmem:[#allocation4 + $0x134] ss:$8 sps:$4 sm:$0xff]  }
 0x48f   :  { %3721 = vmatpush2.bf16.msra.mxu1 %v5339_v13  ;;  %3681 = vmatprep.subr.bf16.mxu0 %v5344_v53  ;;  %v5402_v13 = vld [vmem:[#allocation4 + $0x10] ss:$8 sps:$4 sm:$0xff]  }
 0x490   :  { %3722 = vmatprep.subr.bf16.mxu1 %v5347_v3  ;;  %v5444_v53 = vld [vmem:[#allocation4 + $0x130] ss:$8 sps:$4 sm:$0xff]   ;;  %v5407_v3 = vld [vmem:[#allocation4 + $0x4] ss:$8 sps:$4 sm:$0xff]  }
 0x492   :  { %3682 = vmatpush2.bf16.msra.mxu0 %v5342_v58  ;;  %v5449_v58 = vld [vmem:[#allocation4 + $0x124] ss:$8 sps:$4 sm:$0xff]  }
 0x493   :  { %3723 = vmatpush2.bf16.msra.mxu1 %v5345_v37  ;;  %3683 = vmatprep.subr.bf16.mxu0 %v5350_v30  ;;  %v5405_v37 = vld [vmem:[#allocation4] ss:$8 sps:$4 sm:$0xff]  }
 0x494   :  { %3724 = vmatprep.subr.bf16.mxu1 %v5353_v48  ;;  %v5447_v30 = vld [vmem:[#allocation4 + $0x120] ss:$8 sps:$4 sm:$0xff]   ;;  %v5410_v48 = vld [vmem:[#allocation4 + $0xf4] ss:$8 sps:$4 sm:$0xff]  }
 0x496   :  { %3684 = vmatpush2.bf16.msra.mxu0 %v5348_v61  ;;  %v5452_v61 = vld [vmem:[#allocation4 + $0x114] ss:$8 sps:$4 sm:$0xff]  }
 0x497   :  { %3725 = vmatpush2.bf16.msra.mxu1 %v5351_v31  ;;  %3685 = vmatprep.subr.bf16.mxu0 %v5356_v35  ;;  %v5408_v31 = vld [vmem:[#allocation4 + $0xf0] ss:$8 sps:$4 sm:$0xff]  }
 0x498   :  { %3726 = vmatprep.subr.bf16.mxu1 %v5359_v10  ;;  %v5450_v35 = vld [vmem:[#allocation4 + $0x110] ss:$8 sps:$4 sm:$0xff]   ;;  %v5413_v10 = vld [vmem:[#allocation4 + $0xe4] ss:$8 sps:$4 sm:$0xff]  }
 0x49a   :  { %3686 = vmatpush2.bf16.msra.mxu0 %v5354_v44  ;;  %v5455_v44 = vld [vmem:[#allocation4 + $0x104] ss:$8 sps:$4 sm:$0xff]  }
 0x49b   :  { %3727 = vmatpush2.bf16.msra.mxu1 %v5357_v36  ;;  %3687 = vmatprep.subr.bf16.mxu0 %v5362_v6  ;;  %v5411_v36 = vld [vmem:[#allocation4 + $0xe0] ss:$8 sps:$4 sm:$0xff]  }
 0x49c   :  { %3728 = vmatprep.subr.bf16.mxu1 %v5365_v11  ;;  %v5453_v6 = vld [vmem:[#allocation4 + $0x100] ss:$8 sps:$4 sm:$0xff]   ;;  %v5416_v11 = vld [vmem:[#allocation4 + $0xd4] ss:$8 sps:$4 sm:$0xff]  }
 0x49e   :  { %3688 = vmatpush2.bf16.msra.mxu0 %v5360_v2  ;;  %v5458_v2 = vld [vmem:[#allocation4 + $0x1f4] ss:$8 sps:$4 sm:$0xff]  }
 0x49f   :  { %3729 = vmatpush2.bf16.msra.mxu1 %v5363_v21  ;;  %3689 = vmatprep.subr.bf16.mxu0 %v5368_v54  ;;  %v5414_v21 = vld [vmem:[#allocation4 + $0xd0] ss:$8 sps:$4 sm:$0xff]  }
 0x4a0   :  { %3730 = vmatprep.subr.bf16.mxu1 %v5371_v33  ;;  %v5456_v54 = vld [vmem:[#allocation4 + $0x1f0] ss:$8 sps:$4 sm:$0xff]   ;;  %v5419_v33 = vld [vmem:[#allocation4 + $0xc4] ss:$8 sps:$4 sm:$0xff]  }
 0x4a2   :  { %3690 = vmatpush2.bf16.msra.mxu0 %v5366_v23  ;;  %v5461_v23 = vld [vmem:[#allocation4 + $0x1e4] ss:$8 sps:$4 sm:$0xff]  }
 0x4a3   :  { %3731 = vmatpush2.bf16.msra.mxu1 %v5369_v0  ;;  %3691 = vmatprep.subr.bf16.mxu0 %v5374_v15  ;;  %v5417_v0 = vld [vmem:[#allocation4 + $0xc0] ss:$8 sps:$4 sm:$0xff]  }
 0x4a4   :  { %3732 = vmatprep.subr.bf16.mxu1 %v5377_v34  ;;  %v5459_v15 = vld [vmem:[#allocation4 + $0x1e0] ss:$8 sps:$4 sm:$0xff]   ;;  %v5422_v34 = vld [vmem:[#allocation4 + $0xb4] ss:$8 sps:$4 sm:$0xff]  }
 0x4a6   :  { %3692 = vmatpush2.bf16.msra.mxu0 %v5372_v49  ;;  %v5464_v49 = vld [vmem:[#allocation4 + $0x1d4] ss:$8 sps:$4 sm:$0xff]  }
 0x4a7   :  { %3733 = vmatpush2.bf16.msra.mxu1 %v5375_v1  ;;  %3693 = vmatprep.subr.bf16.mxu0 %v5380_v27  ;;  %v5420_v1 = vld [vmem:[#allocation4 + $0xb0] ss:$8 sps:$4 sm:$0xff]  }
 0x4a8   :  { %3734 = vmatprep.subr.bf16.mxu1 %v5383_v43  ;;  %v5462_v27 = vld [vmem:[#allocation4 + $0x1d0] ss:$8 sps:$4 sm:$0xff]   ;;  %v5425_v43 = vld [vmem:[#allocation4 + $0xa4] ss:$8 sps:$4 sm:$0xff]  }
 0x4aa   :  { %3694 = vmatpush2.bf16.msra.mxu0 %v5378_v9  ;;  %v5467_v9 = vld [vmem:[#allocation4 + $0x1c4] ss:$8 sps:$4 sm:$0xff]  }
 0x4ab   :  { %3735 = vmatpush2.bf16.msra.mxu1 %v5381_v57  ;;  %4149 = vmatprep.subr.bf16.mxu0 %v5386_v42  ;;  %v5423_v57 = vld [vmem:[#allocation4 + $0xa0] ss:$8 sps:$4 sm:$0xff]  }
 0x4ac   :  { %v5465_v42 = vld [vmem:[#allocation4 + $0x1c0] ss:$8 sps:$4 sm:$0xff]  }
 0x4ad   :  { %v6179_v62 = vpop.f32.mrf.mxu0  ;;  %3696 = vmatmul.mubr.bf16.vlgmr.msra.gmra.mxu0 %v6165_v5  ;;  %v5434_v5 = vld [vmem:[#allocation4 + $0x174] ss:$8 sps:$4 sm:$0xff]  }
 0x4ae   :  { %v6181_v17 = vpop.f32.mrf.mxu1  ;;  %3737 = vmatmul.mubr.bf16.vlgmr.msra.gmra.mxu1 %v6169_v46  ;;  %4150 = vmatpush1.bf16.msra.mxu0 %v5384_v51  ;;  %v5393_v46 = vld [vmem:[#allocation4 + $0x40] ss:$8 sps:$4 sm:$0xff]   ;;  %v5428_v51 = vld [vmem:[#allocation4 + $0x94] ss:$8 sps:$4 sm:$0xff]  }
 0x4af   :  { %v6185_v25 = vpop.f32.mrf.mxu0  ;;  %4151 = vmatprep.subr.bf16.mxu0 %v5389_v20  ;;  %4190 = vmatprep.subr.bf16.mxu1 %v5434_v5  ;;  %v5470_v20 = vld [vmem:[#allocation4 + $0x1b4] ss:$8 sps:$4 sm:$0xff]   ;;  %v5473_v5 = vld [vmem:[#allocation4 + $0x1a4] ss:$8 sps:$4 sm:$0xff]  }
 0x4b0   :  { %v6187_v32 = vpop.f32.mrf.mxu1  ;;  %4191 = vmatpush1.bf16.msra.mxu1 %v5432_v59 }
 0x4b1   :  { %v3455_v63 = vpop.f32.mrf.mxu0  ;;  %4192 = vmatprep.subr.bf16.mxu1 %v5437_v56 }
 0x4b2   :  { %v3496_v45 = vpop.f32.mrf.mxu1  ;;  %4152 = vmatpush1.bf16.msra.mxu0 %v5387_v22  ;;  %v6192_v22 = vld [vmem:[%s6226_s7] sm:$0xf]  ;;  %v5468_v63 = vld [vmem:[#allocation4 + $0x1b0] ss:$8 sps:$4 sm:$0xff]  }
 0x4b3   :  { %v3456_v29 = vpop.f32.mrf.mxu0  ;;  %4153 = vmatprep.subr.bf16.mxu0 %v5392_v12  ;;  %v5426_v12 = vld [vmem:[#allocation4 + $0x90] ss:$8 sps:$4 sm:$0xff]   ;;  %v5431_v45 = vld [vmem:[#allocation4 + $0x84] ss:$8 sps:$4 sm:$0xff]  }
 0x4b4   :  { %v3497_v28 = vpop.f32.mrf.mxu1  ;;  %4193 = vmatpush1.bf16.msra.mxu1 %v5435_v40  ;;  %v2124_v29 = vrot.slane %v6192_v22, %v5859_v16 }
 0x4b5   :  { %4194 = vmatprep.subr.bf16.mxu1 %v5440_v41  ;;  %v5429_v28 = vld [vmem:[#allocation4 + $0x80] ss:$8 sps:$4 sm:$0xff]  }
 0x4b6   :  { %4154 = vmatpush1.bf16.msra.mxu0 %v5390_v55  ;;  %v2120_v55 = vrot.slane %v6192_v22, %v5850_v60  ;;  %v3454_v59 = vadd.f32 %v6185_v25, %v2124_v29 }
 0x4b7   :  { %4155 = vmatprep.subr.bf16.mxu0 %v5395_v26 }
 0x4b8   :  { %4195 = vmatpush1.bf16.msra.mxu1 %v5438_v18  ;;  %v3452_v26 = vadd.f32 %v6179_v62, %v2120_v55  ;;  %v3495_v41 = vadd.f32 %v6187_v32, %v3454_v59  ;;  %v5474_v62 = vld [vmem:[#allocation4 + $0x190] ss:$8 sps:$4 sm:$0xff]  }
 0x4b9   :  { %4196 = vmatprep.subr.bf16.mxu1 %v5443_v24  ;;  %v5476_v24 = vld [vmem:[#allocation4 + $0x194] ss:$8 sps:$4 sm:$0xff]  }
 0x4ba   :  { %4156 = vmatpush1.bf16.msra.mxu0 %v5393_v46  ;;  %v3493_v56 = vadd.f32 %v6181_v17, %v3452_v26  ;;  %v5471_v46 = vld [vmem:[#allocation4 + $0x1a0] ss:$8 sps:$4 sm:$0xff]  }
 0x4bb   :  { %4157 = vmatprep.subr.bf16.mxu0 %v5398_v47 }
 0x4bc   :  { %4197 = vmatpush1.bf16.msra.mxu1 %v5441_v38 }
 0x4bd   :  { %4198 = vmatprep.subr.bf16.mxu1 %v5446_v52 }
 0x4be   :  { %4158 = vmatpush1.bf16.msra.mxu0 %v5396_v4 }
 0x4bf   :  { %4159 = vmatprep.subr.bf16.mxu0 %v5401_v7 }
 0x4c0   :  { %4199 = vmatpush1.bf16.msra.mxu1 %v5444_v53 }
 0x4c1   :  { %4200 = vmatprep.subr.bf16.mxu1 %v5449_v58 }
 0x4c2   :  { %4160 = vmatpush1.bf16.msra.mxu0 %v5399_v50 }
 0x4c3   :  { %4161 = vmatprep.subr.bf16.mxu0 %v5404_v8 }
 0x4c4   :  { %4201 = vmatpush1.bf16.msra.mxu1 %v5447_v30 }
 0x4c5   :  { %4202 = vmatprep.subr.bf16.mxu1 %v5452_v61 }
 0x4c6   :  { %4162 = vmatpush1.bf16.msra.mxu0 %v5402_v13 }
 0x4c7   :  { %4163 = vmatprep.subr.bf16.mxu0 %v5407_v3  ;;  %v5479_v3 = vld [vmem:[#allocation4 + $0x184] ss:$8 sps:$4 sm:$0xff]  }
 0x4c8   :  { %4203 = vmatpush1.bf16.msra.mxu1 %v5450_v35 }
 0x4c9   :  { %4204 = vmatprep.subr.bf16.mxu1 %v5455_v44 }
 0x4ca   :  { %4164 = vmatpush1.bf16.msra.mxu0 %v5405_v37  ;;  %v5477_v37 = vld [vmem:[#allocation4 + $0x180] ss:$8 sps:$4 sm:$0xff]  }
 0x4cb   :  { %4165 = vmatprep.subr.bf16.mxu0 %v5410_v48 }
 0x4cc   :  { %4205 = vmatpush1.bf16.msra.mxu1 %v5453_v6 }
 0x4cd   :  { %4206 = vmatprep.subr.bf16.mxu1 %v5458_v2  ;;  %v5481_v2 = vld [vmem:[#allocation5 + $0x38] sm:$0xff]  }
 0x4ce   :  { %4166 = vmatpush2.bf16.msra.mxu0 %v5408_v31 }
 0x4cf   :  { %4167 = vmatprep.subr.bf16.mxu0 %v5413_v10 }
 0x4d0   :  { %4207 = vmatpush2.bf16.msra.mxu1 %v5456_v54  ;;  %v5483_v54 = vld [vmem:[#allocation5 + $0x30] sm:$0xff]  }
 0x4d1   :  { %4208 = vmatprep.subr.bf16.mxu1 %v5461_v23  ;;  %v5485_v23 = vld [vmem:[#allocation5 + $0x28] sm:$0xff]  }
 0x4d2   :  { %4168 = vmatpush2.bf16.msra.mxu0 %v5411_v36 }
 0x4d3   :  { %4169 = vmatprep.subr.bf16.mxu0 %v5416_v11  ;;  %v5480_v11 = vld [vmem:[#allocation5 + $0x78] sm:$0xff]  }
 0x4d4   :  { %4209 = vmatpush2.bf16.msra.mxu1 %v5459_v15  ;;  %v5487_v15 = vld [vmem:[#allocation5 + $0x20] sm:$0xff]  }
 0x4d5   :  { %4210 = vmatprep.subr.bf16.mxu1 %v5464_v49  ;;  %v5489_v49 = vld [vmem:[#allocation5 + $0x18] sm:$0xff]  }
 0x4d6   :  { %4170 = vmatpush2.bf16.msra.mxu0 %v5414_v21  ;;  %v5482_v21 = vld [vmem:[#allocation5 + $0x70] sm:$0xff]  }
 0x4d7   :  { %4171 = vmatprep.subr.bf16.mxu0 %v5419_v33  ;;  %v5484_v33 = vld [vmem:[#allocation5 + $0x68] sm:$0xff]  }
 0x4d8   :  { %4211 = vmatpush2.bf16.msra.mxu1 %v5462_v27  ;;  %v5491_v27 = vld [vmem:[#allocation5 + $0x10] sm:$0xff]  }
 0x4d9   :  { %4212 = vmatprep.subr.bf16.mxu1 %v5467_v9  ;;  %v2132_v9 = vrot.slane %v6192_v22, %v670_v19 }
 0x4da   :  { %4172 = vmatpush2.bf16.msra.mxu0 %v5417_v0  ;;  %v5486_v0 = vld [vmem:[#allocation5 + $0x60] sm:$0xff]  }
 0x4db   :  { %4173 = vmatprep.subr.bf16.mxu0 %v5422_v34  ;;  %v5488_v34 = vld [vmem:[#allocation5 + $0x58] sm:$0xff]  }
 0x4dc   :  { %4213 = vmatpush2.bf16.msra.mxu1 %v5465_v42 }
 0x4dd   :  { %4214 = vmatprep.subr.bf16.mxu1 %v5470_v20 }
 0x4de   :  { %4174 = vmatpush2.bf16.msra.mxu0 %v5420_v1  ;;  %v5490_v1 = vld [vmem:[#allocation5 + $0x50] sm:$0xff]  }
 0x4df   :  { %4175 = vmatprep.subr.bf16.mxu0 %v5425_v43  ;;  %v2128_v43 = vrot.slane %v6192_v22, %v666_v14 }
 0x4e0   :  { %4215 = vmatpush2.bf16.msra.mxu1 %v5468_v63 }
 0x4e1   :  { %4216 = vmatprep.subr.bf16.mxu1 %v5473_v5 }
 0x4e2   :  { %4176 = vmatpush2.bf16.msra.mxu0 %v5423_v57 }
 0x4e3   :  { %4177 = vmatprep.subr.bf16.mxu0 %v5428_v51 }
 0x4e4   :  { %4217 = vmatpush2.bf16.msra.mxu1 %v5471_v46 }
 0x4e5   :  { %4218 = vmatprep.subr.bf16.mxu1 %v5476_v24  ;;  %v5494_v24 = vld [vmem:[#allocation5 + $0x40] sm:$0xff]  }
 0x4e6   :  { %4178 = vmatpush2.bf16.msra.mxu0 %v5426_v12 }
 0x4e7   :  { %4179 = vmatprep.subr.bf16.mxu0 %v5431_v45 }
 0x4e8   :  { %4219 = vmatpush2.bf16.msra.mxu1 %v5474_v62  ;;  %v3817_v62 = vld [vmem:[%s6227_s8] sm:$0x3] }
 0x4e9   :  { %4220 = vmatprep.subr.bf16.mxu1 %v5479_v3 }
 0x4ea   :  { %4180 = vmatpush2.bf16.msra.mxu0 %v5429_v28 }
 0x4eb   :  { %4911 = vmatprep.subr.bf16.mxu0 %v5480_v11 }
 0x4ec   :  { %4221 = vmatpush2.bf16.msra.mxu1 %v5477_v37 }
 0x4ed   :  { %v3533_v40 = vpop.f32.mrf.mxu0 }
 0x4ee   :  { %v3574_v47 = vpop.f32.mrf.mxu1  ;;  %v3534_v4 = vadd.f32 %v3533_v40, %v3493_v56 }
 0x4ef   :  { %v3535_v18 = vpop.f32.mrf.mxu0 }
 0x4f0   :  { %v3576_v7 = vpop.f32.mrf.mxu1  ;;  %v3575_v50 = vadd.f32 %v3574_v47, %v3534_v4  ;;  %v3536_v38 = vadd.f32 %v3535_v18, %v3495_v41  ;;  %v5492_v41 = vld [vmem:[#allocation5 + $0x48] sm:$0xff]  }
 0x4f1   :  { %v3537_v8 = vpop.f32.mrf.mxu0  ;;  %v5493_v4 = vld [vmem:[#allocation5 + $0x8] sm:$0xff]  }
 0x4f2   :  { %v3578_v25 = vpop.f32.mrf.mxu1  ;;  %v3577_v52 = vadd.f32 %v3576_v7, %v3536_v38  ;;  %v3745_v17 = vmax.f32 %v3575_v50, 0.0  ;;  %v5495_v50 = vld [vmem:[#allocation5] sm:$0xff]   ;;  %v3822_v8 = vrot.slane %v3817_v62, %v5850_v60 }
 0x4f3   :  { %v3538_v13 = vpop.f32.mrf.mxu0  ;;  %v3826_v25 = vrot.slane %v3817_v62, %v5859_v16  ;;  %v4862_v60 = vld [vmem:[%s6228_s9] ss:$0 sm:$0xff] }
 0x4f4   :  { %v3579_v53 = vpop.f32.mrf.mxu1  ;;  %v3746_v58 = vmax.f32 %v3577_v52, 0.0  ;;  %v3749_v30 = vpack.c.bf16 %v3745_v17, %v3745_v17 }
 0x4f6   :  { %v3750_v32 = vpack.c.bf16 %v3746_v58, %v3746_v58 }
 0x4f8   :  { %4181 = vmatprep.mubr.bf16.mxu0 %v3750_v32 }
 0x4f9   :  { %4182 = vmatmul.mubr.bf16.vlgmr.msra.gmra.mxu0 %v3749_v30 }
 0x4fa   :  { %4912 = vmatpush3.bf16.msra.mxu0 %v5481_v2 }
 0x4fb   :  { %4913 = vmatprep.subr.bf16.mxu0 %v5482_v21 }
 0x4fe   :  { %4914 = vmatpush3.bf16.msra.mxu0 %v5483_v54 }
 0x4ff   :  { %4915 = vmatprep.subr.bf16.mxu0 %v5484_v33 }
 0x502   :  { %4916 = vmatpush3.bf16.msra.mxu0 %v5485_v23 }
 0x503   :  { %4917 = vmatprep.subr.bf16.mxu0 %v5486_v0 }
 0x506   :  { %4918 = vmatpush3.bf16.msra.mxu0 %v5487_v15 }
 0x507   :  { %4919 = vmatprep.subr.bf16.mxu0 %v5488_v34 }
 0x50a   :  { %4920 = vmatpush3.bf16.msra.mxu0 %v5489_v49 }
 0x50b   :  { %4921 = vmatprep.subr.bf16.mxu0 %v5490_v1 }
 0x50e   :  { %4922 = vmatpush3.bf16.msra.mxu0 %v5491_v27 }
 0x50f   :  { %4923 = vmatprep.subr.bf16.mxu0 %v5492_v41 }
 0x512   :  { %4924 = vmatpush3.bf16.msra.mxu0 %v5493_v4 }
 0x513   :  { %4925 = vmatprep.subr.bf16.mxu0 %v5494_v24 }
 0x516   :  { %4926 = vmatpush3.bf16.msra.mxu0 %v5495_v50 }
 0x52d   :  { %v3615_v48 = vpop.f32.mrf.mxu0 }
 0x52e   :  { %v3656_v61 = vpop.f32.mrf.mxu1  ;;  %v3616_v57 = vadd.f32 %v3615_v48, %v2128_v43 }
 0x52f   :  { %v3617_v31 = vpop.f32.mrf.mxu0 }
 0x530   :  { %v3658_v35 = vpop.f32.mrf.mxu1  ;;  %v3618_v42 = vadd.f32 %v3617_v31, %v2132_v9  ;;  %v3657_v51 = vadd.f32 %v3656_v61, %v3616_v57 }
 0x531   :  { %v3619_v10 = vpop.f32.mrf.mxu0 }
 0x532   :  { %v3660_v44 = vpop.f32.mrf.mxu1  ;;  %v3659_v63 = vadd.f32 %v3658_v35, %v3618_v42 }
 0x533   :  { %v3620_v36 = vpop.f32.mrf.mxu0 }
 0x534   :  { %v3661_v6 = vpop.f32.mrf.mxu1 }
 0x56d   :  { %v3697_v20 = vpop.f32.mrf.mxu0 }
 0x56e   :  { %v3738_v12 = vpop.f32.mrf.mxu1  ;;  %v3698_v45 = vadd.f32 %v3697_v20, %v3657_v51 }
 0x56f   :  { %v3699_v55 = vpop.f32.mrf.mxu0 }
 0x570   :  { %v3740_v29 = vpop.f32.mrf.mxu1  ;;  %v3739_v28 = vadd.f32 %v3738_v12, %v3698_v45  ;;  %v3700_v26 = vadd.f32 %v3699_v55, %v3659_v63 }
 0x571   :  { %v3701_v59 = vpop.f32.mrf.mxu0 }
 0x572   :  { %v3742_v5 = vpop.f32.mrf.mxu1  ;;  %v3741_v56 = vadd.f32 %v3740_v29, %v3700_v26  ;;  %v3747_v46 = vmax.f32 %v3739_v28, 0.0 }
 0x573   :  { %v3702_v14 = vpop.f32.mrf.mxu0 }
 0x574   :  { %v3743_v40 = vpop.f32.mrf.mxu1  ;;  %v3748_v39 = vmax.f32 %v3741_v56, 0.0  ;;  %v3751_v19 = vpack.c.bf16 %v3747_v46, %v3747_v46 }
 0x576   :  { %v3752_v47 = vpack.c.bf16 %v3748_v39, %v3748_v39 }
 0x578   :  { %4222 = vmatprep.mubr.bf16.mxu1 %v3752_v47 }
 0x579   :  { %4223 = vmatmul.mubr.bf16.vlgmr.msra.gmra.mxu1 %v3751_v19 }
 0x5b9   :  { %v4183_v22 = vpop.f32.mrf.mxu0 }
 0x5ba   :  { %v4184_v52 = vadd.f32 %v4183_v22, %v3822_v8 }
 0x5bb   :  { %v4185_v18 = vpop.f32.mrf.mxu0 }
 0x5bc   :  { %v4186_v13 = vadd.f32 %v4185_v18, %v3826_v25 }
 0x5bd   :  { %v4187_v7 = vpop.f32.mrf.mxu0 }
 0x5bf   :  { %v4188_v38 = vpop.f32.mrf.mxu0 }
 0x639   :  { %v4224_v17 = vpop.f32.mrf.mxu1 }
 0x63a   :  { %v4225_v53 = vadd.f32 %v4224_v17, %v4184_v52 }
 0x63b   :  { %v4226_v3 = vpop.f32.mrf.mxu1 }
 0x63c   :  { %v4227_v58 = vadd.f32 %v4226_v3, %v4186_v13  ;;  %v4231_v37 = vmax.f32 %v4225_v53, 0.0 }
 0x63d   :  { %v4228_v32 = vpop.f32.mrf.mxu1 }
 0x63e   :  { %v4232_v30 = vmax.f32 %v4227_v58, 0.0  ;;  %v4233_v31 = vpack.c.bf16 %v4231_v37, %v4231_v37 }
 0x63f   :  { %v4229_v48 = vpop.f32.mrf.mxu1 }
 0x640   :  { %v4234_v61 = vpack.c.bf16 %v4232_v30, %v4232_v30 }
 0x642   :  { %4402 = vmatprep.mubr.bf16.mxu0 %v4234_v61 }
 0x643   :  { %4403 = vmatmul.mubr.bf16.vlgmr.msra.gmra.mxu0 %v4233_v31 }
 0x703   :  { %v4927_v35 = vpop.f32.mrf.mxu0 }
 0x705   :  { %v4928_v16 = vpop.f32.mrf.mxu0 }
 0x706   :  { %v4929_v10 = vadd.f32 %v4928_v16, %v4927_v35 }
 0x707   :  { %v4930_v44 = vpop.f32.mrf.mxu0 }
 0x708   :  { %v4405_v36 = vadd.f32 %v4929_v10, %v4862_v60 }
 0x709   :  { %v4931_v6 = vpop.f32.mrf.mxu0 }
 0x70a   :  { %4410 = vst [vmem:[#allocation12] sm:$0x3] %v4405_v36 }
 0x70b   :  { %5607 = shalt.err (!%p5604_p1)
}
 0x70c   :  { %4420 = dma.vmem_to_hbm [thread:$0]  %s4418_s26, 32, %s6232_s13, [#allocation9]  }
 0x70d   :  { %5626 = dma.done.wait [#allocation9], 32  }
 0x70e   :  { %5627 = vsyncadd [#allocation9], 4294967264 }
 0x70f   :  { %4424 = vsyncpa [#allocation8], 1 }
 0x710   :  { %4425 = vsyncpa [#allocation11], 1 }
 0x711   :  { %4426 = vsyncpa [#allocation9], 1 }
 0x712   :  { %4427 = vsyncmov [#allocation6] }
 0x715   :  { %s4428_s9 = vpop.sfrf %4427 }
 0x716   :  { %p4879_p2 = scmp.ne.s32.totalorder %s4428_s9, 0 }
 0x718   :  { %4432 = shalt.err (%p4879_p2)  }
 0x719   :  { %4434 = vsyncmov [#allocation6 + $0x1] }
 0x71c   :  { %s4435_s5 = vpop.sfrf %4434 }
 0x71d   :  { %p4880_p3 = scmp.ne.s32.totalorder %s4435_s5, 0 }
 0x71f   :  { %4439 = shalt.err (%p4880_p3)  }
 0x720   :  { %4441 = vsyncmov [#allocation6 + $0x2] }
 0x723   :  { %s4442_s4 = vpop.sfrf %4441 }
 0x724   :  { %p4881_p4 = scmp.ne.s32.totalorder %s4442_s4, 0 }
 0x726   :  { %4446 = shalt.err (%p4881_p4)  }

</bundles_post_ra>
